<compile_context>
chip_gen: v7x
topology: tpu7x:2x2x1
jax: 0.10.0
libtpu: 0.0.40
codegen_flags: <defaults>
</compile_context>

<pallas_src>
import functools

import jax
import jax.numpy as jnp
from jax.experimental import pallas as pl
from jax.experimental.pallas import tpu as pltpu

NUM_ATOM_TYPE = 120
NUM_CHIRALITY_TAG = 3
NUM_BOND_TYPE = 6
NUM_BOND_DIRECTION = 3
NUM_BOND_COMBO = NUM_BOND_TYPE * NUM_BOND_DIRECTION   # 18 (incl. self-loop type 4)
COMBO_PAD = 128                                       # lane-padded combo axis
_BN_EPS = 1e-5


def _round_up(x, m):
    return ((x + m - 1) // m) * m


def _pad2(a, shape):
    return jnp.pad(a, [(0, t - s) for s, t in zip(a.shape, shape)])


def _vmem_cap_bytes():
    """Best-effort physical-VMEM cap for the vmem_limit_bytes computation."""
    try:
        info = pltpu.get_tpu_info()
        cap = getattr(info, "vmem_capacity_bytes", None)
        if cap:
            return int(cap * 0.85)
    except Exception:
        pass
    return 48 << 20   # conservative default (safe on v5e/v6e/v7x)


# ----------------------------------------------------------------------------
# Fused Pallas kernel: all GIN layers + BatchNorm + ReLU + global mean pool.
# grid = (num_layer,); h carried across layers in a bf16 VMEM scratch.
# ----------------------------------------------------------------------------
def _gnn_fused_kernel(adj_ref, h0_ref, cmat_ref, pmat_ref,
                      etab_ref, w1_ref, w2_ref, aff_ref,
                      node_out_ref, graph_out_ref, h_carry,
                      *, n_real, d_pad):
    layer = pl.program_id(0)
    last = pl.num_programs(0) - 1

    @pl.when(layer == 0)
    def _():
        h_carry[...] = h0_ref[...]

    h = h_carry[...]                                               # (N, D) bf16

    # GIN 'add' aggregation with self-loops:
    #   aggr_i = sum_{e: dst_e == i} (h[src_e] + edge_emb_e) = (A@h)_i + (C@Etab)_i
    aggr = (jnp.dot(adj_ref[...], h, preferred_element_type=jnp.float32)
            + jnp.dot(cmat_ref[...], etab_ref[...],
                      preferred_element_type=jnp.float32))         # (N, D) f32

    b1 = aff_ref[0:1, :]                                           # (1, H) f32
    gamma = aff_ref[1:2, :d_pad]                                   # (1, D) f32
    beta = aff_ref[2:3, :d_pad]                                    # (1, D) f32

    # MLP: Linear(D, 2D) -> ReLU -> Linear(2D, D); bf16 MXU, f32 accumulation.
    z = jnp.dot(aggr.astype(jnp.bfloat16), w1_ref[...],
                preferred_element_type=jnp.float32) + b1
    z = jnp.maximum(z, 0.0)
    h2 = jnp.dot(z.astype(jnp.bfloat16), w2_ref[...],
                 preferred_element_type=jnp.float32)               # (N, D) f32
    # Linear-2 bias intentionally omitted: under training-mode BatchNorm the
    # per-feature batch-mean subtraction cancels a constant bias exactly.

    # BatchNorm1d (training mode): stats over the n_real true rows only,
    # biased variance, eps=1e-5.  Padded feature columns stay 0 via gamma/beta.
    row = jax.lax.broadcasted_iota(jnp.int32, (h2.shape[0], 1), 0)
    mask = (row < n_real).astype(jnp.float32)                      # (N, 1)
    inv_n = 1.0 / float(n_real)
    mean = jnp.sum(h2 * mask, axis=0, keepdims=True) * inv_n
    d = h2 - mean
    dm = d * mask
    var = jnp.sum(dm * dm, axis=0, keepdims=True) * inv_n
    scale = jax.lax.rsqrt(var + _BN_EPS) * gamma                   # EUP rsqrt
    hn = d * scale + beta                                          # (N, D) f32
    # Padded node rows of hn may hold garbage; they are never read (adjacency,
    # bond-count and pool columns for padded nodes are zero, node_out is sliced
    # in the wrapper), so no masking pass is spent on them.

    # Carry for the next layer always gets ReLU (the post-last-layer carry is
    # never read, so this matches "ReLU on every layer except the last").
    h_carry[...] = jnp.maximum(hn, 0.0).astype(jnp.bfloat16)

    @pl.when(layer == last)
    def _():
        node_out_ref[...] = hn                                     # no ReLU on last
        # Fused sum-pool with an exact 0/1 bf16 indicator; division by the
        # per-graph node counts happens on the tiny sliced result outside.
        graph_out_ref[...] = jnp.dot(pmat_ref[...], hn.astype(jnp.bfloat16),
                                     preferred_element_type=jnp.float32)


# ----------------------------------------------------------------------------
# Parameter init (deterministic; matches module shapes, xavier_uniform embs)
# ----------------------------------------------------------------------------
def _xavier_uniform(key, shape):
    fan_in, fan_out = shape[0], shape[1]
    bound = (6.0 / (fan_in + fan_out)) ** 0.5
    return jax.random.uniform(key, shape, jnp.float32, -bound, bound)


def init_params(key, num_layer, emb_dim):
    keys = jax.random.split(key, 2 + 6 * num_layer)
    params = {
        "x_emb1": _xavier_uniform(keys[0], (NUM_ATOM_TYPE, emb_dim)),
        "x_emb2": _xavier_uniform(keys[1], (NUM_CHIRALITY_TAG, emb_dim)),
        "layers": [],
    }
    ki = 2
    for _ in range(num_layer):
        k = keys[ki:ki + 6]
        ki += 6
        b1_bound = 1.0 / (emb_dim ** 0.5)
        b2_bound = 1.0 / ((2 * emb_dim) ** 0.5)
        layer = {
            "edge_emb1": _xavier_uniform(k[0], (NUM_BOND_TYPE, emb_dim)),
            "edge_emb2": _xavier_uniform(k[1], (NUM_BOND_DIRECTION, emb_dim)),
            # Linear weights stored as (in, out) for x @ W
            "w1": _xavier_uniform(k[2], (emb_dim, 2 * emb_dim)),
            "b1": jax.random.uniform(k[3], (1, 2 * emb_dim), jnp.float32,
                                     -b1_bound, b1_bound),
            "w2": _xavier_uniform(k[4], (2 * emb_dim, emb_dim)),
            # b2 is kept for module fidelity but is a no-op under training-mode
            # BatchNorm (it cancels in the mean subtraction), so it is not fed
            # to the kernel.
            "b2": jax.random.uniform(k[5], (1, emb_dim), jnp.float32,
                                     -b2_bound, b2_bound),
            "gamma": jnp.ones((1, emb_dim), jnp.float32),
            "beta": jnp.zeros((1, emb_dim), jnp.float32),
        }
        params["layers"].append(layer)
    return params


# ----------------------------------------------------------------------------
# Forward pass (JK='last', drop_ratio=0)
# ----------------------------------------------------------------------------
def gnn_forward(params, x, edge_index, edge_attr, batch, num_graphs):
    layers = params["layers"]
    num_layer = len(layers)
    n_nodes = int(x.shape[0])
    emb_dim = int(params["x_emb1"].shape[1])
    hid_dim = 2 * emb_dim

    # Lane/sublane/MXU-friendly padded sizes.
    d_pad = _round_up(emb_dim, 128)
    h_pad = _round_up(hid_dim, 128)
    n_pad = _round_up(max(n_nodes, 8), 128)
    g_pad = _round_up(max(int(num_graphs), 1), 8)

    # --- wrapper-side gathers/scatters (data-dependent, O(E + N) work) ------
    # Node embedding: x_embedding1(x[:,0]) + x_embedding2(x[:,1]).
    h0 = params["x_emb1"][x[:, 0]] + params["x_emb2"][x[:, 1]]      # (N, D) f32
    h0_pad = _pad2(h0, (n_pad, d_pad)).astype(jnp.bfloat16)

    # Self-loops with edge_attr = [4, 0].
    loop_idx = jnp.arange(n_nodes, dtype=edge_index.dtype)
    ei = jnp.concatenate([edge_index, jnp.stack([loop_idx, loop_idx])], axis=1)
    loop_attr = jnp.zeros((n_nodes, edge_attr.shape[1]),
                          edge_attr.dtype).at[:, 0].set(4)
    ea = jnp.concatenate([edge_attr, loop_attr], axis=0)
    src, dst = ei[0], ei[1]

    # Dense padded adjacency with multiplicities: A[i, j] = #edges j -> i.
    # Small integer counts (< 256) are exactly representable in bf16.
    adj = jnp.zeros((n_pad, n_pad), jnp.float32).at[dst, src].add(1.0)
    adj = adj.astype(jnp.bfloat16)
    # TODO(synk): for large batched graphs (n_pad >~ 2k on v7x / ~4k on
    # v5e/v6e) replace the dense (N,N) adjacency with per-graph block-diagonal
    # tiles (scalar-prefetched per-graph offsets) plus node-row tiling and a
    # two-pass BatchNorm reduction; that also enables megacore sharding of the
    # row-parallel work on v7x.

    # Loop-invariant per-node (bond_type, bond_direction) incidence counts.
    combo = ea[:, 0] * NUM_BOND_DIRECTION + ea[:, 1]                # (E',) < 18
    cmat = jnp.zeros((n_pad, COMBO_PAD), jnp.float32).at[dst, combo].add(1.0)
    cmat = cmat.astype(jnp.bfloat16)

    # Per-layer operands, stacked along a leading L axis and streamed.
    bt = jnp.arange(NUM_BOND_COMBO) // NUM_BOND_DIRECTION
    bd = jnp.arange(NUM_BOND_COMBO) % NUM_BOND_DIRECTION
    etabs, w1s, w2s, affs = [], [], [], []
    for lp in layers:
        etab = lp["edge_emb1"][bt] + lp["edge_emb2"][bd]            # (18, D)
        etabs.append(_pad2(etab, (COMBO_PAD, d_pad)).astype(jnp.bfloat16))
        w1s.append(_pad2(lp["w1"], (d_pad, h_pad)).astype(jnp.bfloat16))
        w2s.append(_pad2(lp["w2"], (h_pad, d_pad)).astype(jnp.bfloat16))
        aff = jnp.zeros((8, h_pad), jnp.float32)
        aff = aff.at[0, :hid_dim].set(lp["b1"][0])
        aff = aff.at[1, :emb_dim].set(lp["gamma"][0])   # zero-padded columns
        aff = aff.at[2, :emb_dim].set(lp["beta"][0])    # keep padded cols at 0
        affs.append(aff)
    etab_s = jnp.stack(etabs)        # (L, 128, D_pad) bf16
    w1_s = jnp.stack(w1s)            # (L, D_pad, H_pad) bf16
    w2_s = jnp.stack(w2s)            # (L, H_pad, D_pad) bf16
    aff_s = jnp.stack(affs)          # (L, 8, H_pad)    f32

    # Mean pool: exact 0/1 indicator (bf16) + post-division by counts.
    ind = jax.nn.one_hot(batch, num_graphs, dtype=jnp.float32).T    # (G, N)
    counts = jnp.maximum(ind.sum(axis=1, keepdims=True), 1.0)       # (G, 1)
    pmat = _pad2(ind, (g_pad, n_pad)).astype(jnp.bfloat16)

    kernel = functools.partial(_gnn_fused_kernel, n_real=n_nodes, d_pad=d_pad)

    def _call(single_buffer):
        inv_kw = {"pipeline_mode": pl.Buffered(1)} if single_buffer else {}
        in_specs = [
            # Loop-invariant operands: constant index_map -> VMEM-resident.
            pl.BlockSpec((n_pad, n_pad), lambda l: (0, 0), **inv_kw),      # adjacency
            pl.BlockSpec((n_pad, d_pad), lambda l: (0, 0), **inv_kw),      # h0
            pl.BlockSpec((n_pad, COMBO_PAD), lambda l: (0, 0), **inv_kw),  # bond counts
            pl.BlockSpec((g_pad, n_pad), lambda l: (0, 0), **inv_kw),      # pool indic.
            # Per-layer operands, streamed/pipelined along the layer axis.
            pl.BlockSpec((None, COMBO_PAD, d_pad), lambda l: (l, 0, 0)),   # edge table
            pl.BlockSpec((None, d_pad, h_pad), lambda l: (l, 0, 0)),       # w1
            pl.BlockSpec((None, h_pad, d_pad), lambda l: (l, 0, 0)),       # w2
            pl.BlockSpec((None, 8, h_pad), lambda l: (l, 0, 0)),           # b1/gam/beta
        ]
        out_specs = [
            pl.BlockSpec((n_pad, d_pad), lambda l: (0, 0), **inv_kw),      # node rep
            pl.BlockSpec((g_pad, d_pad), lambda l: (0, 0), **inv_kw),      # graph rep
        ]

        # VMEM budget derived from the actual resident set (+ headroom), capped
        # by physical VMEM of the current TPU generation.
        inv_buf = 1 if single_buffer else 2
        resident = inv_buf * (n_pad * n_pad * 2 + n_pad * d_pad * 2
                              + n_pad * COMBO_PAD * 2 + g_pad * n_pad * 2
                              + n_pad * d_pad * 4 + g_pad * d_pad * 4)
        resident += n_pad * d_pad * 2                                # bf16 h carry
        resident += 2 * (COMBO_PAD * d_pad * 2 + d_pad * h_pad * 2
                         + h_pad * d_pad * 2 + 8 * h_pad * 4)        # streamed (x2)
        temps = n_pad * h_pad * 4 + 3 * n_pad * d_pad * 4            # aggr/z/h2/hn
        vmem_limit = min(_vmem_cap_bytes(),
                         max(resident + temps + (4 << 20), 16 << 20))

        grid_spec = pltpu.PrefetchScalarGridSpec(
            num_scalar_prefetch=0,
            grid=(num_layer,),
            in_specs=in_specs,
            out_specs=out_specs,
            scratch_shapes=[pltpu.VMEM((n_pad, d_pad), jnp.bfloat16)],
        )
        out = pl.pallas_call(
            kernel,
            out_shape=(jax.ShapeDtypeStruct((n_pad, d_pad), jnp.float32),
                       jax.ShapeDtypeStruct((g_pad, d_pad), jnp.float32)),
            grid_spec=grid_spec,
            compiler_params=pltpu.CompilerParams(
                dimension_semantics=("arbitrary",),   # layer axis carries state
                vmem_limit_bytes=int(vmem_limit)),
        )(adj, h0_pad, cmat, pmat, etab_s, w1_s, w2_s, aff_s)
        jax.block_until_ready(out)
        return out

    try:
        node_pad, graph_pad = _call(True)
    except Exception:
        # Portability fallback for JAX builds without BlockSpec.pipeline_mode
        # support: default double-buffering (correct, just more VMEM).
        node_pad, graph_pad = _call(False)

    node_representation = node_pad[:n_nodes, :emb_dim]
    graph_representation = graph_pad[:num_graphs, :emb_dim] / counts  # mean pool
    # drop_ratio = 0 -> dropout is the identity (omitted).
    return graph_representation, node_representation


# ----------------------------------------------------------------------------
if __name__ == "__main__":
    key = jax.random.PRNGKey(0)
    num_layer = 3
    emb_dim = 32
    n_nodes = 8
    n_edges = 10
    num_graphs = 2

    k_param, k_atom, k_chir, k_src, k_dst, k_bond, k_dir = jax.random.split(key, 7)
    params = init_params(k_param, num_layer, emb_dim)

    # Node features: [atom_type, chirality_tag].
    x = jnp.stack([
        jax.random.randint(k_atom, (n_nodes,), 0, NUM_ATOM_TYPE),
        jax.random.randint(k_chir, (n_nodes,), 0, NUM_CHIRALITY_TAG),
    ], axis=1)

    # Directed edges (src, dst); edge features: [bond_type, bond_direction].
    edge_index = jnp.stack([
        jax.random.randint(k_src, (n_edges,), 0, n_nodes),
        jax.random.randint(k_dst, (n_edges,), 0, n_nodes),
    ], axis=0)
    edge_attr = jnp.stack([
        jax.random.randint(k_bond, (n_edges,), 0, 4),   # real bond types 0..3
        jax.random.randint(k_dir, (n_edges,), 0, NUM_BOND_DIRECTION),
    ], axis=1)

    # Graph assignment (4 nodes per graph).
    batch = jnp.array([0, 0, 0, 0, 1, 1, 1, 1], dtype=jnp.int32)

    graph_rep, node_rep = gnn_forward(params, x, edge_index, edge_attr,
                                      batch, num_graphs)
    jax.block_until_ready((graph_rep, node_rep))

    assert graph_rep.shape == (num_graphs, emb_dim)
    assert node_rep.shape == (n_nodes, emb_dim)
    assert bool(jnp.all(jnp.isfinite(graph_rep)))
    assert bool(jnp.all(jnp.isfinite(node_rep)))
    print("KERNEL_OK")
</pallas_src>

<mosaic_0001>
module attributes {stable_mosaic.version = 11 : i64} {
  func.func @_gnn_fused_kernel(%arg0: i32, %arg1: memref<128x128xbf16, #tpu.memory_space<vmem>>, %arg2: memref<128x128xbf16, #tpu.memory_space<vmem>>, %arg3: memref<128x128xbf16, #tpu.memory_space<vmem>>, %arg4: memref<8x128xbf16, #tpu.memory_space<vmem>>, %arg5: memref<1x128x128xbf16, #tpu.memory_space<vmem>>, %arg6: memref<1x128x128xbf16, #tpu.memory_space<vmem>>, %arg7: memref<1x128x128xbf16, #tpu.memory_space<vmem>>, %arg8: memref<1x8x128xf32, #tpu.memory_space<vmem>>, %arg9: memref<128x128xf32, #tpu.memory_space<vmem>>, %arg10: memref<8x128xf32, #tpu.memory_space<vmem>>, %arg11: memref<128x128xbf16, #tpu.memory_space<vmem>>) attributes {dimension_semantics = [#tpu.dimension_semantics<arbitrary>], iteration_bounds = array<i64: 3>, scalar_prefetch = 0 : i64, scratch_operands = 1 : i64, tpu.core_type = #tpu.core_type<tc>, window_params = [{pipeline_mode = #tpu.pipeline_mode<synchronous>, transform_indices = @transform_0, window_bounds = array<i64: 128, 128>}, {pipeline_mode = #tpu.pipeline_mode<synchronous>, transform_indices = @transform_1, window_bounds = array<i64: 128, 128>}, {pipeline_mode = #tpu.pipeline_mode<synchronous>, transform_indices = @transform_2, window_bounds = array<i64: 128, 128>}, {pipeline_mode = #tpu.pipeline_mode<synchronous>, transform_indices = @transform_3, window_bounds = array<i64: 8, 128>}, {transform_indices = @transform_4, window_bounds = array<i64: 1, 128, 128>}, {transform_indices = @transform_5, window_bounds = array<i64: 1, 128, 128>}, {transform_indices = @transform_6, window_bounds = array<i64: 1, 128, 128>}, {transform_indices = @transform_7, window_bounds = array<i64: 1, 8, 128>}, {pipeline_mode = #tpu.pipeline_mode<synchronous>, transform_indices = @transform_8, window_bounds = array<i64: 128, 128>}, {pipeline_mode = #tpu.pipeline_mode<synchronous>, transform_indices = @transform_9, window_bounds = array<i64: 8, 128>}]} {
    %c0_i32 = arith.constant 0 : i32
    %0 = arith.cmpi eq, %arg0, %c0_i32 : i32
    %1 = arith.extui %0 : i1 to i32
    %c0_i32_0 = arith.constant 0 : i32
    %2 = arith.cmpi ne, %1, %c0_i32_0 : i32
    scf.if %2 {
      %c0_35 = arith.constant 0 : index
      %c0_36 = arith.constant 0 : index
      %64 = vector.load %arg2[%c0_35, %c0_36] : memref<128x128xbf16, #tpu.memory_space<vmem>>, vector<128x128xbf16>
      %c0_37 = arith.constant 0 : index
      %c0_38 = arith.constant 0 : index
      %65 = vector.load %arg11[%c0_37, %c0_38] : memref<128x128xbf16, #tpu.memory_space<vmem>>, vector<128x128xbf16>
      tpu.vector_store %arg11[%c0_37, %c0_38], %64 {strides = array<i32>} : memref<128x128xbf16, #tpu.memory_space<vmem>>, vector<128x128xbf16>,
    } else {
    }
    %c0 = arith.constant 0 : index
    %c0_1 = arith.constant 0 : index
    %3 = vector.load %arg11[%c0, %c0_1] : memref<128x128xbf16, #tpu.memory_space<vmem>>, vector<128x128xbf16>
    %c0_2 = arith.constant 0 : index
    %c0_3 = arith.constant 0 : index
    %4 = vector.load %arg1[%c0_2, %c0_3] : memref<128x128xbf16, #tpu.memory_space<vmem>>, vector<128x128xbf16>
    %cst = arith.constant dense<0.000000e+00> : vector<128x128xf32>
    %5 = tpu.matmul %4, %3, %cst {dimension_numbers = #tpu.dot_dimension_numbers<[1], [0], [0], [1], [0, 0, 1, 1], [], []>} : vector<128x128xbf16>, vector<128x128xbf16>, vector<128x128xf32> -> vector<128x128xf32>
    %c0_4 = arith.constant 0 : index
    %c0_5 = arith.constant 0 : index
    %6 = vector.load %arg3[%c0_4, %c0_5] : memref<128x128xbf16, #tpu.memory_space<vmem>>, vector<128x128xbf16>
    %c0_6 = arith.constant 0 : index
    %c0_7 = arith.constant 0 : index
    %c0_8 = arith.constant 0 : index
    %7 = vector.load %arg5[%c0_6, %c0_7, %c0_8] : memref<1x128x128xbf16, #tpu.memory_space<vmem>>, vector<1x128x128xbf16>
    %8 = vector.shape_cast %7 : vector<1x128x128xbf16> to vector<128x128xbf16>
    %cst_9 = arith.constant dense<0.000000e+00> : vector<128x128xf32>
    %9 = tpu.matmul %6, %8, %cst_9 {dimension_numbers = #tpu.dot_dimension_numbers<[1], [0], [0], [1], [0, 0, 1, 1], [], []>} : vector<128x128xbf16>, vector<128x128xbf16>, vector<128x128xf32> -> vector<128x128xf32>
    %10 = arith.addf %5, %9 : vector<128x128xf32>
    %c0_10 = arith.constant 0 : index
    %c0_11 = arith.constant 0 : index
    %c0_12 = arith.constant 0 : index
    %11 = vector.load %arg8[%c0_10, %c0_11, %c0_12] : memref<1x8x128xf32, #tpu.memory_space<vmem>>, vector<1x1x128xf32>
    %12 = vector.shape_cast %11 : vector<1x1x128xf32> to vector<1x128xf32>
    %c0_13 = arith.constant 0 : index
    %c1 = arith.constant 1 : index
    %c0_14 = arith.constant 0 : index
    %13 = vector.load %arg8[%c0_13, %c1, %c0_14] : memref<1x8x128xf32, #tpu.memory_space<vmem>>, vector<1x1x128xf32>
    %14 = vector.shape_cast %13 : vector<1x1x128xf32> to vector<1x128xf32>
    %c0_15 = arith.constant 0 : index
    %c2 = arith.constant 2 : index
    %c0_16 = arith.constant 0 : index
    %15 = vector.load %arg8[%c0_15, %c2, %c0_16] : memref<1x8x128xf32, #tpu.memory_space<vmem>>, vector<1x1x128xf32>
    %16 = vector.shape_cast %15 : vector<1x1x128xf32> to vector<1x128xf32>
    %17 = arith.truncf %10 : vector<128x128xf32> to vector<128x128xbf16>
    %c0_17 = arith.constant 0 : index
    %c0_18 = arith.constant 0 : index
    %c0_19 = arith.constant 0 : index
    %18 = vector.load %arg6[%c0_17, %c0_18, %c0_19] : memref<1x128x128xbf16, #tpu.memory_space<vmem>>, vector<1x128x128xbf16>
    %19 = vector.shape_cast %18 : vector<1x128x128xbf16> to vector<128x128xbf16>
    %cst_20 = arith.constant dense<0.000000e+00> : vector<128x128xf32>
    %20 = tpu.matmul %17, %19, %cst_20 {dimension_numbers = #tpu.dot_dimension_numbers<[1], [0], [0], [1], [0, 0, 1, 1], [], []>} : vector<128x128xbf16>, vector<128x128xbf16>, vector<128x128xf32> -> vector<128x128xf32>
    %21 = vector.broadcast %12 : vector<1x128xf32> to vector<128x128xf32>
    %22 = arith.addf %20, %21 : vector<128x128xf32>
    %cst_21 = arith.constant 0.000000e+00 : f32
    %23 = vector.broadcast %cst_21 : f32 to vector<128x128xf32>
    %24 = arith.maximumf %22, %23 : vector<128x128xf32>
    %25 = arith.truncf %24 : vector<128x128xf32> to vector<128x128xbf16>
    %c0_22 = arith.constant 0 : index
    %c0_23 = arith.constant 0 : index
    %c0_24 = arith.constant 0 : index
    %26 = vector.load %arg7[%c0_22, %c0_23, %c0_24] : memref<1x128x128xbf16, #tpu.memory_space<vmem>>, vector<1x128x128xbf16>
    %27 = vector.shape_cast %26 : vector<1x128x128xbf16> to vector<128x128xbf16>
    %cst_25 = arith.constant dense<0.000000e+00> : vector<128x128xf32>
    %28 = tpu.matmul %25, %27, %cst_25 {dimension_numbers = #tpu.dot_dimension_numbers<[1], [0], [0], [1], [0, 0, 1, 1], [], []>} : vector<128x128xbf16>, vector<128x128xbf16>, vector<128x128xf32> -> vector<128x128xf32>
    %29 = tpu.iota {dimensions = array<i32: 0>} : vector<128x1xi32>
    %c8_i32 = arith.constant 8 : i32
    %30 = vector.broadcast %c8_i32 : i32 to vector<128x1xi32>
    %31 = arith.cmpi slt, %29, %30 : vector<128x1xi32>
    %32 = arith.extui %31 : vector<128x1xi1> to vector<128x1xi32>
    %33 = arith.sitofp %32 : vector<128x1xi32> to vector<128x1xf32>
    %34 = vector.broadcast %33 : vector<128x1xf32> to vector<128x128xf32>
    %35 = arith.mulf %28, %34 : vector<128x128xf32>
    %cst_26 = arith.constant dense<0.000000e+00> : vector<128xf32>
    %36 = vector.multi_reduction <add>, %35, %cst_26 [0] : vector<128x128xf32> to vector<128xf32>
    %37 = vector.shape_cast %36 : vector<128xf32> to vector<1x128xf32>
    %cst_27 = arith.constant 1.250000e-01 : f32
    %38 = vector.broadcast %cst_27 : f32 to vector<1x128xf32>
    %39 = arith.mulf %37, %38 : vector<1x128xf32>
    %40 = vector.broadcast %39 : vector<1x128xf32> to vector<128x128xf32>
    %41 = arith.subf %28, %40 : vector<128x128xf32>
    %42 = vector.broadcast %33 : vector<128x1xf32> to vector<128x128xf32>
    %43 = arith.mulf %41, %42 : vector<128x128xf32>
    %44 = arith.mulf %43, %43 : vector<128x128xf32>
    %cst_28 = arith.constant dense<0.000000e+00> : vector<128xf32>
    %45 = vector.multi_reduction <add>, %44, %cst_28 [0] : vector<128x128xf32> to vector<128xf32>
    %46 = vector.shape_cast %45 : vector<128xf32> to vector<1x128xf32>
    %cst_29 = arith.constant 1.250000e-01 : f32
    %47 = vector.broadcast %cst_29 : f32 to vector<1x128xf32>
    %48 = arith.mulf %46, %47 : vector<1x128xf32>
    %cst_30 = arith.constant 9.99999974E-6 : f32
    %49 = vector.broadcast %cst_30 : f32 to vector<1x128xf32>
    %50 = arith.addf %48, %49 : vector<1x128xf32>
    %51 = math.rsqrt %50 : vector<1x128xf32>
    %52 = arith.mulf %51, %14 : vector<1x128xf32>
    %53 = vector.broadcast %52 : vector<1x128xf32> to vector<128x128xf32>
    %54 = arith.mulf %41, %53 : vector<128x128xf32>
    %55 = vector.broadcast %16 : vector<1x128xf32> to vector<128x128xf32>
    %56 = arith.addf %54, %55 : vector<128x128xf32>
    %cst_31 = arith.constant 0.000000e+00 : f32
    %57 = vector.broadcast %cst_31 : f32 to vector<128x128xf32>
    %58 = arith.maximumf %56, %57 : vector<128x128xf32>
    %59 = arith.truncf %58 : vector<128x128xf32> to vector<128x128xbf16>
    %c0_32 = arith.constant 0 : index
    %c0_33 = arith.constant 0 : index
    %60 = vector.load %arg11[%c0_32, %c0_33] : memref<128x128xbf16, #tpu.memory_space<vmem>>, vector<128x128xbf16>
    tpu.vector_store %arg11[%c0_32, %c0_33], %59 {strides = array<i32>} : memref<128x128xbf16, #tpu.memory_space<vmem>>, vector<128x128xbf16>,
    %c2_i32 = arith.constant 2 : i32
    %61 = arith.cmpi eq, %arg0, %c2_i32 : i32
    %62 = arith.extui %61 : i1 to i32
    %c0_i32_34 = arith.constant 0 : i32
    %63 = arith.cmpi ne, %62, %c0_i32_34 : i32
    scf.if %63 {
      %c0_35 = arith.constant 0 : index
      %c0_36 = arith.constant 0 : index
      %64 = vector.load %arg9[%c0_35, %c0_36] : memref<128x128xf32, #tpu.memory_space<vmem>>, vector<128x128xf32>
      tpu.vector_store %arg9[%c0_35, %c0_36], %56 {strides = array<i32>} : memref<128x128xf32, #tpu.memory_space<vmem>>, vector<128x128xf32>,
      %c0_37 = arith.constant 0 : index
      %c0_38 = arith.constant 0 : index
      %65 = vector.load %arg4[%c0_37, %c0_38] : memref<8x128xbf16, #tpu.memory_space<vmem>>, vector<8x128xbf16>
      %66 = arith.truncf %56 : vector<128x128xf32> to vector<128x128xbf16>
      %cst_39 = arith.constant dense<0.000000e+00> : vector<8x128xf32>
      %67 = tpu.matmul %65, %66, %cst_39 {dimension_numbers = #tpu.dot_dimension_numbers<[1], [0], [0], [1], [0, 0, 1, 1], [], []>} : vector<8x128xbf16>, vector<128x128xbf16>, vector<8x128xf32> -> vector<8x128xf32>
      %c0_40 = arith.constant 0 : index
      %c0_41 = arith.constant 0 : index
      %68 = vector.load %arg10[%c0_40, %c0_41] : memref<8x128xf32, #tpu.memory_space<vmem>>, vector<8x128xf32>
      tpu.vector_store %arg10[%c0_40, %c0_41], %67 {strides = array<i32>} : memref<8x128xf32, #tpu.memory_space<vmem>>, vector<8x128xf32>,
    } else {
    }
    return
  }
  func.func @transform_0(%arg0: i32) -> (i32, i32) {
    %c0_i32 = arith.constant 0 : i32
    %c0_i32_0 = arith.constant 0 : i32
    %c0_i32_1 = arith.constant 0 : i32
    return %c0_i32, %c0_i32_0 : i32, i32
  }
  func.func @transform_1(%arg0: i32) -> (i32, i32) {
    %c0_i32 = arith.constant 0 : i32
    %c0_i32_0 = arith.constant 0 : i32
    %c0_i32_1 = arith.constant 0 : i32
    return %c0_i32, %c0_i32_0 : i32, i32
  }
  func.func @transform_2(%arg0: i32) -> (i32, i32) {
    %c0_i32 = arith.constant 0 : i32
    %c0_i32_0 = arith.constant 0 : i32
    %c0_i32_1 = arith.constant 0 : i32
    return %c0_i32, %c0_i32_0 : i32, i32
  }
  func.func @transform_3(%arg0: i32) -> (i32, i32) {
    %c0_i32 = arith.constant 0 : i32
    %c0_i32_0 = arith.constant 0 : i32
    %c0_i32_1 = arith.constant 0 : i32
    return %c0_i32, %c0_i32_0 : i32, i32
  }
  func.func @transform_4(%arg0: i32) -> (i32, i32, i32) {
    %c0_i32 = arith.constant 0 : i32
    %c0_i32_0 = arith.constant 0 : i32
    %c0_i32_1 = arith.constant 0 : i32
    return %arg0, %c0_i32, %c0_i32_0 : i32, i32, i32
  }
  func.func @transform_5(%arg0: i32) -> (i32, i32, i32) {
    %c0_i32 = arith.constant 0 : i32
    %c0_i32_0 = arith.constant 0 : i32
    %c0_i32_1 = arith.constant 0 : i32
    return %arg0, %c0_i32, %c0_i32_0 : i32, i32, i32
  }
  func.func @transform_6(%arg0: i32) -> (i32, i32, i32) {
    %c0_i32 = arith.constant 0 : i32
    %c0_i32_0 = arith.constant 0 : i32
    %c0_i32_1 = arith.constant 0 : i32
    return %arg0, %c0_i32, %c0_i32_0 : i32, i32, i32
  }
  func.func @transform_7(%arg0: i32) -> (i32, i32, i32) {
    %c0_i32 = arith.constant 0 : i32
    %c0_i32_0 = arith.constant 0 : i32
    %c0_i32_1 = arith.constant 0 : i32
    return %arg0, %c0_i32, %c0_i32_0 : i32, i32, i32
  }
  func.func @transform_8(%arg0: i32) -> (i32, i32) {
    %c0_i32 = arith.constant 0 : i32
    %c0_i32_0 = arith.constant 0 : i32
    %c0_i32_1 = arith.constant 0 : i32
    return %c0_i32, %c0_i32_0 : i32, i32
  }
  func.func @transform_9(%arg0: i32) -> (i32, i32) {
    %c0_i32 = arith.constant 0 : i32
    %c0_i32_0 = arith.constant 0 : i32
    %c0_i32_1 = arith.constant 0 : i32
    return %c0_i32, %c0_i32_0 : i32, i32
  }
}

module attributes {stable_mosaic.version = 11 : i64} {
  func.func @_gnn_fused_kernel(%arg0: i32, %arg1: memref<128x128xbf16, #tpu.memory_space<vmem>>, %arg2: memref<128x128xbf16, #tpu.memory_space<vmem>>, %arg3: memref<128x128xbf16, #tpu.memory_space<vmem>>, %arg4: memref<8x128xbf16, #tpu.memory_space<vmem>>, %arg5: memref<1x128x128xbf16, #tpu.memory_space<vmem>>, %arg6: memref<1x128x128xbf16, #tpu.memory_space<vmem>>, %arg7: memref<1x128x128xbf16, #tpu.memory_space<vmem>>, %arg8: memref<1x8x128xf32, #tpu.memory_space<vmem>>, %arg9: memref<128x128xf32, #tpu.memory_space<vmem>>, %arg10: memref<8x128xf32, #tpu.memory_space<vmem>>, %arg11: memref<128x128xbf16, #tpu.memory_space<vmem>>) attributes {dimension_semantics = [#tpu.dimension_semantics<arbitrary>], iteration_bounds = array<i64: 3>, scalar_prefetch = 0 : i64, scratch_operands = 1 : i64, tpu.core_type = #tpu.core_type<tc>, window_params = [{pipeline_mode = #tpu.pipeline_mode<synchronous>, transform_indices = @transform_0, window_bounds = array<i64: 128, 128>}, {pipeline_mode = #tpu.pipeline_mode<synchronous>, transform_indices = @transform_1, window_bounds = array<i64: 128, 128>}, {pipeline_mode = #tpu.pipeline_mode<synchronous>, transform_indices = @transform_2, window_bounds = array<i64: 128, 128>}, {pipeline_mode = #tpu.pipeline_mode<synchronous>, transform_indices = @transform_3, window_bounds = array<i64: 8, 128>}, {transform_indices = @transform_4, window_bounds = array<i64: 1, 128, 128>}, {transform_indices = @transform_5, window_bounds = array<i64: 1, 128, 128>}, {transform_indices = @transform_6, window_bounds = array<i64: 1, 128, 128>}, {transform_indices = @transform_7, window_bounds = array<i64: 1, 8, 128>}, {pipeline_mode = #tpu.pipeline_mode<synchronous>, transform_indices = @transform_8, window_bounds = array<i64: 128, 128>}, {pipeline_mode = #tpu.pipeline_mode<synchronous>, transform_indices = @transform_9, window_bounds = array<i64: 8, 128>}]} {
    %c0_i32 = arith.constant 0 : i32
    %0 = arith.cmpi eq, %arg0, %c0_i32 : i32
    %1 = arith.extui %0 : i1 to i32
    %c0_i32_0 = arith.constant 0 : i32
    %2 = arith.cmpi ne, %1, %c0_i32_0 : i32
    scf.if %2 {
      %c0_35 = arith.constant 0 : index
      %c0_36 = arith.constant 0 : index
      %64 = vector.load %arg2[%c0_35, %c0_36] : memref<128x128xbf16, #tpu.memory_space<vmem>>, vector<128x128xbf16>
      %c0_37 = arith.constant 0 : index
      %c0_38 = arith.constant 0 : index
      %65 = vector.load %arg11[%c0_37, %c0_38] : memref<128x128xbf16, #tpu.memory_space<vmem>>, vector<128x128xbf16>
      tpu.vector_store %arg11[%c0_37, %c0_38], %64 {strides = array<i32>} : memref<128x128xbf16, #tpu.memory_space<vmem>>, vector<128x128xbf16>,
    } else {
    }
    %c0 = arith.constant 0 : index
    %c0_1 = arith.constant 0 : index
    %3 = vector.load %arg11[%c0, %c0_1] : memref<128x128xbf16, #tpu.memory_space<vmem>>, vector<128x128xbf16>
    %c0_2 = arith.constant 0 : index
    %c0_3 = arith.constant 0 : index
    %4 = vector.load %arg1[%c0_2, %c0_3] : memref<128x128xbf16, #tpu.memory_space<vmem>>, vector<128x128xbf16>
    %cst = arith.constant dense<0.000000e+00> : vector<128x128xf32>
    %5 = tpu.matmul %4, %3, %cst {dimension_numbers = #tpu.dot_dimension_numbers<[1], [0], [0], [1], [0, 0, 1, 1], [], []>} : vector<128x128xbf16>, vector<128x128xbf16>, vector<128x128xf32> -> vector<128x128xf32>
    %c0_4 = arith.constant 0 : index
    %c0_5 = arith.constant 0 : index
    %6 = vector.load %arg3[%c0_4, %c0_5] : memref<128x128xbf16, #tpu.memory_space<vmem>>, vector<128x128xbf16>
    %c0_6 = arith.constant 0 : index
    %c0_7 = arith.constant 0 : index
    %c0_8 = arith.constant 0 : index
    %7 = vector.load %arg5[%c0_6, %c0_7, %c0_8] : memref<1x128x128xbf16, #tpu.memory_space<vmem>>, vector<1x128x128xbf16>
    %8 = vector.shape_cast %7 : vector<1x128x128xbf16> to vector<128x128xbf16>
    %cst_9 = arith.constant dense<0.000000e+00> : vector<128x128xf32>
    %9 = tpu.matmul %6, %8, %cst_9 {dimension_numbers = #tpu.dot_dimension_numbers<[1], [0], [0], [1], [0, 0, 1, 1], [], []>} : vector<128x128xbf16>, vector<128x128xbf16>, vector<128x128xf32> -> vector<128x128xf32>
    %10 = arith.addf %5, %9 : vector<128x128xf32>
    %c0_10 = arith.constant 0 : index
    %c0_11 = arith.constant 0 : index
    %c0_12 = arith.constant 0 : index
    %11 = vector.load %arg8[%c0_10, %c0_11, %c0_12] : memref<1x8x128xf32, #tpu.memory_space<vmem>>, vector<1x1x128xf32>
    %12 = vector.shape_cast %11 : vector<1x1x128xf32> to vector<1x128xf32>
    %c0_13 = arith.constant 0 : index
    %c1 = arith.constant 1 : index
    %c0_14 = arith.constant 0 : index
    %13 = vector.load %arg8[%c0_13, %c1, %c0_14] : memref<1x8x128xf32, #tpu.memory_space<vmem>>, vector<1x1x128xf32>
    %14 = vector.shape_cast %13 : vector<1x1x128xf32> to vector<1x128xf32>
    %c0_15 = arith.constant 0 : index
    %c2 = arith.constant 2 : index
    %c0_16 = arith.constant 0 : index
    %15 = vector.load %arg8[%c0_15, %c2, %c0_16] : memref<1x8x128xf32, #tpu.memory_space<vmem>>, vector<1x1x128xf32>
    %16 = vector.shape_cast %15 : vector<1x1x128xf32> to vector<1x128xf32>
    %17 = arith.truncf %10 : vector<128x128xf32> to vector<128x128xbf16>
    %c0_17 = arith.constant 0 : index
    %c0_18 = arith.constant 0 : index
    %c0_19 = arith.constant 0 : index
    %18 = vector.load %arg6[%c0_17, %c0_18, %c0_19] : memref<1x128x128xbf16, #tpu.memory_space<vmem>>, vector<1x128x128xbf16>
    %19 = vector.shape_cast %18 : vector<1x128x128xbf16> to vector<128x128xbf16>
    %cst_20 = arith.constant dense<0.000000e+00> : vector<128x128xf32>
    %20 = tpu.matmul %17, %19, %cst_20 {dimension_numbers = #tpu.dot_dimension_numbers<[1], [0], [0], [1], [0, 0, 1, 1], [], []>} : vector<128x128xbf16>, vector<128x128xbf16>, vector<128x128xf32> -> vector<128x128xf32>
    %21 = vector.broadcast %12 : vector<1x128xf32> to vector<128x128xf32>
    %22 = arith.addf %20, %21 : vector<128x128xf32>
    %cst_21 = arith.constant 0.000000e+00 : f32
    %23 = vector.broadcast %cst_21 : f32 to vector<128x128xf32>
    %24 = arith.maximumf %22, %23 : vector<128x128xf32>
    %25 = arith.truncf %24 : vector<128x128xf32> to vector<128x128xbf16>
    %c0_22 = arith.constant 0 : index
    %c0_23 = arith.constant 0 : index
    %c0_24 = arith.constant 0 : index
    %26 = vector.load %arg7[%c0_22, %c0_23, %c0_24] : memref<1x128x128xbf16, #tpu.memory_space<vmem>>, vector<1x128x128xbf16>
    %27 = vector.shape_cast %26 : vector<1x128x128xbf16> to vector<128x128xbf16>
    %cst_25 = arith.constant dense<0.000000e+00> : vector<128x128xf32>
    %28 = tpu.matmul %25, %27, %cst_25 {dimension_numbers = #tpu.dot_dimension_numbers<[1], [0], [0], [1], [0, 0, 1, 1], [], []>} : vector<128x128xbf16>, vector<128x128xbf16>, vector<128x128xf32> -> vector<128x128xf32>
    %29 = tpu.iota {dimensions = array<i32: 0>} : vector<128x1xi32>
    %c8_i32 = arith.constant 8 : i32
    %30 = vector.broadcast %c8_i32 : i32 to vector<128x1xi32>
    %31 = arith.cmpi slt, %29, %30 : vector<128x1xi32>
    %32 = arith.extui %31 : vector<128x1xi1> to vector<128x1xi32>
    %33 = arith.sitofp %32 : vector<128x1xi32> to vector<128x1xf32>
    %34 = vector.broadcast %33 : vector<128x1xf32> to vector<128x128xf32>
    %35 = arith.mulf %28, %34 : vector<128x128xf32>
    %cst_26 = arith.constant dense<0.000000e+00> : vector<128xf32>
    %36 = vector.multi_reduction <add>, %35, %cst_26 [0] : vector<128x128xf32> to vector<128xf32>
    %37 = vector.shape_cast %36 : vector<128xf32> to vector<1x128xf32>
    %cst_27 = arith.constant 1.250000e-01 : f32
    %38 = vector.broadcast %cst_27 : f32 to vector<1x128xf32>
    %39 = arith.mulf %37, %38 : vector<1x128xf32>
    %40 = vector.broadcast %39 : vector<1x128xf32> to vector<128x128xf32>
    %41 = arith.subf %28, %40 : vector<128x128xf32>
    %42 = vector.broadcast %33 : vector<128x1xf32> to vector<128x128xf32>
    %43 = arith.mulf %41, %42 : vector<128x128xf32>
    %44 = arith.mulf %43, %43 : vector<128x128xf32>
    %cst_28 = arith.constant dense<0.000000e+00> : vector<128xf32>
    %45 = vector.multi_reduction <add>, %44, %cst_28 [0] : vector<128x128xf32> to vector<128xf32>
    %46 = vector.shape_cast %45 : vector<128xf32> to vector<1x128xf32>
    %cst_29 = arith.constant 1.250000e-01 : f32
    %47 = vector.broadcast %cst_29 : f32 to vector<1x128xf32>
    %48 = arith.mulf %46, %47 : vector<1x128xf32>
    %cst_30 = arith.constant 9.99999974E-6 : f32
    %49 = vector.broadcast %cst_30 : f32 to vector<1x128xf32>
    %50 = arith.addf %48, %49 : vector<1x128xf32>
    %51 = math.rsqrt %50 : vector<1x128xf32>
    %52 = arith.mulf %51, %14 : vector<1x128xf32>
    %53 = vector.broadcast %52 : vector<1x128xf32> to vector<128x128xf32>
    %54 = arith.mulf %41, %53 : vector<128x128xf32>
    %55 = vector.broadcast %16 : vector<1x128xf32> to vector<128x128xf32>
    %56 = arith.addf %54, %55 : vector<128x128xf32>
    %cst_31 = arith.constant 0.000000e+00 : f32
    %57 = vector.broadcast %cst_31 : f32 to vector<128x128xf32>
    %58 = arith.maximumf %56, %57 : vector<128x128xf32>
    %59 = arith.truncf %58 : vector<128x128xf32> to vector<128x128xbf16>
    %c0_32 = arith.constant 0 : index
    %c0_33 = arith.constant 0 : index
    %60 = vector.load %arg11[%c0_32, %c0_33] : memref<128x128xbf16, #tpu.memory_space<vmem>>, vector<128x128xbf16>
    tpu.vector_store %arg11[%c0_32, %c0_33], %59 {strides = array<i32>} : memref<128x128xbf16, #tpu.memory_space<vmem>>, vector<128x128xbf16>,
    %c2_i32 = arith.constant 2 : i32
    %61 = arith.cmpi eq, %arg0, %c2_i32 : i32
    %62 = arith.extui %61 : i1 to i32
    %c0_i32_34 = arith.constant 0 : i32
    %63 = arith.cmpi ne, %62, %c0_i32_34 : i32
    scf.if %63 {
      %c0_35 = arith.constant 0 : index
      %c0_36 = arith.constant 0 : index
      %64 = vector.load %arg9[%c0_35, %c0_36] : memref<128x128xf32, #tpu.memory_space<vmem>>, vector<128x128xf32>
      tpu.vector_store %arg9[%c0_35, %c0_36], %56 {strides = array<i32>} : memref<128x128xf32, #tpu.memory_space<vmem>>, vector<128x128xf32>,
      %c0_37 = arith.constant 0 : index
      %c0_38 = arith.constant 0 : index
      %65 = vector.load %arg4[%c0_37, %c0_38] : memref<8x128xbf16, #tpu.memory_space<vmem>>, vector<8x128xbf16>
      %66 = arith.truncf %56 : vector<128x128xf32> to vector<128x128xbf16>
      %cst_39 = arith.constant dense<0.000000e+00> : vector<8x128xf32>
      %67 = tpu.matmul %65, %66, %cst_39 {dimension_numbers = #tpu.dot_dimension_numbers<[1], [0], [0], [1], [0, 0, 1, 1], [], []>} : vector<8x128xbf16>, vector<128x128xbf16>, vector<8x128xf32> -> vector<8x128xf32>
      %c0_40 = arith.constant 0 : index
      %c0_41 = arith.constant 0 : index
      %68 = vector.load %arg10[%c0_40, %c0_41] : memref<8x128xf32, #tpu.memory_space<vmem>>, vector<8x128xf32>
      tpu.vector_store %arg10[%c0_40, %c0_41], %67 {strides = array<i32>} : memref<8x128xf32, #tpu.memory_space<vmem>>, vector<8x128xf32>,
    } else {
    }
    return
  }
  func.func @transform_0(%arg0: i32) -> (i32, i32) {
    %c0_i32 = arith.constant 0 : i32
    %c0_i32_0 = arith.constant 0 : i32
    %c0_i32_1 = arith.constant 0 : i32
    return %c0_i32, %c0_i32_0 : i32, i32
  }
  func.func @transform_1(%arg0: i32) -> (i32, i32) {
    %c0_i32 = arith.constant 0 : i32
    %c0_i32_0 = arith.constant 0 : i32
    %c0_i32_1 = arith.constant 0 : i32
    return %c0_i32, %c0_i32_0 : i32, i32
  }
  func.func @transform_2(%arg0: i32) -> (i32, i32) {
    %c0_i32 = arith.constant 0 : i32
    %c0_i32_0 = arith.constant 0 : i32
    %c0_i32_1 = arith.constant 0 : i32
    return %c0_i32, %c0_i32_0 : i32, i32
  }
  func.func @transform_3(%arg0: i32) -> (i32, i32) {
    %c0_i32 = arith.constant 0 : i32
    %c0_i32_0 = arith.constant 0 : i32
    %c0_i32_1 = arith.constant 0 : i32
    return %c0_i32, %c0_i32_0 : i32, i32
  }
  func.func @transform_4(%arg0: i32) -> (i32, i32, i32) {
    %c0_i32 = arith.constant 0 : i32
    %c0_i32_0 = arith.constant 0 : i32
    %c0_i32_1 = arith.constant 0 : i32
    return %arg0, %c0_i32, %c0_i32_0 : i32, i32, i32
  }
  func.func @transform_5(%arg0: i32) -> (i32, i32, i32) {
    %c0_i32 = arith.constant 0 : i32
    %c0_i32_0 = arith.constant 0 : i32
    %c0_i32_1 = arith.constant 0 : i32
    return %arg0, %c0_i32, %c0_i32_0 : i32, i32, i32
  }
  func.func @transform_6(%arg0: i32) -> (i32, i32, i32) {
    %c0_i32 = arith.constant 0 : i32
    %c0_i32_0 = arith.constant 0 : i32
    %c0_i32_1 = arith.constant 0 : i32
    return %arg0, %c0_i32, %c0_i32_0 : i32, i32, i32
  }
  func.func @transform_7(%arg0: i32) -> (i32, i32, i32) {
    %c0_i32 = arith.constant 0 : i32
    %c0_i32_0 = arith.constant 0 : i32
    %c0_i32_1 = arith.constant 0 : i32
    return %arg0, %c0_i32, %c0_i32_0 : i32, i32, i32
  }
  func.func @transform_8(%arg0: i32) -> (i32, i32) {
    %c0_i32 = arith.constant 0 : i32
    %c0_i32_0 = arith.constant 0 : i32
    %c0_i32_1 = arith.constant 0 : i32
    return %c0_i32, %c0_i32_0 : i32, i32
  }
  func.func @transform_9(%arg0: i32) -> (i32, i32) {
    %c0_i32 = arith.constant 0 : i32
    %c0_i32_0 = arith.constant 0 : i32
    %c0_i32_1 = arith.constant 0 : i32
    return %c0_i32, %c0_i32_0 : i32, i32
  }
}

</mosaic_0001>

<bundles_post_ra>
// kernel: tpu_custom_call.1
= control target key start
LH: loop header
LB: loop body
LE: loop exit
PB: predicated region body
PF: predicated region fallthrough
CT: control target
= control target key end

     0   :  { %s3196_s0 = inlined_call_operand.hbm [shape: bf16[128,128], index: 0, kind: input, shape index: {}]   ;;  %s3197_s1 = inlined_call_operand.hbm [shape: bf16[128,128], index: 1, kind: input, shape index: {}]   ;;  %s3198_s2 = inlined_call_operand.hbm [shape: bf16[128,128], index: 2, kind: input, shape index: {}]   ;;  %s3199_s3 = inlined_call_operand.hbm [shape: bf16[8,128], index: 3, kind: input, shape index: {}]   ;;  %s3200_s4 = inlined_call_operand.hbm [shape: bf16[3,128,128], index: 4, kind: input, shape index: {}]   ;;  %s3201_s5 = inlined_call_operand.hbm [shape: bf16[3,128,128], index: 5, kind: input, shape index: {}]   ;;  %s3202_s6 = inlined_call_operand.hbm [shape: bf16[3,128,128], index: 6, kind: input, shape index: {}]   ;;  %s3203_s7 = inlined_call_operand.vmem [shape: f32[3,8,128], index: 7, kind: input, shape index: {}]   ;;  %s3204_s8 = inlined_call_operand.hbm [shape: f32[128,128], index: 8, kind: output, shape index: {0}]   ;;  %s3205_s9 = inlined_call_operand.hbm [shape: f32[8,128], index: 9, kind: output, shape index: {1}]  }
   0x1   :  { %3225 = sst [smem:[#allocation26_spill]] %s3196_s0 }
   0x2   :  { %3226 = sst [smem:[#allocation27_spill]] %s3197_s1 }
   0x3   :  { %3227 = sst [smem:[#allocation28_spill]] %s3200_s4 }
   0x4   :  { %3228 = sst [smem:[#allocation29_spill]] %s3201_s5 }
   0x5   :  { %3229 = sst [smem:[#allocation30_spill]] %s3205_s9 }
   0x6   :  { %15 = vsyncpa [#allocation4], 0 }
   0x7   :  { %16 = vsyncpa [#allocation7], 0 }
   0x8   :  { %17 = vsyncpa [#allocation10], 0 }
   0x9   :  { %18 = vsyncpa [#allocation5], 0 }
   0xa   :  { %19 = vsyncpa [#allocation16], 0  ;;  %s2662_s30 = smov 0   ;;  %s2664_s10 = smov 0  }
   0xb   :  { %s2666_s11 = smov 0   ;;  %s2668_s12 = smov 0  }
   0xc LB: > { %3230 = sst [smem:[#allocation23_spill]] %s2591_s11  ;;  %s2681_s13 = sadd.s32 4294967295, %s2595_s12   ;;  %s2595_s12 = sphi %s2668_s12, %s3262_s12   ;;  %s2591_s11 = sphi %s2666_s11, %s3264_s11   ;;  %s2587_s10 = sphi %s2664_s10, %s3266_s10   ;;  %s2583_s30 = sphi %s2662_s30, %s3265_s30  }
   0xd   : > { %p129_p0 = scmp.ne.s32.totalorder %s2587_s10, %s2583_s30  ;;  %p3206_p1 = scmp.eq.s32.totalorder %s2681_s13, 0 }
   0xe   : > { %p1805_p2 = scmp.ge.s32.totalorder %s2595_s12, 1  ;;  %p260_p3 = scmp.lt.s32.totalorder %s2595_s12, 4 }
   0xf   : > { %p2690_p5 = por %p3206_p1, %p129_p0  ;;  %s2597_s16 = smov [#allocation3]  }
  0x10   : > { %p2694_p6 = pnand %p1805_p2, %p260_p3  ;;  %s272_s17 = sshll.u32 %s2597_s16, 4  ;;  %s273_s17 = int_to_ptr.vmem [resolvable:$true] %s272_s17 }
  0x11   : > { %s3231_s14 = scalar_select %p2690_p5, 1, 0 }
  0x12   : > { %s3232_s15 = scalar_select %p2694_p6, 1, 0 }
  0x13   : > { %p2157_p7 = pneg %p2694_p6  ;;  %s2707_s19 = sadd.s32 1, %s2595_s12  }
  0x14   : > { %3234 = sst [smem:[#allocation24_spill]] %s2707_s19  ;;  %s116_s20 = sadd.s32 1, %s2591_s11 }
  0x15   : > { %p2702_p8 = pnand %p2157_p7, %p3206_p1  ;;  %s113_s21 = ssub.s32 %s2595_s12, %s2707_s19 }
  0x16   : > { %s3235_s0 = sld [smem:[#allocation26_spill]] }
  0x17   : > { %s3233_s18 = scalar_select %p2702_p8, 1, 0 }
  0x18   : > { %p2720_p10 = pneg %p2702_p8 }
  0x1a   : > { %s3236_s27 = scalar_select %p2720_p10, 1, 0 }
  0x1c   : > { %s2287_s24 = scalar_lea.hbm %s3235_s0, 1024 }
  0x1d   : > { %p2288_p9 = scmp.ne.s32.totalorder %s3235_s0, %s2287_s24  ;;  %p2294_p13 = scmp.lt.u32.totalorder %s2287_s24, %s3235_s0 }
  0x1f   : > { %p2290_p11 = pnand %p2720_p10, %p2288_p9 }
  0x21   : > { %p2291_p12 = pneg %p2290_p11 }
  0x23   : > { %p2296_p0 = pnand %p2294_p13, %p2291_p12 }
  0x25   : > { %2299 = shalt.err (!%p2296_p0)
}
  0x26   : > { %s2300_s30 = scalar_lea.vmem %s273_s17, 1024  ;;  %p2308_p4 = scmp.lt.s32.totalorder %s273_s17, %s273_s17 }
  0x27   : > { %p2301_p2 = scmp.ne.s32.totalorder %s273_s17, %s2300_s30  ;;  %p2309_p1 = scmp.lt.s32.totalorder %s2300_s30, %s2300_s30 }
  0x29   : > { %p2303_p3 = pnand %p2301_p2, %p2720_p10  ;;  %p2310_p5 = por %p2309_p1, %p2308_p4 }
  0x2b   : > { %p2304_p7 = pneg %p2303_p3 }
  0x2d   : > { %p2311_p6 = pnand %p2310_p5, %p2304_p7 }
  0x2f   : > { %2314 = shalt.err (!%p2311_p6)
}
  0x30   : > { %s3212_s16 = smov 64   ;;  %s3214_s22 = smov 4  }
  0x31   : > { %2160 = dma.hbm_to_vmem [thread:$0]  (!%p2702_p8), %s3235_s0, 1024, %s273_s17, [#allocation4], %s3212_s16, %s3212_s16, %s3214_s22  }
  0x32   : > { %p114_p1 = scmp.eq.s32.totalorder %s113_s21, 0  ;;  %p123_p4 = scmp.ne.s32.totalorder %s2591_s11, %s2587_s10 }
  0x33   : > { %p124_p5 = scmp.eq.s32.totalorder %s2595_s12, 0  ;;  %p2184_p6 = scmp.lt.s32.totalorder %s2595_s12, 3 }
  0x34   : > { %s2744_s25 = scalar_select %p114_p1, %s2591_s11, %s116_s20  }
  0x35   : > { %p125_p9 = por %p124_p5, %p123_p4  ;;  %s323_s26 = sand.u32 1, %s2595_s12  }
  0x36   : > { %3237 = sst [smem:[#allocation25_spill]] %s2744_s25  ;;  %s325_s28 = sand.u32 1, %s2591_s11  }
  0x37   : > { %s2748_s29 = sshll.u32 %s325_s28, 6  ;;  %s2751_s30 = sshll.u32 %s2595_s12, 10 }
  0x38   : > { %s3238_s4 = sld [smem:[#allocation28_spill]]  ;;  %s327_s17 = scalar_lea.vmem [#allocation11], %s2748_s29 }
  0x39   : > { %s334_s20 = sshll.u32 %s327_s17, 4  ;;  %p2760_p11 = pnand %p2184_p6, %p125_p9  ;;  %s2764_s20 = int_to_ptr.vmem [resolvable:$true] %s334_s20 }
  0x3a   : > { %s2600_s12 = smov [#allocation6]   ;;  %s2768_s28 = scalar_lea.sflag [#allocation4], %s323_s26 }
  0x3b   : > { %s3239_s21 = scalar_select %p2760_p11, 1, 0 }
  0x3c   : > { %s2766_s24 = sshll.u32 %s2600_s12, 4  ;;  %p2774_p13 = pneg %p2760_p11  ;;  %s286_s24 = int_to_ptr.vmem [resolvable:$true] %s2766_s24 }
  0x3e   : > { %s2757_s23 = scalar_lea.hbm %s3238_s4, %s2751_s30  ;;  %s2320_s22 = scalar_lea.hbm %s3238_s4, 3072 }
  0x3f   : > { %s2315_s9 = scalar_lea.hbm %s2757_s23, 1024  ;;  %p2321_p3 = scmp.lt.u32.totalorder %s2757_s23, %s3238_s4 }
  0x40   : > { %p2316_p12 = scmp.ne.s32.totalorder %s2757_s23, %s2315_s9  ;;  %p2322_p7 = scmp.lt.u32.totalorder %s2320_s22, %s2315_s9 }
  0x41   : > { %s3240_s19 = scalar_select %p2774_p13, 1, 0 }
  0x42   : > { %p2318_p0 = pnand %p2774_p13, %p2316_p12  ;;  %p2323_p1 = por %p2322_p7, %p2321_p3 }
  0x43   : > { %p2324_p4 = scmp.lt.u32.totalorder %s2315_s9, %s2757_s23 }
  0x44   : > { %p2319_p2 = pneg %p2318_p0 }
  0x45   : > { %p2325_p5 = por %p2324_p4, %p2323_p1 }
  0x47   : > { %p2326_p6 = pnand %p2325_p5, %p2319_p2 }
  0x49   : > { %2329 = shalt.err (!%p2326_p6)
}
  0x4a   : > { %s2330_s26 = scalar_lea.vmem %s2764_s20, 1024  ;;  %s2601_s16 = smov [#allocation11]  }
  0x4b   : > { %p2331_p9 = scmp.ne.s32.totalorder %s2764_s20, %s2330_s26  ;;  %s2335_s17 = sshll.u32 %s2601_s16, 4  ;;  %s2336_s17 = int_to_ptr.vmem [resolvable:$false] %s2335_s17 }
  0x4c   : > { %s2337_s0 = scalar_lea.vmem %s2336_s17, 2048  ;;  %p2338_p8 = scmp.lt.s32.totalorder %s2764_s20, %s2336_s17 }
  0x4d   : > { %p2333_p12 = pnand %p2331_p9, %p2774_p13  ;;  %p2339_p10 = scmp.lt.s32.totalorder %s2337_s0, %s2330_s26 }
  0x4f   : > { %p2334_p0 = pneg %p2333_p12  ;;  %p2340_p3 = por %p2339_p10, %p2338_p8 }
  0x51   : > { %p2341_p7 = pnand %p2340_p3, %p2334_p0 }
  0x53   : > { %2344 = shalt.err (!%p2341_p7)
}
  0x54   : > { %s3241_s22 = smov 4   ;;  %s3242_s9 = smov 64  }
  0x55   : > { %2173 = dma.hbm_to_vmem [thread:$0]  (!%p2760_p11), %s2757_s23, 1024, %s2764_s20, %s2768_s28, %s3242_s9, %s3242_s9, %s3241_s22  }
  0x56   : > { %s3243_s1 = sld [smem:[#allocation27_spill]]  ;;  %p3244_p10 = scmp.ne.s32.totalorder %s3236_s27, 0 }
  0x5c   : > { %s2345_s17 = scalar_lea.hbm %s3243_s1, 1024 }
  0x5d   : > { %p2346_p8 = scmp.ne.s32.totalorder %s3243_s1, %s2345_s17  ;;  %p2352_p4 = scmp.lt.u32.totalorder %s2345_s17, %s3243_s1 }
  0x5f   : > { %p2348_p2 = pnand %p2346_p8, %p3244_p10 }
  0x61   : > { %p2349_p1 = pneg %p2348_p2 }
  0x63   : > { %p2354_p5 = pnand %p2352_p4, %p2349_p1 }
  0x65   : > { %2357 = shalt.err (!%p2354_p5)
}
  0x66   : > { %s2358_s11 = scalar_lea.vmem %s286_s24, 1024  ;;  %p2366_p0 = scmp.lt.s32.totalorder %s286_s24, %s286_s24 }
  0x67   : > { %p2359_p6 = scmp.ne.s32.totalorder %s286_s24, %s2358_s11  ;;  %p2367_p3 = scmp.lt.s32.totalorder %s2358_s11, %s2358_s11 }
  0x69   : > { %p2361_p9 = pnand %p2359_p6, %p3244_p10  ;;  %p2368_p7 = por %p2367_p3, %p2366_p0 }
  0x6b   : > { %p2362_p12 = pneg %p2361_p9 }
  0x6d   : > { %p2369_p11 = pnand %p2368_p7, %p2362_p12 }
  0x6f   : > { %2372 = shalt.err (!%p2369_p11)
}
  0x70   : > { %p3245_p8 = scmp.ne.s32.totalorder %s3233_s18, 0  ;;  %s3246_s5 = sld [smem:[#allocation29_spill]] }
  0x71   : > { %s348_s11 = scalar_lea.vmem [#allocation12], %s2748_s29 }
  0x72   : > { %2163 = dma.hbm_to_vmem [thread:$0]  (!%p3245_p8), %s3243_s1, 1024, %s286_s24, [#allocation7], %s3242_s9, %s3242_s9, %s3241_s22  }
  0x73   : > { %s355_s16 = sshll.u32 %s348_s11, 4  ;;  %s2830_s16 = int_to_ptr.vmem [resolvable:$true] %s355_s16 }
  0x76   : > { %s2827_s12 = scalar_lea.hbm %s3246_s5, %s2751_s30  ;;  %s2378_s0 = scalar_lea.hbm %s3246_s5, 3072 }
  0x77   : > { %s2373_s17 = scalar_lea.hbm %s2827_s12, 1024  ;;  %p2379_p4 = scmp.lt.u32.totalorder %s2827_s12, %s3246_s5 }
  0x78   : > { %p2374_p11 = scmp.ne.s32.totalorder %s2827_s12, %s2373_s17  ;;  %p2380_p5 = scmp.lt.u32.totalorder %s2378_s0, %s2373_s17 }
  0x79   : > { %p2382_p9 = scmp.lt.u32.totalorder %s2373_s17, %s2827_s12 }
  0x7a   : > { %p2376_p2 = pnand %p2374_p11, %p2774_p13  ;;  %p2381_p6 = por %p2380_p5, %p2379_p4 }
  0x7c   : > { %p2377_p1 = pneg %p2376_p2  ;;  %p2383_p12 = por %p2382_p9, %p2381_p6 }
  0x7e   : > { %p2384_p0 = pnand %p2383_p12, %p2377_p1 }
  0x80   : > { %2387 = shalt.err (!%p2384_p0)
}
  0x81   : > { %s2388_s23 = scalar_lea.vmem %s2830_s16, 1024  ;;  %s2602_s20 = smov [#allocation12]  }
  0x82   : > { %p2389_p3 = scmp.ne.s32.totalorder %s2830_s16, %s2388_s23  ;;  %s2393_s11 = sshll.u32 %s2602_s20, 4  ;;  %s2394_s11 = int_to_ptr.vmem [resolvable:$false] %s2393_s11 }
  0x83   : > { %s2395_s26 = scalar_lea.vmem %s2394_s11, 2048  ;;  %p2396_p2 = scmp.lt.s32.totalorder %s2830_s16, %s2394_s11 }
  0x84   : > { %p2391_p7 = pnand %p2389_p3, %p2774_p13  ;;  %p2397_p8 = scmp.lt.s32.totalorder %s2395_s26, %s2388_s23 }
  0x86   : > { %p2392_p11 = pneg %p2391_p7  ;;  %p2398_p4 = por %p2397_p8, %p2396_p2 }
  0x88   : > { %p2399_p5 = pnand %p2398_p4, %p2392_p11 }
  0x8a   : > { %2402 = shalt.err (!%p2399_p5)
}
  0x8b   : > { %p3247_p1 = scmp.ne.s32.totalorder %s3239_s21, 0  ;;  %s2603_s17 = smov [#allocation8]  }
  0x8c   : > { %s298_s24 = sshll.u32 %s2603_s17, 4  ;;  %s2604_s0 = smov [#allocation9]   ;;  %s299_s24 = int_to_ptr.vmem [resolvable:$true] %s298_s24 }
  0x8d   : > { %2176 = dma.hbm_to_vmem [thread:$0]  (!%p3247_p1), %s2827_s12, 1024, %s2830_s16, %s2768_s28, %s3242_s9, %s3242_s9, %s3241_s22  }
  0x8e   : > { %s312_s4 = sshll.u32 %s2604_s0, 4  ;;  %s2403_s20 = scalar_lea.hbm %s3198_s2, 1024  ;;  %s313_s4 = int_to_ptr.vmem [resolvable:$true] %s312_s4 }
  0x8f   : > { %p2404_p8 = scmp.ne.s32.totalorder %s3198_s2, %s2403_s20  ;;  %p2410_p12 = scmp.lt.u32.totalorder %s2403_s20, %s3198_s2 }
  0x91   : > { %p2406_p6 = pnand %p2404_p8, %p3244_p10 }
  0x93   : > { %p2407_p9 = pneg %p2406_p6 }
  0x95   : > { %p2412_p0 = pnand %p2410_p12, %p2407_p9 }
  0x97   : > { %2415 = shalt.err (!%p2412_p0)
}
  0x98   : > { %s2416_s12 = scalar_lea.vmem %s299_s24, 1024  ;;  %p2424_p2 = scmp.lt.s32.totalorder %s299_s24, %s299_s24 }
  0x99   : > { %p2417_p3 = scmp.ne.s32.totalorder %s299_s24, %s2416_s12  ;;  %p2425_p4 = scmp.lt.s32.totalorder %s2416_s12, %s2416_s12 }
  0x9b   : > { %p2419_p7 = pnand %p2417_p3, %p3244_p10  ;;  %p2426_p5 = por %p2425_p4, %p2424_p2 }
  0x9d   : > { %p2420_p11 = pneg %p2419_p7 }
  0x9f   : > { %p2427_p1 = pnand %p2426_p5, %p2420_p11 }
  0xa1   : > { %2430 = shalt.err (!%p2427_p1)
}
  0xa2   : > { %p3248_p8 = scmp.ne.s32.totalorder %s3233_s18, 0  ;;  %s2431_s0 = scalar_lea.hbm %s3199_s3, 64 }
  0xa3   : > { %p2432_p6 = scmp.ne.s32.totalorder %s3199_s3, %s2431_s0  ;;  %p2438_p12 = scmp.lt.u32.totalorder %s2431_s0, %s3199_s3 }
  0xa4   : > { %2166 = dma.hbm_to_vmem [thread:$0]  (!%p3248_p8), %s3198_s2, 1024, %s299_s24, [#allocation7], %s3242_s9, %s3242_s9, %s3241_s22  }
  0xa5   : > { %p2434_p1 = pnand %p2432_p6, %p3244_p10 }
  0xa7   : > { %p2435_p9 = pneg %p2434_p1 }
  0xa9   : > { %p2440_p0 = pnand %p2438_p12, %p2435_p9 }
  0xab   : > { %2443 = shalt.err (!%p2440_p0)
}
  0xac   : > { %s2444_s26 = scalar_lea.vmem %s313_s4, 64  ;;  %p2452_p2 = scmp.lt.s32.totalorder %s313_s4, %s313_s4 }
  0xad   : > { %p2445_p3 = scmp.ne.s32.totalorder %s313_s4, %s2444_s26  ;;  %p2453_p4 = scmp.lt.s32.totalorder %s2444_s26, %s2444_s26 }
  0xaf   : > { %p2447_p7 = pnand %p2445_p3, %p3244_p10  ;;  %p2454_p5 = por %p2453_p4, %p2452_p2 }
  0xb1   : > { %p2448_p11 = pneg %p2447_p7 }
  0xb3   : > { %p2455_p13 = pnand %p2454_p5, %p2448_p11 }
  0xb5   : > { %2458 = shalt.err (!%p2455_p13)
}
  0xb6   : > { %2169 = dma.hbm_to_vmem [thread:$0]  (!%p3248_p8), %s3199_s3, 64, %s313_s4, [#allocation10]  }
  0xb7   : > { %s2900_s27 = scalar_lea.hbm %s3202_s6, %s2751_s30  ;;  %s369_s16 = scalar_lea.vmem [#allocation13], %s2748_s29 }
  0xb8   : > { %s376_s17 = sshll.u32 %s369_s16, 4  ;;  %s2459_s18 = scalar_lea.hbm %s2900_s27, 1024  ;;  %s2903_s17 = int_to_ptr.vmem [resolvable:$true] %s376_s17 }
  0xb9   : > { %p2460_p13 = scmp.ne.s32.totalorder %s2900_s27, %s2459_s18  ;;  %p3249_p10 = scmp.ne.s32.totalorder %s3240_s19, 0 }
  0xba   : > { %s2464_s25 = scalar_lea.hbm %s3202_s6, 3072  ;;  %p2465_p8 = scmp.lt.u32.totalorder %s2900_s27, %s3202_s6 }
  0xbb   : > { %p2462_p6 = pnand %p2460_p13, %p3249_p10  ;;  %p2466_p9 = scmp.lt.u32.totalorder %s2464_s25, %s2459_s18 }
  0xbc   : > { %p2468_p0 = scmp.lt.u32.totalorder %s2459_s18, %s2900_s27 }
  0xbd   : > { %p2463_p1 = pneg %p2462_p6  ;;  %p2467_p12 = por %p2466_p9, %p2465_p8 }
  0xbf   : > { %p2469_p3 = por %p2468_p0, %p2467_p12 }
  0xc1   : > { %p2470_p7 = pnand %p2469_p3, %p2463_p1 }
  0xc3   : > { %2473 = shalt.err (!%p2470_p7)
}
  0xc4   : > { %s2474_s29 = scalar_lea.vmem %s2903_s17, 1024  ;;  %s2605_s20 = smov [#allocation13]  }
  0xc5   : > { %p2475_p11 = scmp.ne.s32.totalorder %s2903_s17, %s2474_s29  ;;  %s2479_s11 = sshll.u32 %s2605_s20, 4  ;;  %s2480_s11 = int_to_ptr.vmem [resolvable:$false] %s2479_s11 }
  0xc6   : > { %s2481_s26 = scalar_lea.vmem %s2480_s11, 2048  ;;  %p2482_p5 = scmp.lt.s32.totalorder %s2903_s17, %s2480_s11 }
  0xc7   : > { %p2477_p2 = pnand %p2475_p11, %p3249_p10  ;;  %p2483_p13 = scmp.lt.s32.totalorder %s2481_s26, %s2474_s29 }
  0xc9   : > { %p2478_p4 = pneg %p2477_p2  ;;  %p2484_p6 = por %p2483_p13, %p2482_p5 }
  0xcb   : > { %p2485_p8 = pnand %p2484_p6, %p2478_p4 }
  0xcd   : > { %2488 = shalt.err (!%p2485_p8)
}
  0xce   : > { %p3250_p1 = scmp.ne.s32.totalorder %s3239_s21, 0  ;;  %p3251_p10 = scmp.ne.s32.totalorder %s3232_s15, 0 }
  0xcf   : > { %p3252_p9 = scmp.eq.s32.totalorder (!%p3251_p10), %s2681_s13, 0 }
  0xd0   : > { %2179 = dma.hbm_to_vmem [thread:$0]  (!%p3250_p1), %s2900_s27, 1024, %s2903_s17, %s2768_s28, %s3242_s9, %s3242_s9, %s3241_s22  }
  0xd1   : > { %395 = sbr.rel (%p3251_p10) target bundleno = 1392 (0x570), region = 52 }
  0xd8   : > { %2558 = dma.done.wait (%p3252_p9), [#allocation4], 1024   ;;  %p3253_p12 = pmov %p3252_p9 }
  0xd9   : > { %p3254_p0 = pmov %p3252_p9 }
  0xda   : > { %2560 = vsyncadd (%p3253_p12), [#allocation4], 4294966272 }
  0xdb   : > { %2562 = dma.done.wait (%p3254_p0), [#allocation7], 2048   ;;  %p3255_p3 = pmov %p3254_p0 }
  0xdc   : > { %p3256_p7 = pmov %p3254_p0 }
  0xdd   : > { %2564 = vsyncadd (%p3255_p3), [#allocation7], 4294965248 }
  0xde   : > { %2566 = dma.done.wait (%p3256_p7), [#allocation10], 64   ;;  %p3257_p11 = pmov %p3254_p0 }
  0xdf   : > { %s413_s15 = sand.u32 1, %s2681_s13   ;;  %s415_s21 = sand.u32 1, %s2587_s10  }
  0xe0   : > { %2568 = vsyncadd (%p3257_p11), [#allocation10], 4294967232  ;;  %s1825_s28 = sshll.u32 %s415_s21, 6  ;;  %s414_s19 = scalar_lea.sflag [#allocation4], %s413_s15 }
  0xe1   : > { %s2946_s22 = scalar_lea.vmem [#allocation11], %s1825_s28  ;;  %p3258_p2 = scmp.ne.s32.totalorder %s3231_s14, 0 }
  0xe3   : > { %2570 = dma.done.wait (%p3258_p2), %s414_s19, 3072  }
  0xe4   : > { %2572 = vsyncadd (%p3258_p2), %s414_s19, 4294964224  ;;  %p479_p4 = scmp.lt.s32.totalorder %s2681_s13, 2  ;;  %s2959_s27 = scalar_lea.vmem [#allocation12], %s1825_s28 }
  0xe5   : > { %s2961_s16 = scalar_lea.vmem [#allocation13], %s1825_s28  ;;  %p3259_p5 = scmp.ne.s32.totalorder %s2681_s13, 0 }
  0xe6   : > { %s480_s9 = scalar_select %p479_p4, %s2681_s13, 2 }
  0xe7   : > { %487 = sbr.rel (%p3259_p5) target bundleno = 238 (0xee), region = 84  ;;  %v2237_v0 = vld [vmem:[#allocation6] sm:$0xff] (!%p3259_p5)   ;;  %v2238_v1 = vld [vmem:[#allocation6 + $0x8] sm:$0xff] (!%p3259_p5)   ;;  %v2239_v2 = vld [vmem:[#allocation6 + $0x10] sm:$0xff] (!%p3259_p5)  }
  0xe8   : > { %s1828_s24 = sshll.u32 %s480_s9, 3  ;;  %552 = vst [vmem:[#allocation2] sm:$0xff] (!%p3259_p5), %v2237_v0  ;;  %553 = vst [vmem:[#allocation2 + $0x8] sm:$0xff] (!%p3259_p5), %v2238_v1  ;;  %v2240_v3 = vld [vmem:[#allocation6 + $0x18] sm:$0xff] (!%p3259_p5)   ;;  %v2241_v4 = vld [vmem:[#allocation6 + $0x20] sm:$0xff] (!%p3259_p5)  }
  0xe9   : > { %s2957_s5 = scalar_lea.vmem %s3203_s7, %s1828_s24  ;;  %554 = vst [vmem:[#allocation2 + $0x10] sm:$0xff] (!%p3259_p5), %v2239_v2  ;;  %555 = vst [vmem:[#allocation2 + $0x18] sm:$0xff] (!%p3259_p5), %v2240_v3  ;;  %v2242_v5 = vld [vmem:[#allocation6 + $0x28] sm:$0xff] (!%p3259_p5)   ;;  %v2243_v6 = vld [vmem:[#allocation6 + $0x30] sm:$0xff] (!%p3259_p5)  }
  0xea   : > { %556 = vst [vmem:[#allocation2 + $0x20] sm:$0xff] (!%p3259_p5), %v2241_v4  ;;  %557 = vst [vmem:[#allocation2 + $0x28] sm:$0xff] (!%p3259_p5), %v2242_v5  ;;  %v2244_v7 = vld [vmem:[#allocation6 + $0x38] sm:$0xff] (!%p3259_p5)  }
  0xeb   : > { %558 = vst [vmem:[#allocation2 + $0x30] sm:$0xff] (!%p3259_p5), %v2243_v6  ;;  %559 = vst [vmem:[#allocation2 + $0x38] sm:$0xff] (!%p3259_p5), %v2244_v7 }
  0xee PF: > { %v2245_v8 = vld [vmem:[%s2946_s22] sm:$0xff]   ;;  %v2246_v9 = vld [vmem:[%s2946_s22 + $0x8] sm:$0xff]   ;;  %v2247_v10 = vld [vmem:[%s2946_s22 + $0x10] sm:$0xff]   ;;  %p1880_p13 = scmp.ne.s32.totalorder %s2681_s13, 2 }
  0xef   : > { %1963 = vmatprep.subr.bf16.mxu0 %v2245_v8  ;;  %v2248_v11 = vld [vmem:[%s2946_s22 + $0x18] sm:$0xff]   ;;  %v2249_v13 = vld [vmem:[%s2946_s22 + $0x20] sm:$0xff]   ;;  %v2250_v14 = vld [vmem:[%s2946_s22 + $0x28] sm:$0xff]   ;;  %vm2607_vm0 = vmmov (!%p1880_p13), 0  }
  0xf0   : > { %1964 = vmatpush3.bf16.msra.mxu0 %v2245_v8  ;;  %v2253_v12 = vld [vmem:[#allocation8] sm:$0xff]   ;;  %v2251_v15 = vld [vmem:[%s2946_s22 + $0x30] sm:$0xff]   ;;  %v2270_v18 = vld [vmem:[%s2959_s27 + $0x8] sm:$0xff]  }
  0xf1   : > { %1965 = vmatprep.subr.bf16.mxu0 %v2246_v9  ;;  %1979 = vmatprep.mubr.bf16.mxu0 %v2253_v12  ;;  %v2252_v16 = vld [vmem:[%s2946_s22 + $0x38] sm:$0xff]   ;;  %v2269_v17 = vld [vmem:[%s2959_s27] sm:$0xff]   ;;  %v2255_v22 = vld [vmem:[#allocation8 + $0x10] sm:$0xff]  }
  0xf2   : > { %v560_v19 = vld [vmem:[#allocation2] sm:$0xff]  ;;  %2027 = vmatprep.subr.bf16.mxu1 %v2269_v17  ;;  %v2254_v20 = vld [vmem:[#allocation8 + $0x8] sm:$0xff]   ;;  %v2271_v23 = vld [vmem:[%s2959_s27 + $0x10] sm:$0xff]  }
  0xf3   : > { %2028 = vmatpush3.bf16.msra.mxu1 %v2269_v17  ;;  %v561_v21 = vld [vmem:[#allocation2 + $0x8] sm:$0xff]  ;;  %v2272_v24 = vld [vmem:[%s2959_s27 + $0x18] sm:$0xff]   ;;  %v562_v25 = vld [vmem:[#allocation2 + $0x10] sm:$0xff] }
  0xf4   : > { %1966 = vmatpush3.bf16.msra.mxu0 %v2246_v9  ;;  %2029 = vmatprep.subr.bf16.mxu1 %v2270_v18  ;;  %v2256_v26 = vld [vmem:[#allocation8 + $0x18] sm:$0xff]   ;;  %v2257_v27 = vld [vmem:[#allocation8 + $0x20] sm:$0xff]   ;;  %v2274_v30 = vld [vmem:[%s2959_s27 + $0x28] sm:$0xff]  }
  0xf5   : > { %1967 = vmatprep.subr.bf16.mxu0 %v2247_v10  ;;  %v2273_v28 = vld [vmem:[%s2959_s27 + $0x20] sm:$0xff]   ;;  %v563_v29 = vld [vmem:[#allocation2 + $0x18] sm:$0xff]  ;;  %v2259_v33 = vld [vmem:[#allocation8 + $0x30] sm:$0xff]  }
  0xf6   : > { %v564_v31 = vld [vmem:[#allocation2 + $0x20] sm:$0xff]  ;;  %v2258_v32 = vld [vmem:[#allocation8 + $0x28] sm:$0xff]   ;;  %v2275_v34 = vld [vmem:[%s2959_s27 + $0x30] sm:$0xff]  }
  0xf7   : > { %2030 = vmatpush3.bf16.msra.mxu1 %v2270_v18  ;;  %v565_v35 = vld [vmem:[#allocation2 + $0x28] sm:$0xff]  ;;  %v566_v36 = vld [vmem:[#allocation2 + $0x30] sm:$0xff]  ;;  %v2260_v37 = vld [vmem:[#allocation8 + $0x38] sm:$0xff]  }
  0xf8   : > { %1968 = vmatpush3.bf16.msra.mxu0 %v2247_v10  ;;  %2031 = vmatprep.subr.bf16.mxu1 %v2271_v23  ;;  %v2261_v38 = vld [vmem:[#allocation3] sm:$0xff]   ;;  %v567_v39 = vld [vmem:[#allocation2 + $0x38] sm:$0xff]  ;;  %v2262_v40 = vld [vmem:[#allocation3 + $0x8] sm:$0xff]  }
  0xf9   : > { %1969 = vmatprep.subr.bf16.mxu0 %v2248_v11  ;;  %v2263_v41 = vld [vmem:[#allocation3 + $0x10] sm:$0xff]   ;;  %v2264_v42 = vld [vmem:[#allocation3 + $0x18] sm:$0xff]   ;;  %v2265_v43 = vld [vmem:[#allocation3 + $0x20] sm:$0xff]  }
  0xfa   : > { %v2266_v44 = vld [vmem:[#allocation3 + $0x28] sm:$0xff]   ;;  %v2267_v45 = vld [vmem:[#allocation3 + $0x30] sm:$0xff]   ;;  %v2268_v46 = vld [vmem:[#allocation3 + $0x38] sm:$0xff]  }
  0xfb   : > { %2032 = vmatpush3.bf16.msra.mxu1 %v2271_v23  ;;  %v2276_v47 = vld [vmem:[%s2959_s27 + $0x38] sm:$0xff]   ;;  %v2277_v48 = vld [vmem:[%s2961_s16] sm:$0xff]   ;;  %v2278_v55 = vld [vmem:[%s2961_s16 + $0x8] sm:$0xff]  }
  0xfc   : > { %1970 = vmatpush3.bf16.msra.mxu0 %v2248_v11  ;;  %2033 = vmatprep.subr.bf16.mxu1 %v2272_v24  ;;  %v2279_v58 = vld [vmem:[%s2961_s16 + $0x10] sm:$0xff]   ;;  %v2280_v63 = vld [vmem:[%s2961_s16 + $0x18] sm:$0xff]   ;;  %v2281_v2 = vld [vmem:[%s2961_s16 + $0x20] sm:$0xff]  }
  0xfd   : > { %1971 = vmatprep.subr.bf16.mxu0 %v2249_v13  ;;  %v2282_v7 = vld [vmem:[%s2961_s16 + $0x28] sm:$0xff]  }
  0xff   : > { %2034 = vmatpush3.bf16.msra.mxu1 %v2272_v24 }
 0x100   : > { %1972 = vmatpush3.bf16.msra.mxu0 %v2249_v13  ;;  %2035 = vmatprep.subr.bf16.mxu1 %v2273_v28 }
 0x101   : > { %1973 = vmatprep.subr.bf16.mxu0 %v2250_v14 }
 0x103   : > { %2036 = vmatpush3.bf16.msra.mxu1 %v2273_v28 }
 0x104   : > { %1974 = vmatpush3.bf16.msra.mxu0 %v2250_v14  ;;  %2037 = vmatprep.subr.bf16.mxu1 %v2274_v30  ;;  %v2283_v14 = vld [vmem:[%s2961_s16 + $0x30] sm:$0xff]  }
 0x105   : > { %1975 = vmatprep.subr.bf16.mxu0 %v2251_v15 }
 0x107   : > { %2038 = vmatpush3.bf16.msra.mxu1 %v2274_v30 }
 0x108   : > { %1976 = vmatpush3.bf16.msra.mxu0 %v2251_v15  ;;  %2039 = vmatprep.subr.bf16.mxu1 %v2275_v34  ;;  %v2284_v15 = vld [vmem:[%s2961_s16 + $0x38] sm:$0xff]  }
 0x109   : > { %1977 = vmatprep.subr.bf16.mxu0 %v2252_v16 }
 0x10b   : > { %2040 = vmatpush3.bf16.msra.mxu1 %v2275_v34 }
 0x10c   : > { %1978 = vmatpush3.bf16.msra.mxu0 %v2252_v16  ;;  %2041 = vmatprep.subr.bf16.mxu1 %v2276_v47  ;;  %v1862_v16 = vld [vmem:[%s2957_s5] ss:$0 sm:$0xff] }
 0x10d   : > { %1995 = vmatprep.subr.bf16.mxu0 %v560_v19 }
 0x10f   : > { %1980 = vmatmul.mubr.bf16.vlgmr.msra.gmra.mrb[0].mxu0 %v2254_v20  ;;  %2042 = vmatpush3.bf16.msra.mxu1 %v2276_v47 }
 0x110   : > { %1996 = vmatpush3.bf16.msra.mxu0 %v560_v19  ;;  %1983 = vmatprep.mubr.bf16.mxu0 %v2255_v22 }
 0x111   : > { %1997 = vmatprep.subr.bf16.mxu0 %v561_v21  ;;  %2059 = vmatprep.subr.bf16.mxu1 %v2277_v48 }
 0x114   : > { %1998 = vmatpush3.bf16.msra.mxu0 %v561_v21 }
 0x115   : > { %1999 = vmatprep.subr.bf16.mxu0 %v562_v25 }
 0x117   : > { %1984 = vmatmul.mubr.bf16.gmra.mrb[4].mxu0 %v2256_v26 }
 0x118   : > { %2000 = vmatpush3.bf16.msra.mxu0 %v562_v25  ;;  %1987 = vmatprep.mubr.bf16.mxu0 %v2257_v27 }
 0x119   : > { %2001 = vmatprep.subr.bf16.mxu0 %v563_v29 }
 0x11c   : > { %2002 = vmatpush3.bf16.msra.mxu0 %v563_v29 }
 0x11d   : > { %2003 = vmatprep.subr.bf16.mxu0 %v564_v31 }
 0x11f   : > { %1988 = vmatmul.mubr.bf16.gmra.mrb[8].mxu0 %v2258_v32 }
 0x120   : > { %2004 = vmatpush3.bf16.msra.mxu0 %v564_v31  ;;  %1991 = vmatprep.mubr.bf16.mxu0 %v2259_v33 }
 0x121   : > { %2005 = vmatprep.subr.bf16.mxu0 %v565_v35 }
 0x124   : > { %2006 = vmatpush3.bf16.msra.mxu0 %v565_v35 }
 0x125   : > { %2007 = vmatprep.subr.bf16.mxu0 %v566_v36 }
 0x127   : > { %1992 = vmatmul.mubr.bf16.gmra.mrb[12].mxu0 %v2260_v37 }
 0x128   : > { %2008 = vmatpush3.bf16.msra.mxu0 %v566_v36  ;;  %2011 = vmatprep.mubr.bf16.mxu0 %v2261_v38 }
 0x129   : > { %2009 = vmatprep.subr.bf16.mxu0 %v567_v39 }
 0x12c   : > { %2010 = vmatpush3.bf16.msra.mxu0 %v567_v39 }
 0x12f   : > { %2012 = vmatmul.mubr.bf16.vlgmr.msra.gmra.mrb[0].mxu0 %v2262_v40 }
 0x130   : > { %2015 = vmatprep.mubr.bf16.mxu0 %v2263_v41 }
 0x137   : > { %2016 = vmatmul.mubr.bf16.gmra.mrb[4].mxu0 %v2264_v42 }
 0x138   : > { %2019 = vmatprep.mubr.bf16.mxu0 %v2265_v43 }
 0x13f   : > { %2020 = vmatmul.mubr.bf16.gmra.mrb[8].mxu0 %v2266_v44 }
 0x140   : > { %2023 = vmatprep.mubr.bf16.mxu0 %v2267_v45 }
 0x147   : > { %2024 = vmatmul.mubr.bf16.gmra.mrb[12].mxu0 %v2268_v46 }
 0x202   : > { %v2013_v49 = vpop.f32.mrb[0].mxu0 }
 0x203   : > { %v891_v50 = vpop.f32.mrb[1].mxu0 }
 0x204   : > { %v2014_v51 = vpop.f32.mrb[2].mxu0 }
 0x205   : > { %v958_v52 = vpack.c.bf16 %v2014_v51, %v2013_v49  ;;  %v894_v53 = vpop.f32.mrb[3].mxu0 }
 0x206   : > { %v957_v54 = vpack.c.bf16 %v894_v53, %v891_v50 }
 0x208   : > { %2043 = vmatprep.mubr.bf16.mxu1 %v957_v54 }
 0x209   : > { %2044 = vmatmul.mubr.bf16.vlgmr.msra.gmra.mrb[0].mxu1 %v958_v52 }
 0x20a   : > { %v2017_v56 = vpop.f32.mrb[4].mxu0  ;;  %2060 = vmatpush3.bf16.msra.mxu1 %v2277_v48 }
 0x20b   : > { %v907_v57 = vpop.f32.mrb[5].mxu0  ;;  %2061 = vmatprep.subr.bf16.mxu1 %v2278_v55 }
 0x20c   : > { %v2018_v59 = vpop.f32.mrb[6].mxu0 }
 0x20d   : > { %v960_v60 = vpack.c.bf16 %v2018_v59, %v2017_v56  ;;  %v910_v61 = vpop.f32.mrb[7].mxu0 }
 0x20e   : > { %v959_v62 = vpack.c.bf16 %v910_v61, %v907_v57  ;;  %2062 = vmatpush3.bf16.msra.mxu1 %v2278_v55 }
 0x20f   : > { %2063 = vmatprep.subr.bf16.mxu1 %v2279_v58 }
 0x210   : > { %2047 = vmatprep.mubr.bf16.mxu1 %v959_v62 }
 0x211   : > { %2048 = vmatmul.mubr.bf16.gmra.mrb[4].mxu1 %v960_v60 }
 0x212   : > { %v2021_v0 = vpop.f32.mrb[8].mxu0  ;;  %2064 = vmatpush3.bf16.msra.mxu1 %v2279_v58 }
 0x213   : > { %v923_v1 = vpop.f32.mrb[9].mxu0  ;;  %2065 = vmatprep.subr.bf16.mxu1 %v2280_v63 }
 0x214   : > { %v2022_v3 = vpop.f32.mrb[10].mxu0 }
 0x215   : > { %v962_v4 = vpack.c.bf16 %v2022_v3, %v2021_v0  ;;  %v926_v5 = vpop.f32.mrb[11].mxu0 }
 0x216   : > { %v961_v6 = vpack.c.bf16 %v926_v5, %v923_v1  ;;  %2066 = vmatpush3.bf16.msra.mxu1 %v2280_v63 }
 0x217   : > { %2067 = vmatprep.subr.bf16.mxu1 %v2281_v2 }
 0x218   : > { %2051 = vmatprep.mubr.bf16.mxu1 %v961_v6 }
 0x219   : > { %2052 = vmatmul.mubr.bf16.gmra.mrb[8].mxu1 %v962_v4 }
 0x21a   : > { %v2025_v8 = vpop.f32.mrb[12].mxu0  ;;  %2068 = vmatpush3.bf16.msra.mxu1 %v2281_v2 }
 0x21b   : > { %v939_v9 = vpop.f32.mrb[13].mxu0  ;;  %2069 = vmatprep.subr.bf16.mxu1 %v2282_v7 }
 0x21c   : > { %v2026_v10 = vpop.f32.mrb[14].mxu0 }
 0x21d   : > { %v964_v11 = vpack.c.bf16 %v2026_v10, %v2025_v8  ;;  %v942_v12 = vpop.f32.mrb[15].mxu0 }
 0x21e   : > { %v963_v13 = vpack.c.bf16 %v942_v12, %v939_v9  ;;  %2070 = vmatpush3.bf16.msra.mxu1 %v2282_v7 }
 0x21f   : > { %2071 = vmatprep.subr.bf16.mxu1 %v2283_v14 }
 0x220   : > { %2055 = vmatprep.mubr.bf16.mxu1 %v963_v13 }
 0x221   : > { %2056 = vmatmul.mubr.bf16.gmra.mrb[12].mxu1 %v964_v11 }
 0x222   : > { %2072 = vmatpush3.bf16.msra.mxu1 %v2283_v14 }
 0x223   : > { %2073 = vmatprep.subr.bf16.mxu1 %v2284_v15 }
 0x226   : > { %2074 = vmatpush3.bf16.msra.mxu1 %v2284_v15 }
 0x2dc   : > { %v2045_v17 = vpop.f32.mrb[0].mxu1 }
 0x2dd   : > { %v1076_v18 = vadd.f32 %v2045_v17, %v1862_v16  ;;  %v1067_v19 = vpop.f32.mrb[1].mxu1 }
 0x2de   : > { %v1068_v20 = vadd.f32 %v1862_v16, %v1067_v19  ;;  %v2046_v21 = vpop.f32.mrb[2].mxu1 }
 0x2df   : > { %v1079_v22 = vadd.f32 %v2046_v21, %v1862_v16  ;;  %v1070_v23 = vpop.f32.mrb[3].mxu1  ;;  %v1132_v25 = vmax.f32 %v1076_v18, 0.0 }
 0x2e0   : > { %v1071_v24 = vadd.f32 %v1862_v16, %v1070_v23  ;;  %v1130_v27 = vmax.f32 %v1068_v20, 0.0 }
 0x2e1   : > { %v1133_v26 = vmax.f32 %v1079_v22, 0.0 }
 0x2e2   : > { %v1131_v28 = vmax.f32 %v1071_v24, 0.0 }
 0x2e3   : > { %v1147_v29 = vpack.c.bf16 %v1133_v26, %v1132_v25 }
 0x2e4   : > { %v1146_v30 = vpack.c.bf16 %v1131_v28, %v1130_v27  ;;  %v2049_v31 = vpop.f32.mrb[4].mxu1 }
 0x2e5   : > { %v1092_v32 = vadd.f32 %v2049_v31, %v1862_v16  ;;  %v1083_v33 = vpop.f32.mrb[5].mxu1 }
 0x2e6   : > { %v1084_v34 = vadd.f32 %v1862_v16, %v1083_v33  ;;  %v2050_v35 = vpop.f32.mrb[6].mxu1  ;;  %2075 = vmatprep.mubr.bf16.mxu1 %v1146_v30 }
 0x2e7   : > { %v1095_v36 = vadd.f32 %v2050_v35, %v1862_v16  ;;  %v1086_v37 = vpop.f32.mrb[7].mxu1  ;;  %2076 = vmatmul.mubr.bf16.vlgmr.msra.gmra.mrb[16].mxu1 %v1147_v29  ;;  %v1136_v39 = vmax.f32 %v1092_v32, 0.0 }
 0x2e8   : > { %v1087_v38 = vadd.f32 %v1862_v16, %v1086_v37  ;;  %v1134_v41 = vmax.f32 %v1084_v34, 0.0 }
 0x2e9   : > { %v1137_v40 = vmax.f32 %v1095_v36, 0.0 }
 0x2ea   : > { %v1135_v42 = vmax.f32 %v1087_v38, 0.0 }
 0x2eb   : > { %v1149_v43 = vpack.c.bf16 %v1137_v40, %v1136_v39 }
 0x2ec   : > { %v1148_v44 = vpack.c.bf16 %v1135_v42, %v1134_v41  ;;  %v2053_v45 = vpop.f32.mrb[8].mxu1 }
 0x2ed   : > { %v1108_v46 = vadd.f32 %v2053_v45, %v1862_v16  ;;  %v1099_v47 = vpop.f32.mrb[9].mxu1 }
 0x2ee   : > { %v1100_v48 = vadd.f32 %v1862_v16, %v1099_v47  ;;  %v2054_v49 = vpop.f32.mrb[10].mxu1  ;;  %2079 = vmatprep.mubr.bf16.mxu1 %v1148_v44 }
 0x2ef   : > { %v1111_v50 = vadd.f32 %v2054_v49, %v1862_v16  ;;  %v1102_v51 = vpop.f32.mrb[11].mxu1  ;;  %2080 = vmatmul.mubr.bf16.gmra.mrb[20].mxu1 %v1149_v43  ;;  %v1140_v53 = vmax.f32 %v1108_v46, 0.0 }
 0x2f0   : > { %v1103_v52 = vadd.f32 %v1862_v16, %v1102_v51  ;;  %v1138_v55 = vmax.f32 %v1100_v48, 0.0 }
 0x2f1   : > { %v1141_v54 = vmax.f32 %v1111_v50, 0.0 }
 0x2f2   : > { %v1139_v56 = vmax.f32 %v1103_v52, 0.0 }
 0x2f3   : > { %v1151_v57 = vpack.c.bf16 %v1141_v54, %v1140_v53 }
 0x2f4   : > { %v1150_v58 = vpack.c.bf16 %v1139_v56, %v1138_v55  ;;  %v2057_v59 = vpop.f32.mrb[12].mxu1 }
 0x2f5   : > { %v1124_v60 = vadd.f32 %v2057_v59, %v1862_v16  ;;  %v1115_v61 = vpop.f32.mrb[13].mxu1 }
 0x2f6   : > { %v1116_v62 = vadd.f32 %v1862_v16, %v1115_v61  ;;  %v2058_v63 = vpop.f32.mrb[14].mxu1  ;;  %2083 = vmatprep.mubr.bf16.mxu1 %v1150_v58 }
 0x2f7   : > { %v1127_v0 = vadd.f32 %v2058_v63, %v1862_v16  ;;  %v1118_v1 = vpop.f32.mrb[15].mxu1  ;;  %2084 = vmatmul.mubr.bf16.gmra.mrb[24].mxu1 %v1151_v57  ;;  %v1144_v3 = vmax.f32 %v1124_v60, 0.0 }
 0x2f8   : > { %v1119_v2 = vadd.f32 %v1862_v16, %v1118_v1  ;;  %v1142_v5 = vmax.f32 %v1116_v62, 0.0 }
 0x2f9   : > { %v1145_v4 = vmax.f32 %v1127_v0, 0.0 }
 0x2fa   : > { %v1143_v6 = vmax.f32 %v1119_v2, 0.0 }
 0x2fb   : > { %v1153_v7 = vpack.c.bf16 %v1145_v4, %v1144_v3 }
 0x2fc   : > { %v1152_v8 = vpack.c.bf16 %v1143_v6, %v1142_v5 }
 0x2fe   : > { %2087 = vmatprep.mubr.bf16.mxu1 %v1152_v8 }
 0x2ff   : > { %2088 = vmatmul.mubr.bf16.gmra.mrb[28].mxu1 %v1153_v7 }
 0x3ba   : > { %v2077_v9 = vpop.f32.mrb[16].mxu1 }
 0x3bb   : > { %v1252_v10 = vpop.f32.mrb[17].mxu1  ;;  %v1382_v14 = vmul.f32 0.0, %v2077_v9 }
 0x3bc   : > { %v2078_v11 = vpop.f32.mrb[18].mxu1 }
 0x3bd   : > { %v1255_v12 = vpop.f32.mrb[19].mxu1  ;;  %v1383_v17 = vmul.f32 0.0, %v2078_v11 }
 0x3be   : > { %v1381_v13 = vmul.f32 0.0, %v1255_v12 }
 0x3c0   : > { %v1396_v15 = vadd.f32 %v1381_v13, %v1252_v10 }
 0x3c2   : > { %v1397_v18 = vadd.f32 %v1396_v15, %v1382_v14  ;;  %v2081_v19 = vpop.f32.mrb[20].mxu1 }
 0x3c3   : > { %v1268_v20 = vpop.f32.mrb[21].mxu1  ;;  %v1386_v26 = vmul.f32 0.0, %v2081_v19 }
 0x3c4   : > { %v1384_v16 = vmul.f32 0.0, %v1268_v20  ;;  %v1398_v21 = vadd.f32 %v1397_v18, %v1383_v17  ;;  %v2082_v22 = vpop.f32.mrb[22].mxu1 }
 0x3c5   : > { %v1271_v23 = vpop.f32.mrb[23].mxu1  ;;  %v1387_v28 = vmul.f32 0.0, %v2082_v22 }
 0x3c6   : > { %v1399_v24 = vadd.f32 %v1398_v21, %v1384_v16  ;;  %v1385_v25 = vmul.f32 0.0, %v1271_v23 }
 0x3c8   : > { %v1400_v27 = vadd.f32 %v1399_v24, %v1385_v25 }
 0x3ca   : > { %v1401_v29 = vadd.f32 %v1400_v27, %v1386_v26  ;;  %v2085_v30 = vpop.f32.mrb[24].mxu1 }
 0x3cb   : > { %v1284_v31 = vpop.f32.mrb[25].mxu1  ;;  %v1390_v38 = vmul.f32 0.0, %v2085_v30 }
 0x3cc   : > { %v1388_v32 = vmul.f32 0.0, %v1284_v31  ;;  %v1402_v33 = vadd.f32 %v1401_v29, %v1387_v28  ;;  %v2086_v34 = vpop.f32.mrb[26].mxu1 }
 0x3cd   : > { %v1287_v35 = vpop.f32.mrb[27].mxu1  ;;  %v1391_v40 = vmul.f32 0.0, %v2086_v34 }
 0x3ce   : > { %v1403_v36 = vadd.f32 %v1402_v33, %v1388_v32  ;;  %v1389_v37 = vmul.f32 0.0, %v1287_v35 }
 0x3d0   : > { %v1404_v39 = vadd.f32 %v1403_v36, %v1389_v37 }
 0x3d2   : > { %v1405_v41 = vadd.f32 %v1404_v39, %v1390_v38  ;;  %v2089_v42 = vpop.f32.mrb[28].mxu1 }
 0x3d3   : > { %v1300_v43 = vpop.f32.mrb[29].mxu1  ;;  %v1394_v50 = vmul.f32 0.0, %v2089_v42 }
 0x3d4   : > { %v1392_v44 = vmul.f32 0.0, %v1300_v43  ;;  %v1406_v45 = vadd.f32 %v1405_v41, %v1391_v40  ;;  %v2090_v46 = vpop.f32.mrb[30].mxu1 }
 0x3d5   : > { %v1303_v47 = vpop.f32.mrb[31].mxu1  ;;  %v1395_v52 = vmul.f32 0.0, %v2090_v46 }
 0x3d6   : > { %v1407_v48 = vadd.f32 %v1406_v45, %v1392_v44  ;;  %v1393_v49 = vmul.f32 0.0, %v1303_v47 }
 0x3d8   : > { %v1408_v51 = vadd.f32 %v1407_v48, %v1393_v49 }
 0x3da   : > { %v1409_v53 = vadd.f32 %v1408_v51, %v1394_v50 }
 0x3dc   : > { %v1410_v54 = vadd.f32 %v1409_v53, %v1395_v52 }
 0x3de   : > { %v1411_v55 = vrot.slane %v1410_v54, 4 }
 0x3e0   : > { %v1412_v56 = vadd.f32 %v1411_v55, %v1410_v54 }
 0x3e2   : > { %v1413_v57 = vrot.slane %v1412_v56, 2 }
 0x3e4   : > { %v1414_v58 = vadd.f32 %v1413_v57, %v1412_v56 }
 0x3e6   : > { %v1415_v59 = vrot.slane %v1414_v58, 1 }
 0x3e8   : > { %v1416_v60 = vadd.f32 %v1415_v59, %v1414_v58 }
 0x3ea   : > { %v1417_v61 = vmul.f32 0.125, %v1416_v60 }
 0x3ec   : > { %v2990_v62 = vsub.f32 %v1252_v10, %v1417_v61  ;;  %v2992_v63 = vsub.f32 %v1255_v12, %v1417_v61  ;;  %v2994_v0 = vsub.f32 %v2077_v9, %v1417_v61  ;;  %v2996_v1 = vsub.f32 %v2078_v11, %v1417_v61 }
 0x3ed   : > { %v2998_v2 = vsub.f32 %v1268_v20, %v1417_v61  ;;  %v3000_v3 = vsub.f32 %v1271_v23, %v1417_v61  ;;  %v3002_v4 = vsub.f32 %v2081_v19, %v1417_v61  ;;  %v3004_v5 = vsub.f32 %v2082_v22, %v1417_v61 }
 0x3ee   : > { %v3006_v6 = vsub.f32 %v1284_v31, %v1417_v61  ;;  %v3008_v7 = vsub.f32 %v1287_v35, %v1417_v61  ;;  %v3010_v8 = vsub.f32 %v2085_v30, %v1417_v61  ;;  %v3012_v10 = vsub.f32 %v2086_v34, %v1417_v61 }
 0x3ef   : > { %v3014_v9 = vsub.f32 %v1300_v43, %v1417_v61  ;;  %v3016_v11 = vsub.f32 %v1303_v47, %v1417_v61  ;;  %v3018_v12 = vsub.f32 %v2089_v42, %v1417_v61  ;;  %v3020_v13 = vsub.f32 %v2090_v46, %v1417_v61 }
 0x3f0   : > { %v1435_v14 = vmul.f32 0.0, %v2992_v63  ;;  %v1436_v15 = vmul.f32 0.0, %v2994_v0  ;;  %v1437_v18 = vmul.f32 0.0, %v2996_v1  ;;  %v1450_v19 = vmul.f32 %v2990_v62, %v2990_v62 }
 0x3f1   : > { %v1438_v20 = vmul.f32 0.0, %v2998_v2  ;;  %v1439_v22 = vmul.f32 0.0, %v3000_v3  ;;  %v1440_v25 = vmul.f32 0.0, %v3002_v4  ;;  %v1441_v28 = vmul.f32 0.0, %v3004_v5 }
 0x3f2   : > { %v1451_v17 = vmul.f32 %v1435_v14, %v1435_v14  ;;  %v1452_v16 = vmul.f32 %v1436_v15, %v1436_v15  ;;  %v1453_v23 = vmul.f32 %v1437_v18, %v1437_v18  ;;  %v1442_v31 = vmul.f32 0.0, %v3006_v6 }
 0x3f3   : > { %v1454_v26 = vmul.f32 %v1438_v20, %v1438_v20  ;;  %v1455_v29 = vmul.f32 %v1439_v22, %v1439_v22  ;;  %v1456_v32 = vmul.f32 %v1440_v25, %v1440_v25  ;;  %v1443_v34 = vmul.f32 0.0, %v3008_v7  ;;  %v955_v22 = vld [vmem:[%s2957_s5 + $0x1] sm:$0x1] }
 0x3f4   : > { %v1466_v21 = vadd.f32 %v1451_v17, %v1450_v19  ;;  %v1457_v35 = vmul.f32 %v1441_v28, %v1441_v28  ;;  %v1444_v37 = vmul.f32 0.0, %v3010_v8  ;;  %v1458_v38 = vmul.f32 %v1442_v31, %v1442_v31  ;;  %v1879_v31 = vld [vmem:[%s2957_s5 + $0x2] ss:$0 sm:$0xff] }
 0x3f5   : > { %v1445_v40 = vmul.f32 0.0, %v3012_v10  ;;  %v1459_v41 = vmul.f32 %v1443_v34, %v1443_v34  ;;  %v1446_v43 = vmul.f32 0.0, %v3014_v9  ;;  %v1447_v46 = vmul.f32 0.0, %v3016_v11 }
 0x3f6   : > { %v1467_v24 = vadd.f32 %v1466_v21, %v1452_v16  ;;  %v1460_v44 = vmul.f32 %v1444_v37, %v1444_v37  ;;  %v1448_v49 = vmul.f32 0.0, %v3018_v12  ;;  %v1449_v52 = vmul.f32 0.0, %v3020_v13 }
 0x3f7   : > { %v1461_v47 = vmul.f32 %v1445_v40, %v1445_v40  ;;  %v1462_v50 = vmul.f32 %v1446_v43, %v1446_v43  ;;  %v1463_v53 = vmul.f32 %v1447_v46, %v1447_v46  ;;  %v1491_v16 = vlaneseq }
 0x3f8   : > { %v1468_v27 = vadd.f32 %v1467_v24, %v1453_v23  ;;  %v1464_v55 = vmul.f32 %v1448_v49, %v1448_v49  ;;  %v1465_v57 = vmul.f32 %v1449_v52, %v1449_v52 }
 0x3f9   : > { %v1492_v21 = vshrl.u32 %v1491_v16, 7 }
 0x3fa   : > { %v1469_v30 = vadd.f32 %v1468_v27, %v1454_v26 }
 0x3fb   : > { %v1493_v23 = vsub.s32 0, %v1492_v21  ;;  %v2606_v21 = vmov (!%p1880_p13), 0.0  }
 0x3fc   : > { %v1470_v33 = vadd.f32 %v1469_v30, %v1455_v29  ;;  %2091 = vmatprep.subr.bf16.mxu0 (!%p1880_p13), %v2606_v21  ;;  %2107 = vmatprep.mubr.msk.bf16.mxu0 (!%p1880_p13), %vm2607_vm0, %v2606_v21 }
 0x3fe   : > { %v1471_v36 = vadd.f32 %v1470_v33, %v1456_v32 }
 0x400   : > { %v1472_v39 = vadd.f32 %v1471_v36, %v1457_v35 }
 0x402   : > { %v1473_v42 = vadd.f32 %v1472_v39, %v1458_v38 }
 0x404   : > { %v1474_v45 = vadd.f32 %v1473_v42, %v1459_v41 }
 0x406   : > { %v1475_v48 = vadd.f32 %v1474_v45, %v1460_v44 }
 0x408   : > { %v1476_v51 = vadd.f32 %v1475_v48, %v1461_v47 }
 0x40a   : > { %v1477_v54 = vadd.f32 %v1476_v51, %v1462_v50 }
 0x40c   : > { %v1478_v56 = vadd.f32 %v1477_v54, %v1463_v53 }
 0x40e   : > { %v1479_v58 = vadd.f32 %v1478_v56, %v1464_v55 }
 0x410   : > { %v1480_v59 = vadd.f32 %v1479_v58, %v1465_v57 }
 0x412   : > { %v1481_v60 = vrot.slane %v1480_v59, 4 }
 0x414   : > { %v1482_v61 = vadd.f32 %v1481_v60, %v1480_v59 }
 0x416   : > { %v1483_v14 = vrot.slane %v1482_v61, 2 }
 0x418   : > { %v1484_v15 = vadd.f32 %v1483_v14, %v1482_v61 }
 0x41a   : > { %v1485_v17 = vrot.slane %v1484_v15, 1 }
 0x41c   : > { %v1486_v18 = vadd.f32 %v1485_v17, %v1484_v15 }
 0x41e   : > { %v1487_v19 = vmul.f32 0.125, %v1486_v18 }
 0x420   : > { %v1488_v20 = vadd.f32 1e-05, %v1487_v19 }
 0x422   : > { %2285 = vrsqrt.f32 %v1488_v20 }
 0x42c   : > { %v2286_v24 = vpop.eup %2285 }
 0x42d   : > { %v1490_v25 = vmul.f32 %v2286_v24, %v955_v22 }
 0x42f   : > { %v1494_v26 = vrot.slane %v1490_v25, %v1493_v23 }
 0x431   : > { %v1495_v27 = vmul.f32 %v1494_v26, %v2990_v62  ;;  %v1496_v28 = vmul.f32 %v1494_v26, %v2992_v63  ;;  %v1497_v29 = vmul.f32 %v1494_v26, %v2994_v0  ;;  %v1498_v30 = vmul.f32 %v1494_v26, %v2996_v1 }
 0x432   : > { %v1499_v32 = vmul.f32 %v1494_v26, %v2998_v2  ;;  %v1500_v33 = vmul.f32 %v1494_v26, %v3000_v3  ;;  %v1501_v34 = vmul.f32 %v1494_v26, %v3002_v4  ;;  %v1502_v35 = vmul.f32 %v1494_v26, %v3004_v5 }
 0x433   : > { %v1503_v36 = vmul.f32 %v1494_v26, %v3006_v6  ;;  %v1504_v37 = vmul.f32 %v1494_v26, %v3008_v7  ;;  %v1505_v62 = vmul.f32 %v1494_v26, %v3010_v8  ;;  %v1506_v63 = vmul.f32 %v1494_v26, %v3012_v10 }
 0x434   : > { %v1507_v0 = vmul.f32 %v1494_v26, %v3014_v9  ;;  %v1508_v1 = vmul.f32 %v1494_v26, %v3016_v11  ;;  %v1509_v2 = vmul.f32 %v1494_v26, %v3018_v12  ;;  %v1510_v3 = vmul.f32 %v1494_v26, %v3020_v13 }
 0x435   : > { %v3057_v38 = vadd.f32 %v1879_v31, %v1495_v27  ;;  %v3059_v4 = vadd.f32 %v1879_v31, %v1496_v28  ;;  %v3061_v5 = vadd.f32 %v1879_v31, %v1497_v29  ;;  %v3063_v6 = vadd.f32 %v1879_v31, %v1498_v30  ;;  %v1583_v29 = vld [vmem:[#allocation9] sm:$0xf] (!%p1880_p13) }
 0x436   : > { %v3065_v7 = vadd.f32 %v1879_v31, %v1499_v32  ;;  %v3067_v8 = vadd.f32 %v1879_v31, %v1500_v33  ;;  %v3069_v10 = vadd.f32 %v1879_v31, %v1501_v34  ;;  %v3071_v9 = vadd.f32 %v1879_v31, %v1502_v35 }
 0x437   : > { %v3073_v11 = vadd.f32 %v1879_v31, %v1503_v36  ;;  %v3075_v12 = vadd.f32 %v1879_v31, %v1504_v37  ;;  %v3077_v13 = vadd.f32 %v1879_v31, %v1505_v62  ;;  %v3079_v39 = vadd.f32 %v1879_v31, %v1506_v63  ;;  %1567 = vst [vmem:[#allocation14] sm:$0xff] (!%p1880_p13), %v3057_v38 }
 0x438   : > { %v3081_v40 = vadd.f32 %v1879_v31, %v1507_v0  ;;  %v3083_v41 = vadd.f32 %v1879_v31, %v1508_v1  ;;  %v3085_v42 = vadd.f32 %v1879_v31, %v1509_v2  ;;  %v3087_v43 = vadd.f32 %v1879_v31, %v1510_v3  ;;  %1568 = vst [vmem:[#allocation14 + $0x8] sm:$0xff] (!%p1880_p13), %v3059_v4 }
 0x439   : > { %v1531_v44 = vmax.f32 %v3057_v38, 0.0  ;;  %v1532_v45 = vmax.f32 %v3059_v4, 0.0  ;;  %v1533_v46 = vmax.f32 %v3061_v5, 0.0  ;;  %v1534_v47 = vmax.f32 %v3063_v6, 0.0  ;;  %1569 = vst [vmem:[#allocation14 + $0x10] sm:$0xff] (!%p1880_p13), %v3061_v5  ;;  %1570 = vst [vmem:[#allocation14 + $0x18] sm:$0xff] (!%p1880_p13), %v3063_v6 }
 0x43a   : > { %v1535_v48 = vmax.f32 %v3065_v7, 0.0  ;;  %v1536_v49 = vmax.f32 %v3067_v8, 0.0  ;;  %v1537_v50 = vmax.f32 %v3069_v10, 0.0  ;;  %v1538_v51 = vmax.f32 %v3071_v9, 0.0  ;;  %1571 = vst [vmem:[#allocation14 + $0x20] sm:$0xff] (!%p1880_p13), %v3065_v7  ;;  %1572 = vst [vmem:[#allocation14 + $0x28] sm:$0xff] (!%p1880_p13), %v3067_v8 }
 0x43b   : > { %v1539_v52 = vmax.f32 %v3073_v11, 0.0  ;;  %v1540_v53 = vmax.f32 %v3075_v12, 0.0  ;;  %v1541_v54 = vmax.f32 %v3077_v13, 0.0  ;;  %v1542_v55 = vmax.f32 %v3079_v39, 0.0  ;;  %1573 = vst [vmem:[#allocation14 + $0x30] sm:$0xff] (!%p1880_p13), %v3069_v10  ;;  %1574 = vst [vmem:[#allocation14 + $0x38] sm:$0xff] (!%p1880_p13), %v3071_v9 }
 0x43c   : > { %v1543_v56 = vmax.f32 %v3081_v40, 0.0  ;;  %v1544_v57 = vmax.f32 %v3083_v41, 0.0  ;;  %v1545_v58 = vmax.f32 %v3085_v42, 0.0  ;;  %v1546_v59 = vmax.f32 %v3087_v43, 0.0  ;;  %1566 = sbr.rel (%p1880_p13) target bundleno = 1335 (0x537), region = 88  ;;  %1575 = vst [vmem:[#allocation14 + $0x40] sm:$0xff] (!%p1880_p13), %v3073_v11 }
 0x43d   : > { %v1547_v60 = vpack.c.bf16 %v1532_v45, %v1531_v44  ;;  %v1548_v61 = vpack.c.bf16 %v1534_v47, %v1533_v46  ;;  %v1549_v14 = vpack.c.bf16 %v1536_v49, %v1535_v48  ;;  %v1550_v15 = vpack.c.bf16 %v1538_v51, %v1537_v50  ;;  %1576 = vst [vmem:[#allocation14 + $0x48] sm:$0xff] (!%p1880_p13), %v3075_v12 }
 0x43e   : > { %v1551_v17 = vpack.c.bf16 %v1540_v53, %v1539_v52  ;;  %v1552_v18 = vpack.c.bf16 %v1542_v55, %v1541_v54  ;;  %v1553_v19 = vpack.c.bf16 %v1544_v57, %v1543_v56  ;;  %v1554_v20 = vpack.c.bf16 %v1546_v59, %v1545_v58  ;;  %1577 = vst [vmem:[#allocation14 + $0x50] sm:$0xff] (!%p1880_p13), %v3077_v13 }
 0x43f   : > { %1555 = vst [vmem:[#allocation2] sm:$0xff] %v1547_v60  ;;  %1556 = vst [vmem:[#allocation2 + $0x8] sm:$0xff] %v1548_v61  ;;  %v1584_v16 = vpack.c.bf16 (!%p1880_p13), %v3059_v4, %v3057_v38  ;;  %v1585_v22 = vpack.c.bf16 (!%p1880_p13), %v3063_v6, %v3061_v5  ;;  %v1586_v23 = vpack.c.bf16 (!%p1880_p13), %v3067_v8, %v3065_v7 }
 0x440   : > { %1557 = vst [vmem:[#allocation2 + $0x10] sm:$0xff] %v1549_v14  ;;  %1558 = vst [vmem:[#allocation2 + $0x18] sm:$0xff] %v1550_v15  ;;  %v1587_v24 = vpack.c.bf16 (!%p1880_p13), %v3071_v9, %v3069_v10  ;;  %v1588_v25 = vpack.c.bf16 (!%p1880_p13), %v3075_v12, %v3073_v11  ;;  %v1589_v26 = vpack.c.bf16 (!%p1880_p13), %v3079_v39, %v3077_v13 }
 0x441   : > { %1559 = vst [vmem:[#allocation2 + $0x20] sm:$0xff] %v1551_v17  ;;  %1560 = vst [vmem:[#allocation2 + $0x28] sm:$0xff] %v1552_v18  ;;  %2092 = vmatpush3.bf16.msra.mxu0 (!%p1880_p13), %v1584_v16  ;;  %v1590_v27 = vpack.c.bf16 (!%p1880_p13), %v3083_v41, %v3081_v40  ;;  %v1591_v28 = vpack.c.bf16 (!%p1880_p13), %v3087_v43, %v3085_v42 }
 0x442   : > { %1561 = vst [vmem:[#allocation2 + $0x30] sm:$0xff] %v1553_v19  ;;  %1562 = vst [vmem:[#allocation2 + $0x38] sm:$0xff] %v1554_v20  ;;  %2093 = vmatprep.subr.bf16.mxu0 (!%p1880_p13), %v2606_v21 }
 0x443   : > { %1578 = vst [vmem:[#allocation14 + $0x58] sm:$0xff] %v3079_v39  ;;  %1579 = vst [vmem:[#allocation14 + $0x60] sm:$0xff] %v3081_v40 }
 0x444   : > { %1580 = vst [vmem:[#allocation14 + $0x68] sm:$0xff] %v3083_v41  ;;  %1581 = vst [vmem:[#allocation14 + $0x70] sm:$0xff] %v3085_v42 }
 0x445   : > { %1582 = vst [vmem:[#allocation14 + $0x78] sm:$0xff] %v3087_v43  ;;  %2094 = vmatpush3.bf16.msra.mxu0 %v1585_v22 }
 0x446   : > { %2095 = vmatprep.subr.bf16.mxu0 %v2606_v21 }
 0x449   : > { %2096 = vmatpush3.bf16.msra.mxu0 %v1586_v23 }
 0x44a   : > { %2097 = vmatprep.subr.bf16.mxu0 %v2606_v21 }
 0x44d   : > { %2098 = vmatpush3.bf16.msra.mxu0 %v1587_v24 }
 0x44e   : > { %2099 = vmatprep.subr.bf16.mxu0 %v2606_v21 }
 0x451   : > { %2100 = vmatpush3.bf16.msra.mxu0 %v1588_v25 }
 0x452   : > { %2101 = vmatprep.subr.bf16.mxu0 %v2606_v21 }
 0x455   : > { %2102 = vmatpush3.bf16.msra.mxu0 %v1589_v26 }
 0x456   : > { %2103 = vmatprep.subr.bf16.mxu0 %v2606_v21 }
 0x459   : > { %2104 = vmatpush3.bf16.msra.mxu0 %v1590_v27 }
 0x45a   : > { %2105 = vmatprep.subr.bf16.mxu0 %v2606_v21 }
 0x45d   : > { %2106 = vmatpush3.bf16.msra.mxu0 %v1591_v28 }
 0x460   : > { %2108 = vmatmul.mubr.bf16.vlgmr.msra.gmra.mrb[0].mxu0 %v1583_v29 }
 0x533   : > { %v1626_v30 = vpop.f32.mrb[0].mxu0 }
 0x534   : > { %1632 = vst [vmem:[#allocation15] sm:$0xff] %v1626_v30  ;;  %v2109_v31 = vpop.f32.mrb[1].mxu0 }
 0x535   : > { %v1629_v32 = vpop.f32.mrb[2].mxu0 }
 0x536   : > { %v2110_v33 = vpop.f32.mrb[3].mxu0 }
 0x537 PF: > { %p2189_p6 = scmp.eq.s32.totalorder %s2681_s13, 2  ;;  %s2608_s14 = smov [#allocation14]  }
 0x538   : > { %s1639_s17 = sshll.u32 %s2608_s14, 4  ;;  %s1640_s17 = int_to_ptr.vmem [resolvable:$true] %s1639_s17 }
 0x539   : > { %s2489_s18 = scalar_lea.vmem %s1640_s17, 2048  ;;  %p2496_p9 = scmp.lt.s32.totalorder %s1640_s17, %s1640_s17 }
 0x53a   : > { %p2490_p8 = scmp.ne.s32.totalorder %s1640_s17, %s2489_s18  ;;  %p2497_p12 = scmp.lt.s32.totalorder %s2489_s18, %s2489_s18 }
 0x53c   : > { %p2491_p1 = pnand %p2490_p8, %p2189_p6  ;;  %p2498_p0 = por %p2497_p12, %p2496_p9 }
 0x53e   : > { %p2492_p10 = pneg %p2491_p1 }
 0x540   : > { %p2499_p3 = pnand %p2498_p0, %p2492_p10 }
 0x542   : > { %2502 = shalt.err (!%p2499_p3)
}
 0x543   : > { %s2503_s25 = scalar_lea.hbm %s3204_s8, 2048 }
 0x544   : > { %p2504_p7 = scmp.ne.s32.totalorder %s3204_s8, %s2503_s25  ;;  %p2509_p4 = scmp.lt.u32.totalorder %s2503_s25, %s3204_s8 }
 0x546   : > { %p2505_p11 = pnand %p2504_p7, %p2189_p6 }
 0x548   : > { %p2506_p2 = pneg %p2505_p11 }
 0x54a   : > { %p2511_p5 = pnand %p2509_p4, %p2506_p2 }
 0x54c   : > { %2514 = shalt.err (!%p2511_p5)
}
 0x54d   : > { %s2609_s11 = smov 128   ;;  %s2610_s26 = smov 8  }
 0x54e   : > { %2150 = dma.vmem_to_hbm [thread:$0]  (%p2189_p6), %s1640_s17, 2048, %s3204_s8, [#allocation5], %s2609_s11, %s2609_s11, %s2610_s26  }
 0x54f   : > { %s2611_s28 = smov [#allocation15]  }
 0x550   : > { %s1653_s19 = sshll.u32 %s2611_s28, 4  ;;  %s1654_s19 = int_to_ptr.vmem [resolvable:$true] %s1653_s19 }
 0x551   : > { %s2515_s22 = scalar_lea.vmem %s1654_s19, 128  ;;  %p2522_p10 = scmp.lt.s32.totalorder %s1654_s19, %s1654_s19 }
 0x552   : > { %p2516_p13 = scmp.ne.s32.totalorder %s1654_s19, %s2515_s22  ;;  %p2523_p9 = scmp.lt.s32.totalorder %s2515_s22, %s2515_s22 }
 0x554   : > { %p2517_p8 = pnand %p2516_p13, %p2189_p6  ;;  %p2524_p12 = por %p2523_p9, %p2522_p10 }
 0x556   : > { %p2518_p1 = pneg %p2517_p8 }
 0x558   : > { %p2525_p0 = pnand %p2524_p12, %p2518_p1 }
 0x55a   : > { %2528 = shalt.err (!%p2525_p0)
}
 0x55b   : > { %s3260_s12 = sld [smem:[#allocation30_spill]] }
 0x561   : > { %s3261_s1 = smov %s3260_s12  ;;  %s2529_s5 = scalar_lea.hbm %s3260_s12, 128 }
 0x562   : > { %p2530_p3 = scmp.ne.s32.totalorder %s3261_s1, %s2529_s5  ;;  %p2535_p2 = scmp.lt.u32.totalorder %s2529_s5, %s3261_s1 }
 0x564   : > { %p2531_p7 = pnand %p2530_p3, %p2189_p6 }
 0x566   : > { %p2532_p11 = pneg %p2531_p7 }
 0x568   : > { %p2537_p4 = pnand %p2535_p2, %p2532_p11 }
 0x56a   : > { %2540 = shalt.err (!%p2537_p4)
}
 0x56b   : > { %2152 = dma.vmem_to_hbm [thread:$0]  (%p2189_p6), %s1654_s19, 128, %s3261_s1, [#allocation16]  }
 0x56c   : > { %2574 = dma.done.wait (%p2189_p6), [#allocation5], 2048  }
 0x56d   : > { %2576 = vsyncadd (%p2189_p6), [#allocation5], 4294965248 }
 0x56e   : > { %2578 = dma.done.wait (%p2189_p6), [#allocation16], 128  }
 0x56f   : > { %2580 = vsyncadd (%p2189_p6), [#allocation16], 4294967168 }
 0x570 PF: > { %s3262_s12 = sld [smem:[#allocation24_spill]]  ;;  %s3263_s4 = sld [smem:[#allocation23_spill]] }
 0x571   : > { %s3264_s11 = sld [smem:[#allocation25_spill]]  ;;  %s3265_s30 = smov %s2587_s10 }
 0x576   : > { %p22_p5 = scmp.ge.s32.totalorder %s3262_s12, 5   ;;  %s3266_s10 = smov %s3263_s4 }
 0x578   :  { %24 = sbr.rel (!%p22_p5) target bundleno = 12 (0xc), region = 145 }
 0x57f   :  { %1670 = vsyncpa [#allocation4], 1 }
 0x580   :  { %1672 = vsyncpa [#allocation4 + $0x1], 1 }
 0x581   :  { %1673 = vsyncpa [#allocation7], 1 }
 0x582   :  { %1674 = vsyncpa [#allocation10], 1 }
 0x583   :  { %1675 = vsyncpa [#allocation5], 1 }
 0x584   :  { %1677 = vsyncpa [#allocation5 + $0x1], 1 }
 0x585   :  { %1678 = vsyncpa [#allocation16], 1 }

// kernel: tpu_custom_call.1
= control target key start
LH: loop header
LB: loop body
LE: loop exit
PB: predicated region body
PF: predicated region fallthrough
CT: control target
= control target key end

     0   :  { %s3196_s0 = inlined_call_operand.hbm [shape: bf16[128,128], index: 0, kind: input, shape index: {}]   ;;  %s3197_s1 = inlined_call_operand.hbm [shape: bf16[128,128], index: 1, kind: input, shape index: {}]   ;;  %s3198_s2 = inlined_call_operand.hbm [shape: bf16[128,128], index: 2, kind: input, shape index: {}]   ;;  %s3199_s3 = inlined_call_operand.hbm [shape: bf16[8,128], index: 3, kind: input, shape index: {}]   ;;  %s3200_s4 = inlined_call_operand.hbm [shape: bf16[3,128,128], index: 4, kind: input, shape index: {}]   ;;  %s3201_s5 = inlined_call_operand.hbm [shape: bf16[3,128,128], index: 5, kind: input, shape index: {}]   ;;  %s3202_s6 = inlined_call_operand.hbm [shape: bf16[3,128,128], index: 6, kind: input, shape index: {}]   ;;  %s3203_s7 = inlined_call_operand.vmem [shape: f32[3,8,128], index: 7, kind: input, shape index: {}]   ;;  %s3204_s8 = inlined_call_operand.hbm [shape: f32[128,128], index: 8, kind: output, shape index: {0}]   ;;  %s3205_s9 = inlined_call_operand.hbm [shape: f32[8,128], index: 9, kind: output, shape index: {1}]  }
   0x1   :  { %3225 = sst [smem:[#allocation26_spill]] %s3196_s0 }
   0x2   :  { %3226 = sst [smem:[#allocation27_spill]] %s3197_s1 }
   0x3   :  { %3227 = sst [smem:[#allocation28_spill]] %s3200_s4 }
   0x4   :  { %3228 = sst [smem:[#allocation29_spill]] %s3201_s5 }
   0x5   :  { %3229 = sst [smem:[#allocation30_spill]] %s3205_s9 }
   0x6   :  { %15 = vsyncpa [#allocation4], 0 }
   0x7   :  { %16 = vsyncpa [#allocation7], 0 }
   0x8   :  { %17 = vsyncpa [#allocation10], 0 }
   0x9   :  { %18 = vsyncpa [#allocation5], 0 }
   0xa   :  { %19 = vsyncpa [#allocation16], 0  ;;  %s2662_s30 = smov 0   ;;  %s2664_s10 = smov 0  }
   0xb   :  { %s2666_s11 = smov 0   ;;  %s2668_s12 = smov 0  }
   0xc LB: > { %3230 = sst [smem:[#allocation23_spill]] %s2591_s11  ;;  %s2681_s13 = sadd.s32 4294967295, %s2595_s12   ;;  %s2595_s12 = sphi %s2668_s12, %s3262_s12   ;;  %s2591_s11 = sphi %s2666_s11, %s3264_s11   ;;  %s2587_s10 = sphi %s2664_s10, %s3266_s10   ;;  %s2583_s30 = sphi %s2662_s30, %s3265_s30  }
   0xd   : > { %p129_p0 = scmp.ne.s32.totalorder %s2587_s10, %s2583_s30  ;;  %p3206_p1 = scmp.eq.s32.totalorder %s2681_s13, 0 }
   0xe   : > { %p1805_p2 = scmp.ge.s32.totalorder %s2595_s12, 1  ;;  %p260_p3 = scmp.lt.s32.totalorder %s2595_s12, 4 }
   0xf   : > { %p2690_p5 = por %p3206_p1, %p129_p0  ;;  %s2597_s16 = smov [#allocation3]  }
  0x10   : > { %p2694_p6 = pnand %p1805_p2, %p260_p3  ;;  %s272_s17 = sshll.u32 %s2597_s16, 4  ;;  %s273_s17 = int_to_ptr.vmem [resolvable:$true] %s272_s17 }
  0x11   : > { %s3231_s14 = scalar_select %p2690_p5, 1, 0 }
  0x12   : > { %s3232_s15 = scalar_select %p2694_p6, 1, 0 }
  0x13   : > { %p2157_p7 = pneg %p2694_p6  ;;  %s2707_s19 = sadd.s32 1, %s2595_s12  }
  0x14   : > { %3234 = sst [smem:[#allocation24_spill]] %s2707_s19  ;;  %s116_s20 = sadd.s32 1, %s2591_s11 }
  0x15   : > { %p2702_p8 = pnand %p2157_p7, %p3206_p1  ;;  %s113_s21 = ssub.s32 %s2595_s12, %s2707_s19 }
  0x16   : > { %s3235_s0 = sld [smem:[#allocation26_spill]] }
  0x17   : > { %s3233_s18 = scalar_select %p2702_p8, 1, 0 }
  0x18   : > { %p2720_p10 = pneg %p2702_p8 }
  0x1a   : > { %s3236_s27 = scalar_select %p2720_p10, 1, 0 }
  0x1c   : > { %s2287_s24 = scalar_lea.hbm %s3235_s0, 1024 }
  0x1d   : > { %p2288_p9 = scmp.ne.s32.totalorder %s3235_s0, %s2287_s24  ;;  %p2294_p13 = scmp.lt.u32.totalorder %s2287_s24, %s3235_s0 }
  0x1f   : > { %p2290_p11 = pnand %p2720_p10, %p2288_p9 }
  0x21   : > { %p2291_p12 = pneg %p2290_p11 }
  0x23   : > { %p2296_p0 = pnand %p2294_p13, %p2291_p12 }
  0x25   : > { %2299 = shalt.err (!%p2296_p0)
}
  0x26   : > { %s2300_s30 = scalar_lea.vmem %s273_s17, 1024  ;;  %p2308_p4 = scmp.lt.s32.totalorder %s273_s17, %s273_s17 }
  0x27   : > { %p2301_p2 = scmp.ne.s32.totalorder %s273_s17, %s2300_s30  ;;  %p2309_p1 = scmp.lt.s32.totalorder %s2300_s30, %s2300_s30 }
  0x29   : > { %p2303_p3 = pnand %p2301_p2, %p2720_p10  ;;  %p2310_p5 = por %p2309_p1, %p2308_p4 }
  0x2b   : > { %p2304_p7 = pneg %p2303_p3 }
  0x2d   : > { %p2311_p6 = pnand %p2310_p5, %p2304_p7 }
  0x2f   : > { %2314 = shalt.err (!%p2311_p6)
}
  0x30   : > { %s3212_s16 = smov 64   ;;  %s3214_s22 = smov 4  }
  0x31   : > { %2160 = dma.hbm_to_vmem [thread:$0]  (!%p2702_p8), %s3235_s0, 1024, %s273_s17, [#allocation4], %s3212_s16, %s3212_s16, %s3214_s22  }
  0x32   : > { %p114_p1 = scmp.eq.s32.totalorder %s113_s21, 0  ;;  %p123_p4 = scmp.ne.s32.totalorder %s2591_s11, %s2587_s10 }
  0x33   : > { %p124_p5 = scmp.eq.s32.totalorder %s2595_s12, 0  ;;  %p2184_p6 = scmp.lt.s32.totalorder %s2595_s12, 3 }
  0x34   : > { %s2744_s25 = scalar_select %p114_p1, %s2591_s11, %s116_s20  }
  0x35   : > { %p125_p9 = por %p124_p5, %p123_p4  ;;  %s323_s26 = sand.u32 1, %s2595_s12  }
  0x36   : > { %3237 = sst [smem:[#allocation25_spill]] %s2744_s25  ;;  %s325_s28 = sand.u32 1, %s2591_s11  }
  0x37   : > { %s2748_s29 = sshll.u32 %s325_s28, 6  ;;  %s2751_s30 = sshll.u32 %s2595_s12, 10 }
  0x38   : > { %s3238_s4 = sld [smem:[#allocation28_spill]]  ;;  %s327_s17 = scalar_lea.vmem [#allocation11], %s2748_s29 }
  0x39   : > { %s334_s20 = sshll.u32 %s327_s17, 4  ;;  %p2760_p11 = pnand %p2184_p6, %p125_p9  ;;  %s2764_s20 = int_to_ptr.vmem [resolvable:$true] %s334_s20 }
  0x3a   : > { %s2600_s12 = smov [#allocation6]   ;;  %s2768_s28 = scalar_lea.sflag [#allocation4], %s323_s26 }
  0x3b   : > { %s3239_s21 = scalar_select %p2760_p11, 1, 0 }
  0x3c   : > { %s2766_s24 = sshll.u32 %s2600_s12, 4  ;;  %p2774_p13 = pneg %p2760_p11  ;;  %s286_s24 = int_to_ptr.vmem [resolvable:$true] %s2766_s24 }
  0x3e   : > { %s2757_s23 = scalar_lea.hbm %s3238_s4, %s2751_s30  ;;  %s2320_s22 = scalar_lea.hbm %s3238_s4, 3072 }
  0x3f   : > { %s2315_s9 = scalar_lea.hbm %s2757_s23, 1024  ;;  %p2321_p3 = scmp.lt.u32.totalorder %s2757_s23, %s3238_s4 }
  0x40   : > { %p2316_p12 = scmp.ne.s32.totalorder %s2757_s23, %s2315_s9  ;;  %p2322_p7 = scmp.lt.u32.totalorder %s2320_s22, %s2315_s9 }
  0x41   : > { %s3240_s19 = scalar_select %p2774_p13, 1, 0 }
  0x42   : > { %p2318_p0 = pnand %p2774_p13, %p2316_p12  ;;  %p2323_p1 = por %p2322_p7, %p2321_p3 }
  0x43   : > { %p2324_p4 = scmp.lt.u32.totalorder %s2315_s9, %s2757_s23 }
  0x44   : > { %p2319_p2 = pneg %p2318_p0 }
  0x45   : > { %p2325_p5 = por %p2324_p4, %p2323_p1 }
  0x47   : > { %p2326_p6 = pnand %p2325_p5, %p2319_p2 }
  0x49   : > { %2329 = shalt.err (!%p2326_p6)
}
  0x4a   : > { %s2330_s26 = scalar_lea.vmem %s2764_s20, 1024  ;;  %s2601_s16 = smov [#allocation11]  }
  0x4b   : > { %p2331_p9 = scmp.ne.s32.totalorder %s2764_s20, %s2330_s26  ;;  %s2335_s17 = sshll.u32 %s2601_s16, 4  ;;  %s2336_s17 = int_to_ptr.vmem [resolvable:$false] %s2335_s17 }
  0x4c   : > { %s2337_s0 = scalar_lea.vmem %s2336_s17, 2048  ;;  %p2338_p8 = scmp.lt.s32.totalorder %s2764_s20, %s2336_s17 }
  0x4d   : > { %p2333_p12 = pnand %p2331_p9, %p2774_p13  ;;  %p2339_p10 = scmp.lt.s32.totalorder %s2337_s0, %s2330_s26 }
  0x4f   : > { %p2334_p0 = pneg %p2333_p12  ;;  %p2340_p3 = por %p2339_p10, %p2338_p8 }
  0x51   : > { %p2341_p7 = pnand %p2340_p3, %p2334_p0 }
  0x53   : > { %2344 = shalt.err (!%p2341_p7)
}
  0x54   : > { %s3241_s22 = smov 4   ;;  %s3242_s9 = smov 64  }
  0x55   : > { %2173 = dma.hbm_to_vmem [thread:$0]  (!%p2760_p11), %s2757_s23, 1024, %s2764_s20, %s2768_s28, %s3242_s9, %s3242_s9, %s3241_s22  }
  0x56   : > { %s3243_s1 = sld [smem:[#allocation27_spill]]  ;;  %p3244_p10 = scmp.ne.s32.totalorder %s3236_s27, 0 }
  0x5c   : > { %s2345_s17 = scalar_lea.hbm %s3243_s1, 1024 }
  0x5d   : > { %p2346_p8 = scmp.ne.s32.totalorder %s3243_s1, %s2345_s17  ;;  %p2352_p4 = scmp.lt.u32.totalorder %s2345_s17, %s3243_s1 }
  0x5f   : > { %p2348_p2 = pnand %p2346_p8, %p3244_p10 }
  0x61   : > { %p2349_p1 = pneg %p2348_p2 }
  0x63   : > { %p2354_p5 = pnand %p2352_p4, %p2349_p1 }
  0x65   : > { %2357 = shalt.err (!%p2354_p5)
}
  0x66   : > { %s2358_s11 = scalar_lea.vmem %s286_s24, 1024  ;;  %p2366_p0 = scmp.lt.s32.totalorder %s286_s24, %s286_s24 }
  0x67   : > { %p2359_p6 = scmp.ne.s32.totalorder %s286_s24, %s2358_s11  ;;  %p2367_p3 = scmp.lt.s32.totalorder %s2358_s11, %s2358_s11 }
  0x69   : > { %p2361_p9 = pnand %p2359_p6, %p3244_p10  ;;  %p2368_p7 = por %p2367_p3, %p2366_p0 }
  0x6b   : > { %p2362_p12 = pneg %p2361_p9 }
  0x6d   : > { %p2369_p11 = pnand %p2368_p7, %p2362_p12 }
  0x6f   : > { %2372 = shalt.err (!%p2369_p11)
}
  0x70   : > { %p3245_p8 = scmp.ne.s32.totalorder %s3233_s18, 0  ;;  %s3246_s5 = sld [smem:[#allocation29_spill]] }
  0x71   : > { %s348_s11 = scalar_lea.vmem [#allocation12], %s2748_s29 }
  0x72   : > { %2163 = dma.hbm_to_vmem [thread:$0]  (!%p3245_p8), %s3243_s1, 1024, %s286_s24, [#allocation7], %s3242_s9, %s3242_s9, %s3241_s22  }
  0x73   : > { %s355_s16 = sshll.u32 %s348_s11, 4  ;;  %s2830_s16 = int_to_ptr.vmem [resolvable:$true] %s355_s16 }
  0x76   : > { %s2827_s12 = scalar_lea.hbm %s3246_s5, %s2751_s30  ;;  %s2378_s0 = scalar_lea.hbm %s3246_s5, 3072 }
  0x77   : > { %s2373_s17 = scalar_lea.hbm %s2827_s12, 1024  ;;  %p2379_p4 = scmp.lt.u32.totalorder %s2827_s12, %s3246_s5 }
  0x78   : > { %p2374_p11 = scmp.ne.s32.totalorder %s2827_s12, %s2373_s17  ;;  %p2380_p5 = scmp.lt.u32.totalorder %s2378_s0, %s2373_s17 }
  0x79   : > { %p2382_p9 = scmp.lt.u32.totalorder %s2373_s17, %s2827_s12 }
  0x7a   : > { %p2376_p2 = pnand %p2374_p11, %p2774_p13  ;;  %p2381_p6 = por %p2380_p5, %p2379_p4 }
  0x7c   : > { %p2377_p1 = pneg %p2376_p2  ;;  %p2383_p12 = por %p2382_p9, %p2381_p6 }
  0x7e   : > { %p2384_p0 = pnand %p2383_p12, %p2377_p1 }
  0x80   : > { %2387 = shalt.err (!%p2384_p0)
}
  0x81   : > { %s2388_s23 = scalar_lea.vmem %s2830_s16, 1024  ;;  %s2602_s20 = smov [#allocation12]  }
  0x82   : > { %p2389_p3 = scmp.ne.s32.totalorder %s2830_s16, %s2388_s23  ;;  %s2393_s11 = sshll.u32 %s2602_s20, 4  ;;  %s2394_s11 = int_to_ptr.vmem [resolvable:$false] %s2393_s11 }
  0x83   : > { %s2395_s26 = scalar_lea.vmem %s2394_s11, 2048  ;;  %p2396_p2 = scmp.lt.s32.totalorder %s2830_s16, %s2394_s11 }
  0x84   : > { %p2391_p7 = pnand %p2389_p3, %p2774_p13  ;;  %p2397_p8 = scmp.lt.s32.totalorder %s2395_s26, %s2388_s23 }
  0x86   : > { %p2392_p11 = pneg %p2391_p7  ;;  %p2398_p4 = por %p2397_p8, %p2396_p2 }
  0x88   : > { %p2399_p5 = pnand %p2398_p4, %p2392_p11 }
  0x8a   : > { %2402 = shalt.err (!%p2399_p5)
}
  0x8b   : > { %p3247_p1 = scmp.ne.s32.totalorder %s3239_s21, 0  ;;  %s2603_s17 = smov [#allocation8]  }
  0x8c   : > { %s298_s24 = sshll.u32 %s2603_s17, 4  ;;  %s2604_s0 = smov [#allocation9]   ;;  %s299_s24 = int_to_ptr.vmem [resolvable:$true] %s298_s24 }
  0x8d   : > { %2176 = dma.hbm_to_vmem [thread:$0]  (!%p3247_p1), %s2827_s12, 1024, %s2830_s16, %s2768_s28, %s3242_s9, %s3242_s9, %s3241_s22  }
  0x8e   : > { %s312_s4 = sshll.u32 %s2604_s0, 4  ;;  %s2403_s20 = scalar_lea.hbm %s3198_s2, 1024  ;;  %s313_s4 = int_to_ptr.vmem [resolvable:$true] %s312_s4 }
  0x8f   : > { %p2404_p8 = scmp.ne.s32.totalorder %s3198_s2, %s2403_s20  ;;  %p2410_p12 = scmp.lt.u32.totalorder %s2403_s20, %s3198_s2 }
  0x91   : > { %p2406_p6 = pnand %p2404_p8, %p3244_p10 }
  0x93   : > { %p2407_p9 = pneg %p2406_p6 }
  0x95   : > { %p2412_p0 = pnand %p2410_p12, %p2407_p9 }
  0x97   : > { %2415 = shalt.err (!%p2412_p0)
}
  0x98   : > { %s2416_s12 = scalar_lea.vmem %s299_s24, 1024  ;;  %p2424_p2 = scmp.lt.s32.totalorder %s299_s24, %s299_s24 }
  0x99   : > { %p2417_p3 = scmp.ne.s32.totalorder %s299_s24, %s2416_s12  ;;  %p2425_p4 = scmp.lt.s32.totalorder %s2416_s12, %s2416_s12 }
  0x9b   : > { %p2419_p7 = pnand %p2417_p3, %p3244_p10  ;;  %p2426_p5 = por %p2425_p4, %p2424_p2 }
  0x9d   : > { %p2420_p11 = pneg %p2419_p7 }
  0x9f   : > { %p2427_p1 = pnand %p2426_p5, %p2420_p11 }
  0xa1   : > { %2430 = shalt.err (!%p2427_p1)
}
  0xa2   : > { %p3248_p8 = scmp.ne.s32.totalorder %s3233_s18, 0  ;;  %s2431_s0 = scalar_lea.hbm %s3199_s3, 64 }
  0xa3   : > { %p2432_p6 = scmp.ne.s32.totalorder %s3199_s3, %s2431_s0  ;;  %p2438_p12 = scmp.lt.u32.totalorder %s2431_s0, %s3199_s3 }
  0xa4   : > { %2166 = dma.hbm_to_vmem [thread:$0]  (!%p3248_p8), %s3198_s2, 1024, %s299_s24, [#allocation7], %s3242_s9, %s3242_s9, %s3241_s22  }
  0xa5   : > { %p2434_p1 = pnand %p2432_p6, %p3244_p10 }
  0xa7   : > { %p2435_p9 = pneg %p2434_p1 }
  0xa9   : > { %p2440_p0 = pnand %p2438_p12, %p2435_p9 }
  0xab   : > { %2443 = shalt.err (!%p2440_p0)
}
  0xac   : > { %s2444_s26 = scalar_lea.vmem %s313_s4, 64  ;;  %p2452_p2 = scmp.lt.s32.totalorder %s313_s4, %s313_s4 }
  0xad   : > { %p2445_p3 = scmp.ne.s32.totalorder %s313_s4, %s2444_s26  ;;  %p2453_p4 = scmp.lt.s32.totalorder %s2444_s26, %s2444_s26 }
  0xaf   : > { %p2447_p7 = pnand %p2445_p3, %p3244_p10  ;;  %p2454_p5 = por %p2453_p4, %p2452_p2 }
  0xb1   : > { %p2448_p11 = pneg %p2447_p7 }
  0xb3   : > { %p2455_p13 = pnand %p2454_p5, %p2448_p11 }
  0xb5   : > { %2458 = shalt.err (!%p2455_p13)
}
  0xb6   : > { %2169 = dma.hbm_to_vmem [thread:$0]  (!%p3248_p8), %s3199_s3, 64, %s313_s4, [#allocation10]  }
  0xb7   : > { %s2900_s27 = scalar_lea.hbm %s3202_s6, %s2751_s30  ;;  %s369_s16 = scalar_lea.vmem [#allocation13], %s2748_s29 }
  0xb8   : > { %s376_s17 = sshll.u32 %s369_s16, 4  ;;  %s2459_s18 = scalar_lea.hbm %s2900_s27, 1024  ;;  %s2903_s17 = int_to_ptr.vmem [resolvable:$true] %s376_s17 }
  0xb9   : > { %p2460_p13 = scmp.ne.s32.totalorder %s2900_s27, %s2459_s18  ;;  %p3249_p10 = scmp.ne.s32.totalorder %s3240_s19, 0 }
  0xba   : > { %s2464_s25 = scalar_lea.hbm %s3202_s6, 3072  ;;  %p2465_p8 = scmp.lt.u32.totalorder %s2900_s27, %s3202_s6 }
  0xbb   : > { %p2462_p6 = pnand %p2460_p13, %p3249_p10  ;;  %p2466_p9 = scmp.lt.u32.totalorder %s2464_s25, %s2459_s18 }
  0xbc   : > { %p2468_p0 = scmp.lt.u32.totalorder %s2459_s18, %s2900_s27 }
  0xbd   : > { %p2463_p1 = pneg %p2462_p6  ;;  %p2467_p12 = por %p2466_p9, %p2465_p8 }
  0xbf   : > { %p2469_p3 = por %p2468_p0, %p2467_p12 }
  0xc1   : > { %p2470_p7 = pnand %p2469_p3, %p2463_p1 }
  0xc3   : > { %2473 = shalt.err (!%p2470_p7)
}
  0xc4   : > { %s2474_s29 = scalar_lea.vmem %s2903_s17, 1024  ;;  %s2605_s20 = smov [#allocation13]  }
  0xc5   : > { %p2475_p11 = scmp.ne.s32.totalorder %s2903_s17, %s2474_s29  ;;  %s2479_s11 = sshll.u32 %s2605_s20, 4  ;;  %s2480_s11 = int_to_ptr.vmem [resolvable:$false] %s2479_s11 }
  0xc6   : > { %s2481_s26 = scalar_lea.vmem %s2480_s11, 2048  ;;  %p2482_p5 = scmp.lt.s32.totalorder %s2903_s17, %s2480_s11 }
  0xc7   : > { %p2477_p2 = pnand %p2475_p11, %p3249_p10  ;;  %p2483_p13 = scmp.lt.s32.totalorder %s2481_s26, %s2474_s29 }
  0xc9   : > { %p2478_p4 = pneg %p2477_p2  ;;  %p2484_p6 = por %p2483_p13, %p2482_p5 }
  0xcb   : > { %p2485_p8 = pnand %p2484_p6, %p2478_p4 }
  0xcd   : > { %2488 = shalt.err (!%p2485_p8)
}
  0xce   : > { %p3250_p1 = scmp.ne.s32.totalorder %s3239_s21, 0  ;;  %p3251_p10 = scmp.ne.s32.totalorder %s3232_s15, 0 }
  0xcf   : > { %p3252_p9 = scmp.eq.s32.totalorder (!%p3251_p10), %s2681_s13, 0 }
  0xd0   : > { %2179 = dma.hbm_to_vmem [thread:$0]  (!%p3250_p1), %s2900_s27, 1024, %s2903_s17, %s2768_s28, %s3242_s9, %s3242_s9, %s3241_s22  }
  0xd1   : > { %395 = sbr.rel (%p3251_p10) target bundleno = 1392 (0x570), region = 52 }
  0xd8   : > { %2558 = dma.done.wait (%p3252_p9), [#allocation4], 1024   ;;  %p3253_p12 = pmov %p3252_p9 }
  0xd9   : > { %p3254_p0 = pmov %p3252_p9 }
  0xda   : > { %2560 = vsyncadd (%p3253_p12), [#allocation4], 4294966272 }
  0xdb   : > { %2562 = dma.done.wait (%p3254_p0), [#allocation7], 2048   ;;  %p3255_p3 = pmov %p3254_p0 }
  0xdc   : > { %p3256_p7 = pmov %p3254_p0 }
  0xdd   : > { %2564 = vsyncadd (%p3255_p3), [#allocation7], 4294965248 }
  0xde   : > { %2566 = dma.done.wait (%p3256_p7), [#allocation10], 64   ;;  %p3257_p11 = pmov %p3254_p0 }
  0xdf   : > { %s413_s15 = sand.u32 1, %s2681_s13   ;;  %s415_s21 = sand.u32 1, %s2587_s10  }
  0xe0   : > { %2568 = vsyncadd (%p3257_p11), [#allocation10], 4294967232  ;;  %s1825_s28 = sshll.u32 %s415_s21, 6  ;;  %s414_s19 = scalar_lea.sflag [#allocation4], %s413_s15 }
  0xe1   : > { %s2946_s22 = scalar_lea.vmem [#allocation11], %s1825_s28  ;;  %p3258_p2 = scmp.ne.s32.totalorder %s3231_s14, 0 }
  0xe3   : > { %2570 = dma.done.wait (%p3258_p2), %s414_s19, 3072  }
  0xe4   : > { %2572 = vsyncadd (%p3258_p2), %s414_s19, 4294964224  ;;  %p479_p4 = scmp.lt.s32.totalorder %s2681_s13, 2  ;;  %s2959_s27 = scalar_lea.vmem [#allocation12], %s1825_s28 }
  0xe5   : > { %s2961_s16 = scalar_lea.vmem [#allocation13], %s1825_s28  ;;  %p3259_p5 = scmp.ne.s32.totalorder %s2681_s13, 0 }
  0xe6   : > { %s480_s9 = scalar_select %p479_p4, %s2681_s13, 2 }
  0xe7   : > { %487 = sbr.rel (%p3259_p5) target bundleno = 238 (0xee), region = 84  ;;  %v2237_v0 = vld [vmem:[#allocation6] sm:$0xff] (!%p3259_p5)   ;;  %v2238_v1 = vld [vmem:[#allocation6 + $0x8] sm:$0xff] (!%p3259_p5)   ;;  %v2239_v2 = vld [vmem:[#allocation6 + $0x10] sm:$0xff] (!%p3259_p5)  }
  0xe8   : > { %s1828_s24 = sshll.u32 %s480_s9, 3  ;;  %552 = vst [vmem:[#allocation2] sm:$0xff] (!%p3259_p5), %v2237_v0  ;;  %553 = vst [vmem:[#allocation2 + $0x8] sm:$0xff] (!%p3259_p5), %v2238_v1  ;;  %v2240_v3 = vld [vmem:[#allocation6 + $0x18] sm:$0xff] (!%p3259_p5)   ;;  %v2241_v4 = vld [vmem:[#allocation6 + $0x20] sm:$0xff] (!%p3259_p5)  }
  0xe9   : > { %s2957_s5 = scalar_lea.vmem %s3203_s7, %s1828_s24  ;;  %554 = vst [vmem:[#allocation2 + $0x10] sm:$0xff] (!%p3259_p5), %v2239_v2  ;;  %555 = vst [vmem:[#allocation2 + $0x18] sm:$0xff] (!%p3259_p5), %v2240_v3  ;;  %v2242_v5 = vld [vmem:[#allocation6 + $0x28] sm:$0xff] (!%p3259_p5)   ;;  %v2243_v6 = vld [vmem:[#allocation6 + $0x30] sm:$0xff] (!%p3259_p5)  }
  0xea   : > { %556 = vst [vmem:[#allocation2 + $0x20] sm:$0xff] (!%p3259_p5), %v2241_v4  ;;  %557 = vst [vmem:[#allocation2 + $0x28] sm:$0xff] (!%p3259_p5), %v2242_v5  ;;  %v2244_v7 = vld [vmem:[#allocation6 + $0x38] sm:$0xff] (!%p3259_p5)  }
  0xeb   : > { %558 = vst [vmem:[#allocation2 + $0x30] sm:$0xff] (!%p3259_p5), %v2243_v6  ;;  %559 = vst [vmem:[#allocation2 + $0x38] sm:$0xff] (!%p3259_p5), %v2244_v7 }
  0xee PF: > { %v2245_v8 = vld [vmem:[%s2946_s22] sm:$0xff]   ;;  %v2246_v9 = vld [vmem:[%s2946_s22 + $0x8] sm:$0xff]   ;;  %v2247_v10 = vld [vmem:[%s2946_s22 + $0x10] sm:$0xff]   ;;  %p1880_p13 = scmp.ne.s32.totalorder %s2681_s13, 2 }
  0xef   : > { %1963 = vmatprep.subr.bf16.mxu0 %v2245_v8  ;;  %v2248_v11 = vld [vmem:[%s2946_s22 + $0x18] sm:$0xff]   ;;  %v2249_v13 = vld [vmem:[%s2946_s22 + $0x20] sm:$0xff]   ;;  %v2250_v14 = vld [vmem:[%s2946_s22 + $0x28] sm:$0xff]   ;;  %vm2607_vm0 = vmmov (!%p1880_p13), 0  }
  0xf0   : > { %1964 = vmatpush3.bf16.msra.mxu0 %v2245_v8  ;;  %v2253_v12 = vld [vmem:[#allocation8] sm:$0xff]   ;;  %v2251_v15 = vld [vmem:[%s2946_s22 + $0x30] sm:$0xff]   ;;  %v2270_v18 = vld [vmem:[%s2959_s27 + $0x8] sm:$0xff]  }
  0xf1   : > { %1965 = vmatprep.subr.bf16.mxu0 %v2246_v9  ;;  %1979 = vmatprep.mubr.bf16.mxu0 %v2253_v12  ;;  %v2252_v16 = vld [vmem:[%s2946_s22 + $0x38] sm:$0xff]   ;;  %v2269_v17 = vld [vmem:[%s2959_s27] sm:$0xff]   ;;  %v2255_v22 = vld [vmem:[#allocation8 + $0x10] sm:$0xff]  }
  0xf2   : > { %v560_v19 = vld [vmem:[#allocation2] sm:$0xff]  ;;  %2027 = vmatprep.subr.bf16.mxu1 %v2269_v17  ;;  %v2254_v20 = vld [vmem:[#allocation8 + $0x8] sm:$0xff]   ;;  %v2271_v23 = vld [vmem:[%s2959_s27 + $0x10] sm:$0xff]  }
  0xf3   : > { %2028 = vmatpush3.bf16.msra.mxu1 %v2269_v17  ;;  %v561_v21 = vld [vmem:[#allocation2 + $0x8] sm:$0xff]  ;;  %v2272_v24 = vld [vmem:[%s2959_s27 + $0x18] sm:$0xff]   ;;  %v562_v25 = vld [vmem:[#allocation2 + $0x10] sm:$0xff] }
  0xf4   : > { %1966 = vmatpush3.bf16.msra.mxu0 %v2246_v9  ;;  %2029 = vmatprep.subr.bf16.mxu1 %v2270_v18  ;;  %v2256_v26 = vld [vmem:[#allocation8 + $0x18] sm:$0xff]   ;;  %v2257_v27 = vld [vmem:[#allocation8 + $0x20] sm:$0xff]   ;;  %v2274_v30 = vld [vmem:[%s2959_s27 + $0x28] sm:$0xff]  }
  0xf5   : > { %1967 = vmatprep.subr.bf16.mxu0 %v2247_v10  ;;  %v2273_v28 = vld [vmem:[%s2959_s27 + $0x20] sm:$0xff]   ;;  %v563_v29 = vld [vmem:[#allocation2 + $0x18] sm:$0xff]  ;;  %v2259_v33 = vld [vmem:[#allocation8 + $0x30] sm:$0xff]  }
  0xf6   : > { %v564_v31 = vld [vmem:[#allocation2 + $0x20] sm:$0xff]  ;;  %v2258_v32 = vld [vmem:[#allocation8 + $0x28] sm:$0xff]   ;;  %v2275_v34 = vld [vmem:[%s2959_s27 + $0x30] sm:$0xff]  }
  0xf7   : > { %2030 = vmatpush3.bf16.msra.mxu1 %v2270_v18  ;;  %v565_v35 = vld [vmem:[#allocation2 + $0x28] sm:$0xff]  ;;  %v566_v36 = vld [vmem:[#allocation2 + $0x30] sm:$0xff]  ;;  %v2260_v37 = vld [vmem:[#allocation8 + $0x38] sm:$0xff]  }
  0xf8   : > { %1968 = vmatpush3.bf16.msra.mxu0 %v2247_v10  ;;  %2031 = vmatprep.subr.bf16.mxu1 %v2271_v23  ;;  %v2261_v38 = vld [vmem:[#allocation3] sm:$0xff]   ;;  %v567_v39 = vld [vmem:[#allocation2 + $0x38] sm:$0xff]  ;;  %v2262_v40 = vld [vmem:[#allocation3 + $0x8] sm:$0xff]  }
  0xf9   : > { %1969 = vmatprep.subr.bf16.mxu0 %v2248_v11  ;;  %v2263_v41 = vld [vmem:[#allocation3 + $0x10] sm:$0xff]   ;;  %v2264_v42 = vld [vmem:[#allocation3 + $0x18] sm:$0xff]   ;;  %v2265_v43 = vld [vmem:[#allocation3 + $0x20] sm:$0xff]  }
  0xfa   : > { %v2266_v44 = vld [vmem:[#allocation3 + $0x28] sm:$0xff]   ;;  %v2267_v45 = vld [vmem:[#allocation3 + $0x30] sm:$0xff]   ;;  %v2268_v46 = vld [vmem:[#allocation3 + $0x38] sm:$0xff]  }
  0xfb   : > { %2032 = vmatpush3.bf16.msra.mxu1 %v2271_v23  ;;  %v2276_v47 = vld [vmem:[%s2959_s27 + $0x38] sm:$0xff]   ;;  %v2277_v48 = vld [vmem:[%s2961_s16] sm:$0xff]   ;;  %v2278_v55 = vld [vmem:[%s2961_s16 + $0x8] sm:$0xff]  }
  0xfc   : > { %1970 = vmatpush3.bf16.msra.mxu0 %v2248_v11  ;;  %2033 = vmatprep.subr.bf16.mxu1 %v2272_v24  ;;  %v2279_v58 = vld [vmem:[%s2961_s16 + $0x10] sm:$0xff]   ;;  %v2280_v63 = vld [vmem:[%s2961_s16 + $0x18] sm:$0xff]   ;;  %v2281_v2 = vld [vmem:[%s2961_s16 + $0x20] sm:$0xff]  }
  0xfd   : > { %1971 = vmatprep.subr.bf16.mxu0 %v2249_v13  ;;  %v2282_v7 = vld [vmem:[%s2961_s16 + $0x28] sm:$0xff]  }
  0xff   : > { %2034 = vmatpush3.bf16.msra.mxu1 %v2272_v24 }
 0x100   : > { %1972 = vmatpush3.bf16.msra.mxu0 %v2249_v13  ;;  %2035 = vmatprep.subr.bf16.mxu1 %v2273_v28 }
 0x101   : > { %1973 = vmatprep.subr.bf16.mxu0 %v2250_v14 }
 0x103   : > { %2036 = vmatpush3.bf16.msra.mxu1 %v2273_v28 }
 0x104   : > { %1974 = vmatpush3.bf16.msra.mxu0 %v2250_v14  ;;  %2037 = vmatprep.subr.bf16.mxu1 %v2274_v30  ;;  %v2283_v14 = vld [vmem:[%s2961_s16 + $0x30] sm:$0xff]  }
 0x105   : > { %1975 = vmatprep.subr.bf16.mxu0 %v2251_v15 }
 0x107   : > { %2038 = vmatpush3.bf16.msra.mxu1 %v2274_v30 }
 0x108   : > { %1976 = vmatpush3.bf16.msra.mxu0 %v2251_v15  ;;  %2039 = vmatprep.subr.bf16.mxu1 %v2275_v34  ;;  %v2284_v15 = vld [vmem:[%s2961_s16 + $0x38] sm:$0xff]  }
 0x109   : > { %1977 = vmatprep.subr.bf16.mxu0 %v2252_v16 }
 0x10b   : > { %2040 = vmatpush3.bf16.msra.mxu1 %v2275_v34 }
 0x10c   : > { %1978 = vmatpush3.bf16.msra.mxu0 %v2252_v16  ;;  %2041 = vmatprep.subr.bf16.mxu1 %v2276_v47  ;;  %v1862_v16 = vld [vmem:[%s2957_s5] ss:$0 sm:$0xff] }
 0x10d   : > { %1995 = vmatprep.subr.bf16.mxu0 %v560_v19 }
 0x10f   : > { %1980 = vmatmul.mubr.bf16.vlgmr.msra.gmra.mrb[0].mxu0 %v2254_v20  ;;  %2042 = vmatpush3.bf16.msra.mxu1 %v2276_v47 }
 0x110   : > { %1996 = vmatpush3.bf16.msra.mxu0 %v560_v19  ;;  %1983 = vmatprep.mubr.bf16.mxu0 %v2255_v22 }
 0x111   : > { %1997 = vmatprep.subr.bf16.mxu0 %v561_v21  ;;  %2059 = vmatprep.subr.bf16.mxu1 %v2277_v48 }
 0x114   : > { %1998 = vmatpush3.bf16.msra.mxu0 %v561_v21 }
 0x115   : > { %1999 = vmatprep.subr.bf16.mxu0 %v562_v25 }
 0x117   : > { %1984 = vmatmul.mubr.bf16.gmra.mrb[4].mxu0 %v2256_v26 }
 0x118   : > { %2000 = vmatpush3.bf16.msra.mxu0 %v562_v25  ;;  %1987 = vmatprep.mubr.bf16.mxu0 %v2257_v27 }
 0x119   : > { %2001 = vmatprep.subr.bf16.mxu0 %v563_v29 }
 0x11c   : > { %2002 = vmatpush3.bf16.msra.mxu0 %v563_v29 }
 0x11d   : > { %2003 = vmatprep.subr.bf16.mxu0 %v564_v31 }
 0x11f   : > { %1988 = vmatmul.mubr.bf16.gmra.mrb[8].mxu0 %v2258_v32 }
 0x120   : > { %2004 = vmatpush3.bf16.msra.mxu0 %v564_v31  ;;  %1991 = vmatprep.mubr.bf16.mxu0 %v2259_v33 }
 0x121   : > { %2005 = vmatprep.subr.bf16.mxu0 %v565_v35 }
 0x124   : > { %2006 = vmatpush3.bf16.msra.mxu0 %v565_v35 }
 0x125   : > { %2007 = vmatprep.subr.bf16.mxu0 %v566_v36 }
 0x127   : > { %1992 = vmatmul.mubr.bf16.gmra.mrb[12].mxu0 %v2260_v37 }
 0x128   : > { %2008 = vmatpush3.bf16.msra.mxu0 %v566_v36  ;;  %2011 = vmatprep.mubr.bf16.mxu0 %v2261_v38 }
 0x129   : > { %2009 = vmatprep.subr.bf16.mxu0 %v567_v39 }
 0x12c   : > { %2010 = vmatpush3.bf16.msra.mxu0 %v567_v39 }
 0x12f   : > { %2012 = vmatmul.mubr.bf16.vlgmr.msra.gmra.mrb[0].mxu0 %v2262_v40 }
 0x130   : > { %2015 = vmatprep.mubr.bf16.mxu0 %v2263_v41 }
 0x137   : > { %2016 = vmatmul.mubr.bf16.gmra.mrb[4].mxu0 %v2264_v42 }
 0x138   : > { %2019 = vmatprep.mubr.bf16.mxu0 %v2265_v43 }
 0x13f   : > { %2020 = vmatmul.mubr.bf16.gmra.mrb[8].mxu0 %v2266_v44 }
 0x140   : > { %2023 = vmatprep.mubr.bf16.mxu0 %v2267_v45 }
 0x147   : > { %2024 = vmatmul.mubr.bf16.gmra.mrb[12].mxu0 %v2268_v46 }
 0x202   : > { %v2013_v49 = vpop.f32.mrb[0].mxu0 }
 0x203   : > { %v891_v50 = vpop.f32.mrb[1].mxu0 }
 0x204   : > { %v2014_v51 = vpop.f32.mrb[2].mxu0 }
 0x205   : > { %v958_v52 = vpack.c.bf16 %v2014_v51, %v2013_v49  ;;  %v894_v53 = vpop.f32.mrb[3].mxu0 }
 0x206   : > { %v957_v54 = vpack.c.bf16 %v894_v53, %v891_v50 }
 0x208   : > { %2043 = vmatprep.mubr.bf16.mxu1 %v957_v54 }
 0x209   : > { %2044 = vmatmul.mubr.bf16.vlgmr.msra.gmra.mrb[0].mxu1 %v958_v52 }
 0x20a   : > { %v2017_v56 = vpop.f32.mrb[4].mxu0  ;;  %2060 = vmatpush3.bf16.msra.mxu1 %v2277_v48 }
 0x20b   : > { %v907_v57 = vpop.f32.mrb[5].mxu0  ;;  %2061 = vmatprep.subr.bf16.mxu1 %v2278_v55 }
 0x20c   : > { %v2018_v59 = vpop.f32.mrb[6].mxu0 }
 0x20d   : > { %v960_v60 = vpack.c.bf16 %v2018_v59, %v2017_v56  ;;  %v910_v61 = vpop.f32.mrb[7].mxu0 }
 0x20e   : > { %v959_v62 = vpack.c.bf16 %v910_v61, %v907_v57  ;;  %2062 = vmatpush3.bf16.msra.mxu1 %v2278_v55 }
 0x20f   : > { %2063 = vmatprep.subr.bf16.mxu1 %v2279_v58 }
 0x210   : > { %2047 = vmatprep.mubr.bf16.mxu1 %v959_v62 }
 0x211   : > { %2048 = vmatmul.mubr.bf16.gmra.mrb[4].mxu1 %v960_v60 }
 0x212   : > { %v2021_v0 = vpop.f32.mrb[8].mxu0  ;;  %2064 = vmatpush3.bf16.msra.mxu1 %v2279_v58 }
 0x213   : > { %v923_v1 = vpop.f32.mrb[9].mxu0  ;;  %2065 = vmatprep.subr.bf16.mxu1 %v2280_v63 }
 0x214   : > { %v2022_v3 = vpop.f32.mrb[10].mxu0 }
 0x215   : > { %v962_v4 = vpack.c.bf16 %v2022_v3, %v2021_v0  ;;  %v926_v5 = vpop.f32.mrb[11].mxu0 }
 0x216   : > { %v961_v6 = vpack.c.bf16 %v926_v5, %v923_v1  ;;  %2066 = vmatpush3.bf16.msra.mxu1 %v2280_v63 }
 0x217   : > { %2067 = vmatprep.subr.bf16.mxu1 %v2281_v2 }
 0x218   : > { %2051 = vmatprep.mubr.bf16.mxu1 %v961_v6 }
 0x219   : > { %2052 = vmatmul.mubr.bf16.gmra.mrb[8].mxu1 %v962_v4 }
 0x21a   : > { %v2025_v8 = vpop.f32.mrb[12].mxu0  ;;  %2068 = vmatpush3.bf16.msra.mxu1 %v2281_v2 }
 0x21b   : > { %v939_v9 = vpop.f32.mrb[13].mxu0  ;;  %2069 = vmatprep.subr.bf16.mxu1 %v2282_v7 }
 0x21c   : > { %v2026_v10 = vpop.f32.mrb[14].mxu0 }
 0x21d   : > { %v964_v11 = vpack.c.bf16 %v2026_v10, %v2025_v8  ;;  %v942_v12 = vpop.f32.mrb[15].mxu0 }
 0x21e   : > { %v963_v13 = vpack.c.bf16 %v942_v12, %v939_v9  ;;  %2070 = vmatpush3.bf16.msra.mxu1 %v2282_v7 }
 0x21f   : > { %2071 = vmatprep.subr.bf16.mxu1 %v2283_v14 }
 0x220   : > { %2055 = vmatprep.mubr.bf16.mxu1 %v963_v13 }
 0x221   : > { %2056 = vmatmul.mubr.bf16.gmra.mrb[12].mxu1 %v964_v11 }
 0x222   : > { %2072 = vmatpush3.bf16.msra.mxu1 %v2283_v14 }
 0x223   : > { %2073 = vmatprep.subr.bf16.mxu1 %v2284_v15 }
 0x226   : > { %2074 = vmatpush3.bf16.msra.mxu1 %v2284_v15 }
 0x2dc   : > { %v2045_v17 = vpop.f32.mrb[0].mxu1 }
 0x2dd   : > { %v1076_v18 = vadd.f32 %v2045_v17, %v1862_v16  ;;  %v1067_v19 = vpop.f32.mrb[1].mxu1 }
 0x2de   : > { %v1068_v20 = vadd.f32 %v1862_v16, %v1067_v19  ;;  %v2046_v21 = vpop.f32.mrb[2].mxu1 }
 0x2df   : > { %v1079_v22 = vadd.f32 %v2046_v21, %v1862_v16  ;;  %v1070_v23 = vpop.f32.mrb[3].mxu1  ;;  %v1132_v25 = vmax.f32 %v1076_v18, 0.0 }
 0x2e0   : > { %v1071_v24 = vadd.f32 %v1862_v16, %v1070_v23  ;;  %v1130_v27 = vmax.f32 %v1068_v20, 0.0 }
 0x2e1   : > { %v1133_v26 = vmax.f32 %v1079_v22, 0.0 }
 0x2e2   : > { %v1131_v28 = vmax.f32 %v1071_v24, 0.0 }
 0x2e3   : > { %v1147_v29 = vpack.c.bf16 %v1133_v26, %v1132_v25 }
 0x2e4   : > { %v1146_v30 = vpack.c.bf16 %v1131_v28, %v1130_v27  ;;  %v2049_v31 = vpop.f32.mrb[4].mxu1 }
 0x2e5   : > { %v1092_v32 = vadd.f32 %v2049_v31, %v1862_v16  ;;  %v1083_v33 = vpop.f32.mrb[5].mxu1 }
 0x2e6   : > { %v1084_v34 = vadd.f32 %v1862_v16, %v1083_v33  ;;  %v2050_v35 = vpop.f32.mrb[6].mxu1  ;;  %2075 = vmatprep.mubr.bf16.mxu1 %v1146_v30 }
 0x2e7   : > { %v1095_v36 = vadd.f32 %v2050_v35, %v1862_v16  ;;  %v1086_v37 = vpop.f32.mrb[7].mxu1  ;;  %2076 = vmatmul.mubr.bf16.vlgmr.msra.gmra.mrb[16].mxu1 %v1147_v29  ;;  %v1136_v39 = vmax.f32 %v1092_v32, 0.0 }
 0x2e8   : > { %v1087_v38 = vadd.f32 %v1862_v16, %v1086_v37  ;;  %v1134_v41 = vmax.f32 %v1084_v34, 0.0 }
 0x2e9   : > { %v1137_v40 = vmax.f32 %v1095_v36, 0.0 }
 0x2ea   : > { %v1135_v42 = vmax.f32 %v1087_v38, 0.0 }
 0x2eb   : > { %v1149_v43 = vpack.c.bf16 %v1137_v40, %v1136_v39 }
 0x2ec   : > { %v1148_v44 = vpack.c.bf16 %v1135_v42, %v1134_v41  ;;  %v2053_v45 = vpop.f32.mrb[8].mxu1 }
 0x2ed   : > { %v1108_v46 = vadd.f32 %v2053_v45, %v1862_v16  ;;  %v1099_v47 = vpop.f32.mrb[9].mxu1 }
 0x2ee   : > { %v1100_v48 = vadd.f32 %v1862_v16, %v1099_v47  ;;  %v2054_v49 = vpop.f32.mrb[10].mxu1  ;;  %2079 = vmatprep.mubr.bf16.mxu1 %v1148_v44 }
 0x2ef   : > { %v1111_v50 = vadd.f32 %v2054_v49, %v1862_v16  ;;  %v1102_v51 = vpop.f32.mrb[11].mxu1  ;;  %2080 = vmatmul.mubr.bf16.gmra.mrb[20].mxu1 %v1149_v43  ;;  %v1140_v53 = vmax.f32 %v1108_v46, 0.0 }
 0x2f0   : > { %v1103_v52 = vadd.f32 %v1862_v16, %v1102_v51  ;;  %v1138_v55 = vmax.f32 %v1100_v48, 0.0 }
 0x2f1   : > { %v1141_v54 = vmax.f32 %v1111_v50, 0.0 }
 0x2f2   : > { %v1139_v56 = vmax.f32 %v1103_v52, 0.0 }
 0x2f3   : > { %v1151_v57 = vpack.c.bf16 %v1141_v54, %v1140_v53 }
 0x2f4   : > { %v1150_v58 = vpack.c.bf16 %v1139_v56, %v1138_v55  ;;  %v2057_v59 = vpop.f32.mrb[12].mxu1 }
 0x2f5   : > { %v1124_v60 = vadd.f32 %v2057_v59, %v1862_v16  ;;  %v1115_v61 = vpop.f32.mrb[13].mxu1 }
 0x2f6   : > { %v1116_v62 = vadd.f32 %v1862_v16, %v1115_v61  ;;  %v2058_v63 = vpop.f32.mrb[14].mxu1  ;;  %2083 = vmatprep.mubr.bf16.mxu1 %v1150_v58 }
 0x2f7   : > { %v1127_v0 = vadd.f32 %v2058_v63, %v1862_v16  ;;  %v1118_v1 = vpop.f32.mrb[15].mxu1  ;;  %2084 = vmatmul.mubr.bf16.gmra.mrb[24].mxu1 %v1151_v57  ;;  %v1144_v3 = vmax.f32 %v1124_v60, 0.0 }
 0x2f8   : > { %v1119_v2 = vadd.f32 %v1862_v16, %v1118_v1  ;;  %v1142_v5 = vmax.f32 %v1116_v62, 0.0 }
 0x2f9   : > { %v1145_v4 = vmax.f32 %v1127_v0, 0.0 }
 0x2fa   : > { %v1143_v6 = vmax.f32 %v1119_v2, 0.0 }
 0x2fb   : > { %v1153_v7 = vpack.c.bf16 %v1145_v4, %v1144_v3 }
 0x2fc   : > { %v1152_v8 = vpack.c.bf16 %v1143_v6, %v1142_v5 }
 0x2fe   : > { %2087 = vmatprep.mubr.bf16.mxu1 %v1152_v8 }
 0x2ff   : > { %2088 = vmatmul.mubr.bf16.gmra.mrb[28].mxu1 %v1153_v7 }
 0x3ba   : > { %v2077_v9 = vpop.f32.mrb[16].mxu1 }
 0x3bb   : > { %v1252_v10 = vpop.f32.mrb[17].mxu1  ;;  %v1382_v14 = vmul.f32 0.0, %v2077_v9 }
 0x3bc   : > { %v2078_v11 = vpop.f32.mrb[18].mxu1 }
 0x3bd   : > { %v1255_v12 = vpop.f32.mrb[19].mxu1  ;;  %v1383_v17 = vmul.f32 0.0, %v2078_v11 }
 0x3be   : > { %v1381_v13 = vmul.f32 0.0, %v1255_v12 }
 0x3c0   : > { %v1396_v15 = vadd.f32 %v1381_v13, %v1252_v10 }
 0x3c2   : > { %v1397_v18 = vadd.f32 %v1396_v15, %v1382_v14  ;;  %v2081_v19 = vpop.f32.mrb[20].mxu1 }
 0x3c3   : > { %v1268_v20 = vpop.f32.mrb[21].mxu1  ;;  %v1386_v26 = vmul.f32 0.0, %v2081_v19 }
 0x3c4   : > { %v1384_v16 = vmul.f32 0.0, %v1268_v20  ;;  %v1398_v21 = vadd.f32 %v1397_v18, %v1383_v17  ;;  %v2082_v22 = vpop.f32.mrb[22].mxu1 }
 0x3c5   : > { %v1271_v23 = vpop.f32.mrb[23].mxu1  ;;  %v1387_v28 = vmul.f32 0.0, %v2082_v22 }
 0x3c6   : > { %v1399_v24 = vadd.f32 %v1398_v21, %v1384_v16  ;;  %v1385_v25 = vmul.f32 0.0, %v1271_v23 }
 0x3c8   : > { %v1400_v27 = vadd.f32 %v1399_v24, %v1385_v25 }
 0x3ca   : > { %v1401_v29 = vadd.f32 %v1400_v27, %v1386_v26  ;;  %v2085_v30 = vpop.f32.mrb[24].mxu1 }
 0x3cb   : > { %v1284_v31 = vpop.f32.mrb[25].mxu1  ;;  %v1390_v38 = vmul.f32 0.0, %v2085_v30 }
 0x3cc   : > { %v1388_v32 = vmul.f32 0.0, %v1284_v31  ;;  %v1402_v33 = vadd.f32 %v1401_v29, %v1387_v28  ;;  %v2086_v34 = vpop.f32.mrb[26].mxu1 }
 0x3cd   : > { %v1287_v35 = vpop.f32.mrb[27].mxu1  ;;  %v1391_v40 = vmul.f32 0.0, %v2086_v34 }
 0x3ce   : > { %v1403_v36 = vadd.f32 %v1402_v33, %v1388_v32  ;;  %v1389_v37 = vmul.f32 0.0, %v1287_v35 }
 0x3d0   : > { %v1404_v39 = vadd.f32 %v1403_v36, %v1389_v37 }
 0x3d2   : > { %v1405_v41 = vadd.f32 %v1404_v39, %v1390_v38  ;;  %v2089_v42 = vpop.f32.mrb[28].mxu1 }
 0x3d3   : > { %v1300_v43 = vpop.f32.mrb[29].mxu1  ;;  %v1394_v50 = vmul.f32 0.0, %v2089_v42 }
 0x3d4   : > { %v1392_v44 = vmul.f32 0.0, %v1300_v43  ;;  %v1406_v45 = vadd.f32 %v1405_v41, %v1391_v40  ;;  %v2090_v46 = vpop.f32.mrb[30].mxu1 }
 0x3d5   : > { %v1303_v47 = vpop.f32.mrb[31].mxu1  ;;  %v1395_v52 = vmul.f32 0.0, %v2090_v46 }
 0x3d6   : > { %v1407_v48 = vadd.f32 %v1406_v45, %v1392_v44  ;;  %v1393_v49 = vmul.f32 0.0, %v1303_v47 }
 0x3d8   : > { %v1408_v51 = vadd.f32 %v1407_v48, %v1393_v49 }
 0x3da   : > { %v1409_v53 = vadd.f32 %v1408_v51, %v1394_v50 }
 0x3dc   : > { %v1410_v54 = vadd.f32 %v1409_v53, %v1395_v52 }
 0x3de   : > { %v1411_v55 = vrot.slane %v1410_v54, 4 }
 0x3e0   : > { %v1412_v56 = vadd.f32 %v1411_v55, %v1410_v54 }
 0x3e2   : > { %v1413_v57 = vrot.slane %v1412_v56, 2 }
 0x3e4   : > { %v1414_v58 = vadd.f32 %v1413_v57, %v1412_v56 }
 0x3e6   : > { %v1415_v59 = vrot.slane %v1414_v58, 1 }
 0x3e8   : > { %v1416_v60 = vadd.f32 %v1415_v59, %v1414_v58 }
 0x3ea   : > { %v1417_v61 = vmul.f32 0.125, %v1416_v60 }
 0x3ec   : > { %v2990_v62 = vsub.f32 %v1252_v10, %v1417_v61  ;;  %v2992_v63 = vsub.f32 %v1255_v12, %v1417_v61  ;;  %v2994_v0 = vsub.f32 %v2077_v9, %v1417_v61  ;;  %v2996_v1 = vsub.f32 %v2078_v11, %v1417_v61 }
 0x3ed   : > { %v2998_v2 = vsub.f32 %v1268_v20, %v1417_v61  ;;  %v3000_v3 = vsub.f32 %v1271_v23, %v1417_v61  ;;  %v3002_v4 = vsub.f32 %v2081_v19, %v1417_v61  ;;  %v3004_v5 = vsub.f32 %v2082_v22, %v1417_v61 }
 0x3ee   : > { %v3006_v6 = vsub.f32 %v1284_v31, %v1417_v61  ;;  %v3008_v7 = vsub.f32 %v1287_v35, %v1417_v61  ;;  %v3010_v8 = vsub.f32 %v2085_v30, %v1417_v61  ;;  %v3012_v10 = vsub.f32 %v2086_v34, %v1417_v61 }
 0x3ef   : > { %v3014_v9 = vsub.f32 %v1300_v43, %v1417_v61  ;;  %v3016_v11 = vsub.f32 %v1303_v47, %v1417_v61  ;;  %v3018_v12 = vsub.f32 %v2089_v42, %v1417_v61  ;;  %v3020_v13 = vsub.f32 %v2090_v46, %v1417_v61 }
 0x3f0   : > { %v1435_v14 = vmul.f32 0.0, %v2992_v63  ;;  %v1436_v15 = vmul.f32 0.0, %v2994_v0  ;;  %v1437_v18 = vmul.f32 0.0, %v2996_v1  ;;  %v1450_v19 = vmul.f32 %v2990_v62, %v2990_v62 }
 0x3f1   : > { %v1438_v20 = vmul.f32 0.0, %v2998_v2  ;;  %v1439_v22 = vmul.f32 0.0, %v3000_v3  ;;  %v1440_v25 = vmul.f32 0.0, %v3002_v4  ;;  %v1441_v28 = vmul.f32 0.0, %v3004_v5 }
 0x3f2   : > { %v1451_v17 = vmul.f32 %v1435_v14, %v1435_v14  ;;  %v1452_v16 = vmul.f32 %v1436_v15, %v1436_v15  ;;  %v1453_v23 = vmul.f32 %v1437_v18, %v1437_v18  ;;  %v1442_v31 = vmul.f32 0.0, %v3006_v6 }
 0x3f3   : > { %v1454_v26 = vmul.f32 %v1438_v20, %v1438_v20  ;;  %v1455_v29 = vmul.f32 %v1439_v22, %v1439_v22  ;;  %v1456_v32 = vmul.f32 %v1440_v25, %v1440_v25  ;;  %v1443_v34 = vmul.f32 0.0, %v3008_v7  ;;  %v955_v22 = vld [vmem:[%s2957_s5 + $0x1] sm:$0x1] }
 0x3f4   : > { %v1466_v21 = vadd.f32 %v1451_v17, %v1450_v19  ;;  %v1457_v35 = vmul.f32 %v1441_v28, %v1441_v28  ;;  %v1444_v37 = vmul.f32 0.0, %v3010_v8  ;;  %v1458_v38 = vmul.f32 %v1442_v31, %v1442_v31  ;;  %v1879_v31 = vld [vmem:[%s2957_s5 + $0x2] ss:$0 sm:$0xff] }
 0x3f5   : > { %v1445_v40 = vmul.f32 0.0, %v3012_v10  ;;  %v1459_v41 = vmul.f32 %v1443_v34, %v1443_v34  ;;  %v1446_v43 = vmul.f32 0.0, %v3014_v9  ;;  %v1447_v46 = vmul.f32 0.0, %v3016_v11 }
 0x3f6   : > { %v1467_v24 = vadd.f32 %v1466_v21, %v1452_v16  ;;  %v1460_v44 = vmul.f32 %v1444_v37, %v1444_v37  ;;  %v1448_v49 = vmul.f32 0.0, %v3018_v12  ;;  %v1449_v52 = vmul.f32 0.0, %v3020_v13 }
 0x3f7   : > { %v1461_v47 = vmul.f32 %v1445_v40, %v1445_v40  ;;  %v1462_v50 = vmul.f32 %v1446_v43, %v1446_v43  ;;  %v1463_v53 = vmul.f32 %v1447_v46, %v1447_v46  ;;  %v1491_v16 = vlaneseq }
 0x3f8   : > { %v1468_v27 = vadd.f32 %v1467_v24, %v1453_v23  ;;  %v1464_v55 = vmul.f32 %v1448_v49, %v1448_v49  ;;  %v1465_v57 = vmul.f32 %v1449_v52, %v1449_v52 }
 0x3f9   : > { %v1492_v21 = vshrl.u32 %v1491_v16, 7 }
 0x3fa   : > { %v1469_v30 = vadd.f32 %v1468_v27, %v1454_v26 }
 0x3fb   : > { %v1493_v23 = vsub.s32 0, %v1492_v21  ;;  %v2606_v21 = vmov (!%p1880_p13), 0.0  }
 0x3fc   : > { %v1470_v33 = vadd.f32 %v1469_v30, %v1455_v29  ;;  %2091 = vmatprep.subr.bf16.mxu0 (!%p1880_p13), %v2606_v21  ;;  %2107 = vmatprep.mubr.msk.bf16.mxu0 (!%p1880_p13), %vm2607_vm0, %v2606_v21 }
 0x3fe   : > { %v1471_v36 = vadd.f32 %v1470_v33, %v1456_v32 }
 0x400   : > { %v1472_v39 = vadd.f32 %v1471_v36, %v1457_v35 }
 0x402   : > { %v1473_v42 = vadd.f32 %v1472_v39, %v1458_v38 }
 0x404   : > { %v1474_v45 = vadd.f32 %v1473_v42, %v1459_v41 }
 0x406   : > { %v1475_v48 = vadd.f32 %v1474_v45, %v1460_v44 }
 0x408   : > { %v1476_v51 = vadd.f32 %v1475_v48, %v1461_v47 }
 0x40a   : > { %v1477_v54 = vadd.f32 %v1476_v51, %v1462_v50 }
 0x40c   : > { %v1478_v56 = vadd.f32 %v1477_v54, %v1463_v53 }
 0x40e   : > { %v1479_v58 = vadd.f32 %v1478_v56, %v1464_v55 }
 0x410   : > { %v1480_v59 = vadd.f32 %v1479_v58, %v1465_v57 }
 0x412   : > { %v1481_v60 = vrot.slane %v1480_v59, 4 }
 0x414   : > { %v1482_v61 = vadd.f32 %v1481_v60, %v1480_v59 }
 0x416   : > { %v1483_v14 = vrot.slane %v1482_v61, 2 }
 0x418   : > { %v1484_v15 = vadd.f32 %v1483_v14, %v1482_v61 }
 0x41a   : > { %v1485_v17 = vrot.slane %v1484_v15, 1 }
 0x41c   : > { %v1486_v18 = vadd.f32 %v1485_v17, %v1484_v15 }
 0x41e   : > { %v1487_v19 = vmul.f32 0.125, %v1486_v18 }
 0x420   : > { %v1488_v20 = vadd.f32 1e-05, %v1487_v19 }
 0x422   : > { %2285 = vrsqrt.f32 %v1488_v20 }
 0x42c   : > { %v2286_v24 = vpop.eup %2285 }
 0x42d   : > { %v1490_v25 = vmul.f32 %v2286_v24, %v955_v22 }
 0x42f   : > { %v1494_v26 = vrot.slane %v1490_v25, %v1493_v23 }
 0x431   : > { %v1495_v27 = vmul.f32 %v1494_v26, %v2990_v62  ;;  %v1496_v28 = vmul.f32 %v1494_v26, %v2992_v63  ;;  %v1497_v29 = vmul.f32 %v1494_v26, %v2994_v0  ;;  %v1498_v30 = vmul.f32 %v1494_v26, %v2996_v1 }
 0x432   : > { %v1499_v32 = vmul.f32 %v1494_v26, %v2998_v2  ;;  %v1500_v33 = vmul.f32 %v1494_v26, %v3000_v3  ;;  %v1501_v34 = vmul.f32 %v1494_v26, %v3002_v4  ;;  %v1502_v35 = vmul.f32 %v1494_v26, %v3004_v5 }
 0x433   : > { %v1503_v36 = vmul.f32 %v1494_v26, %v3006_v6  ;;  %v1504_v37 = vmul.f32 %v1494_v26, %v3008_v7  ;;  %v1505_v62 = vmul.f32 %v1494_v26, %v3010_v8  ;;  %v1506_v63 = vmul.f32 %v1494_v26, %v3012_v10 }
 0x434   : > { %v1507_v0 = vmul.f32 %v1494_v26, %v3014_v9  ;;  %v1508_v1 = vmul.f32 %v1494_v26, %v3016_v11  ;;  %v1509_v2 = vmul.f32 %v1494_v26, %v3018_v12  ;;  %v1510_v3 = vmul.f32 %v1494_v26, %v3020_v13 }
 0x435   : > { %v3057_v38 = vadd.f32 %v1879_v31, %v1495_v27  ;;  %v3059_v4 = vadd.f32 %v1879_v31, %v1496_v28  ;;  %v3061_v5 = vadd.f32 %v1879_v31, %v1497_v29  ;;  %v3063_v6 = vadd.f32 %v1879_v31, %v1498_v30  ;;  %v1583_v29 = vld [vmem:[#allocation9] sm:$0xf] (!%p1880_p13) }
 0x436   : > { %v3065_v7 = vadd.f32 %v1879_v31, %v1499_v32  ;;  %v3067_v8 = vadd.f32 %v1879_v31, %v1500_v33  ;;  %v3069_v10 = vadd.f32 %v1879_v31, %v1501_v34  ;;  %v3071_v9 = vadd.f32 %v1879_v31, %v1502_v35 }
 0x437   : > { %v3073_v11 = vadd.f32 %v1879_v31, %v1503_v36  ;;  %v3075_v12 = vadd.f32 %v1879_v31, %v1504_v37  ;;  %v3077_v13 = vadd.f32 %v1879_v31, %v1505_v62  ;;  %v3079_v39 = vadd.f32 %v1879_v31, %v1506_v63  ;;  %1567 = vst [vmem:[#allocation14] sm:$0xff] (!%p1880_p13), %v3057_v38 }
 0x438   : > { %v3081_v40 = vadd.f32 %v1879_v31, %v1507_v0  ;;  %v3083_v41 = vadd.f32 %v1879_v31, %v1508_v1  ;;  %v3085_v42 = vadd.f32 %v1879_v31, %v1509_v2  ;;  %v3087_v43 = vadd.f32 %v1879_v31, %v1510_v3  ;;  %1568 = vst [vmem:[#allocation14 + $0x8] sm:$0xff] (!%p1880_p13), %v3059_v4 }
 0x439   : > { %v1531_v44 = vmax.f32 %v3057_v38, 0.0  ;;  %v1532_v45 = vmax.f32 %v3059_v4, 0.0  ;;  %v1533_v46 = vmax.f32 %v3061_v5, 0.0  ;;  %v1534_v47 = vmax.f32 %v3063_v6, 0.0  ;;  %1569 = vst [vmem:[#allocation14 + $0x10] sm:$0xff] (!%p1880_p13), %v3061_v5  ;;  %1570 = vst [vmem:[#allocation14 + $0x18] sm:$0xff] (!%p1880_p13), %v3063_v6 }
 0x43a   : > { %v1535_v48 = vmax.f32 %v3065_v7, 0.0  ;;  %v1536_v49 = vmax.f32 %v3067_v8, 0.0  ;;  %v1537_v50 = vmax.f32 %v3069_v10, 0.0  ;;  %v1538_v51 = vmax.f32 %v3071_v9, 0.0  ;;  %1571 = vst [vmem:[#allocation14 + $0x20] sm:$0xff] (!%p1880_p13), %v3065_v7  ;;  %1572 = vst [vmem:[#allocation14 + $0x28] sm:$0xff] (!%p1880_p13), %v3067_v8 }
 0x43b   : > { %v1539_v52 = vmax.f32 %v3073_v11, 0.0  ;;  %v1540_v53 = vmax.f32 %v3075_v12, 0.0  ;;  %v1541_v54 = vmax.f32 %v3077_v13, 0.0  ;;  %v1542_v55 = vmax.f32 %v3079_v39, 0.0  ;;  %1573 = vst [vmem:[#allocation14 + $0x30] sm:$0xff] (!%p1880_p13), %v3069_v10  ;;  %1574 = vst [vmem:[#allocation14 + $0x38] sm:$0xff] (!%p1880_p13), %v3071_v9 }
 0x43c   : > { %v1543_v56 = vmax.f32 %v3081_v40, 0.0  ;;  %v1544_v57 = vmax.f32 %v3083_v41, 0.0  ;;  %v1545_v58 = vmax.f32 %v3085_v42, 0.0  ;;  %v1546_v59 = vmax.f32 %v3087_v43, 0.0  ;;  %1566 = sbr.rel (%p1880_p13) target bundleno = 1335 (0x537), region = 88  ;;  %1575 = vst [vmem:[#allocation14 + $0x40] sm:$0xff] (!%p1880_p13), %v3073_v11 }
 0x43d   : > { %v1547_v60 = vpack.c.bf16 %v1532_v45, %v1531_v44  ;;  %v1548_v61 = vpack.c.bf16 %v1534_v47, %v1533_v46  ;;  %v1549_v14 = vpack.c.bf16 %v1536_v49, %v1535_v48  ;;  %v1550_v15 = vpack.c.bf16 %v1538_v51, %v1537_v50  ;;  %1576 = vst [vmem:[#allocation14 + $0x48] sm:$0xff] (!%p1880_p13), %v3075_v12 }
 0x43e   : > { %v1551_v17 = vpack.c.bf16 %v1540_v53, %v1539_v52  ;;  %v1552_v18 = vpack.c.bf16 %v1542_v55, %v1541_v54  ;;  %v1553_v19 = vpack.c.bf16 %v1544_v57, %v1543_v56  ;;  %v1554_v20 = vpack.c.bf16 %v1546_v59, %v1545_v58  ;;  %1577 = vst [vmem:[#allocation14 + $0x50] sm:$0xff] (!%p1880_p13), %v3077_v13 }
 0x43f   : > { %1555 = vst [vmem:[#allocation2] sm:$0xff] %v1547_v60  ;;  %1556 = vst [vmem:[#allocation2 + $0x8] sm:$0xff] %v1548_v61  ;;  %v1584_v16 = vpack.c.bf16 (!%p1880_p13), %v3059_v4, %v3057_v38  ;;  %v1585_v22 = vpack.c.bf16 (!%p1880_p13), %v3063_v6, %v3061_v5  ;;  %v1586_v23 = vpack.c.bf16 (!%p1880_p13), %v3067_v8, %v3065_v7 }
 0x440   : > { %1557 = vst [vmem:[#allocation2 + $0x10] sm:$0xff] %v1549_v14  ;;  %1558 = vst [vmem:[#allocation2 + $0x18] sm:$0xff] %v1550_v15  ;;  %v1587_v24 = vpack.c.bf16 (!%p1880_p13), %v3071_v9, %v3069_v10  ;;  %v1588_v25 = vpack.c.bf16 (!%p1880_p13), %v3075_v12, %v3073_v11  ;;  %v1589_v26 = vpack.c.bf16 (!%p1880_p13), %v3079_v39, %v3077_v13 }
 0x441   : > { %1559 = vst [vmem:[#allocation2 + $0x20] sm:$0xff] %v1551_v17  ;;  %1560 = vst [vmem:[#allocation2 + $0x28] sm:$0xff] %v1552_v18  ;;  %2092 = vmatpush3.bf16.msra.mxu0 (!%p1880_p13), %v1584_v16  ;;  %v1590_v27 = vpack.c.bf16 (!%p1880_p13), %v3083_v41, %v3081_v40  ;;  %v1591_v28 = vpack.c.bf16 (!%p1880_p13), %v3087_v43, %v3085_v42 }
 0x442   : > { %1561 = vst [vmem:[#allocation2 + $0x30] sm:$0xff] %v1553_v19  ;;  %1562 = vst [vmem:[#allocation2 + $0x38] sm:$0xff] %v1554_v20  ;;  %2093 = vmatprep.subr.bf16.mxu0 (!%p1880_p13), %v2606_v21 }
 0x443   : > { %1578 = vst [vmem:[#allocation14 + $0x58] sm:$0xff] %v3079_v39  ;;  %1579 = vst [vmem:[#allocation14 + $0x60] sm:$0xff] %v3081_v40 }
 0x444   : > { %1580 = vst [vmem:[#allocation14 + $0x68] sm:$0xff] %v3083_v41  ;;  %1581 = vst [vmem:[#allocation14 + $0x70] sm:$0xff] %v3085_v42 }
 0x445   : > { %1582 = vst [vmem:[#allocation14 + $0x78] sm:$0xff] %v3087_v43  ;;  %2094 = vmatpush3.bf16.msra.mxu0 %v1585_v22 }
 0x446   : > { %2095 = vmatprep.subr.bf16.mxu0 %v2606_v21 }
 0x449   : > { %2096 = vmatpush3.bf16.msra.mxu0 %v1586_v23 }
 0x44a   : > { %2097 = vmatprep.subr.bf16.mxu0 %v2606_v21 }
 0x44d   : > { %2098 = vmatpush3.bf16.msra.mxu0 %v1587_v24 }
 0x44e   : > { %2099 = vmatprep.subr.bf16.mxu0 %v2606_v21 }
 0x451   : > { %2100 = vmatpush3.bf16.msra.mxu0 %v1588_v25 }
 0x452   : > { %2101 = vmatprep.subr.bf16.mxu0 %v2606_v21 }
 0x455   : > { %2102 = vmatpush3.bf16.msra.mxu0 %v1589_v26 }
 0x456   : > { %2103 = vmatprep.subr.bf16.mxu0 %v2606_v21 }
 0x459   : > { %2104 = vmatpush3.bf16.msra.mxu0 %v1590_v27 }
 0x45a   : > { %2105 = vmatprep.subr.bf16.mxu0 %v2606_v21 }
 0x45d   : > { %2106 = vmatpush3.bf16.msra.mxu0 %v1591_v28 }
 0x460   : > { %2108 = vmatmul.mubr.bf16.vlgmr.msra.gmra.mrb[0].mxu0 %v1583_v29 }
 0x533   : > { %v1626_v30 = vpop.f32.mrb[0].mxu0 }
 0x534   : > { %1632 = vst [vmem:[#allocation15] sm:$0xff] %v1626_v30  ;;  %v2109_v31 = vpop.f32.mrb[1].mxu0 }
 0x535   : > { %v1629_v32 = vpop.f32.mrb[2].mxu0 }
 0x536   : > { %v2110_v33 = vpop.f32.mrb[3].mxu0 }
 0x537 PF: > { %p2189_p6 = scmp.eq.s32.totalorder %s2681_s13, 2  ;;  %s2608_s14 = smov [#allocation14]  }
 0x538   : > { %s1639_s17 = sshll.u32 %s2608_s14, 4  ;;  %s1640_s17 = int_to_ptr.vmem [resolvable:$true] %s1639_s17 }
 0x539   : > { %s2489_s18 = scalar_lea.vmem %s1640_s17, 2048  ;;  %p2496_p9 = scmp.lt.s32.totalorder %s1640_s17, %s1640_s17 }
 0x53a   : > { %p2490_p8 = scmp.ne.s32.totalorder %s1640_s17, %s2489_s18  ;;  %p2497_p12 = scmp.lt.s32.totalorder %s2489_s18, %s2489_s18 }
 0x53c   : > { %p2491_p1 = pnand %p2490_p8, %p2189_p6  ;;  %p2498_p0 = por %p2497_p12, %p2496_p9 }
 0x53e   : > { %p2492_p10 = pneg %p2491_p1 }
 0x540   : > { %p2499_p3 = pnand %p2498_p0, %p2492_p10 }
 0x542   : > { %2502 = shalt.err (!%p2499_p3)
}
 0x543   : > { %s2503_s25 = scalar_lea.hbm %s3204_s8, 2048 }
 0x544   : > { %p2504_p7 = scmp.ne.s32.totalorder %s3204_s8, %s2503_s25  ;;  %p2509_p4 = scmp.lt.u32.totalorder %s2503_s25, %s3204_s8 }
 0x546   : > { %p2505_p11 = pnand %p2504_p7, %p2189_p6 }
 0x548   : > { %p2506_p2 = pneg %p2505_p11 }
 0x54a   : > { %p2511_p5 = pnand %p2509_p4, %p2506_p2 }
 0x54c   : > { %2514 = shalt.err (!%p2511_p5)
}
 0x54d   : > { %s2609_s11 = smov 128   ;;  %s2610_s26 = smov 8  }
 0x54e   : > { %2150 = dma.vmem_to_hbm [thread:$0]  (%p2189_p6), %s1640_s17, 2048, %s3204_s8, [#allocation5], %s2609_s11, %s2609_s11, %s2610_s26  }
 0x54f   : > { %s2611_s28 = smov [#allocation15]  }
 0x550   : > { %s1653_s19 = sshll.u32 %s2611_s28, 4  ;;  %s1654_s19 = int_to_ptr.vmem [resolvable:$true] %s1653_s19 }
 0x551   : > { %s2515_s22 = scalar_lea.vmem %s1654_s19, 128  ;;  %p2522_p10 = scmp.lt.s32.totalorder %s1654_s19, %s1654_s19 }
 0x552   : > { %p2516_p13 = scmp.ne.s32.totalorder %s1654_s19, %s2515_s22  ;;  %p2523_p9 = scmp.lt.s32.totalorder %s2515_s22, %s2515_s22 }
 0x554   : > { %p2517_p8 = pnand %p2516_p13, %p2189_p6  ;;  %p2524_p12 = por %p2523_p9, %p2522_p10 }
 0x556   : > { %p2518_p1 = pneg %p2517_p8 }
 0x558   : > { %p2525_p0 = pnand %p2524_p12, %p2518_p1 }
 0x55a   : > { %2528 = shalt.err (!%p2525_p0)
}
 0x55b   : > { %s3260_s12 = sld [smem:[#allocation30_spill]] }
 0x561   : > { %s3261_s1 = smov %s3260_s12  ;;  %s2529_s5 = scalar_lea.hbm %s3260_s12, 128 }
 0x562   : > { %p2530_p3 = scmp.ne.s32.totalorder %s3261_s1, %s2529_s5  ;;  %p2535_p2 = scmp.lt.u32.totalorder %s2529_s5, %s3261_s1 }
 0x564   : > { %p2531_p7 = pnand %p2530_p3, %p2189_p6 }
 0x566   : > { %p2532_p11 = pneg %p2531_p7 }
 0x568   : > { %p2537_p4 = pnand %p2535_p2, %p2532_p11 }
 0x56a   : > { %2540 = shalt.err (!%p2537_p4)
}
 0x56b   : > { %2152 = dma.vmem_to_hbm [thread:$0]  (%p2189_p6), %s1654_s19, 128, %s3261_s1, [#allocation16]  }
 0x56c   : > { %2574 = dma.done.wait (%p2189_p6), [#allocation5], 2048  }
 0x56d   : > { %2576 = vsyncadd (%p2189_p6), [#allocation5], 4294965248 }
 0x56e   : > { %2578 = dma.done.wait (%p2189_p6), [#allocation16], 128  }
 0x56f   : > { %2580 = vsyncadd (%p2189_p6), [#allocation16], 4294967168 }
 0x570 PF: > { %s3262_s12 = sld [smem:[#allocation24_spill]]  ;;  %s3263_s4 = sld [smem:[#allocation23_spill]] }
 0x571   : > { %s3264_s11 = sld [smem:[#allocation25_spill]]  ;;  %s3265_s30 = smov %s2587_s10 }
 0x576   : > { %p22_p5 = scmp.ge.s32.totalorder %s3262_s12, 5   ;;  %s3266_s10 = smov %s3263_s4 }
 0x578   :  { %24 = sbr.rel (!%p22_p5) target bundleno = 12 (0xc), region = 145 }
 0x57f   :  { %1670 = vsyncpa [#allocation4], 1 }
 0x580   :  { %1672 = vsyncpa [#allocation4 + $0x1], 1 }
 0x581   :  { %1673 = vsyncpa [#allocation7], 1 }
 0x582   :  { %1674 = vsyncpa [#allocation10], 1 }
 0x583   :  { %1675 = vsyncpa [#allocation5], 1 }
 0x584   :  { %1677 = vsyncpa [#allocation5 + $0x1], 1 }
 0x585   :  { %1678 = vsyncpa [#allocation16], 1 }

</bundles_post_ra>
